<compile_context>
chip_gen: v7x
topology: tpu7x:2x2x1
jax: 0.10.0
libtpu: 0.0.40
codegen_flags: <defaults>
</compile_context>

<pallas_src>
import jax
import jax.numpy as jnp
from jax.experimental import pallas as pl
from jax.experimental.pallas import tpu as pltpu

D_IN = 256       # fcP1/fcV1 input width
H = 2048         # fcP1/fcV1/fcP2 output width, fcP2/fcV2 input width
HV = 1024        # fcV2 output width
H3 = H + HV      # packed layer-3 contraction width
N_P = 4          # policy logits
N_V = 1          # value
LANE = 128       # lane-dense padded output width
TK = 512         # hidden-dim chunk streamed per grid step
NK = H // TK     # grid length (=4)


def _linearnet_kernel(x_ref, w1_ref, b1_ref, wp2_ref, wv2_ref,
                      bp2_ref, bv2_ref, w3_ref, b3_ref,
                      o_ref, acc_p, acc_v):
    k = pl.program_id(0)

    @pl.when(k == 0)
    def _():
        acc_p[...] = jnp.zeros_like(acc_p)
        acc_v[...] = jnp.zeros_like(acc_v)

    # Layer 1, both heads, hidden chunk k: one (M,256)x(256,2*TK) bf16 matmul.
    # w1_ref block is (1, 256, 2*TK); [0] drops the chunk axis.
    h = jnp.dot(x_ref[...], w1_ref[0], preferred_element_type=jnp.float32)
    h = jnp.maximum(h + b1_ref[...], 0.0)          # f32 bias + ReLU
    h = h.astype(jnp.bfloat16)                     # bf16 operand for next MXU op
    h_p = h[:, :TK]                                # policy hidden, chunk k
    h_v = h[:, TK:]                                # value hidden,  chunk k

    # Layer-2 partial products, accumulated in f32 VMEM scratch across the grid.
    acc_p[...] += jnp.dot(h_p, wp2_ref[...], preferred_element_type=jnp.float32)
    acc_v[...] += jnp.dot(h_v, wv2_ref[...], preferred_element_type=jnp.float32)

    # Finalize: layer-2 bias+ReLU on the f32 accumulators, then the packed
    # block-diagonal layer-3 into a single lane-dense (M, 128) output.
    # (Single streamed W3 block; split into two ref-slice dots instead of an
    #  in-kernel concatenate — identical bytes/result, simpler lowering.)
    @pl.when(k == pl.num_programs(0) - 1)
    def _():
        p2 = jnp.maximum(acc_p[...] + bp2_ref[...], 0.0).astype(jnp.bfloat16)
        v2 = jnp.maximum(acc_v[...] + bv2_ref[...], 0.0).astype(jnp.bfloat16)
        out = jnp.dot(p2, w3_ref[:H, :], preferred_element_type=jnp.float32)
        out = out + jnp.dot(v2, w3_ref[H:, :], preferred_element_type=jnp.float32)
        o_ref[...] = (out + b3_ref[...]).astype(o_ref.dtype)


def _pack_params(params):
    """Re-layout torch-style (out, in) weights: bf16 weights, f32 biases."""
    bf16, f32 = jnp.bfloat16, jnp.float32

    wp1 = params["fcP1_w"].astype(f32).T            # (256, 2048)  y = x @ W.T
    wv1 = params["fcV1_w"].astype(f32).T            # (256, 2048)
    # Interleave policy/value layer-1 columns at TK granularity and pre-split
    # into per-chunk contiguous blocks: w1[k] = [Wp1 chunk k | Wv1 chunk k].
    w1 = jnp.concatenate(
        [wp1.reshape(D_IN, NK, TK), wv1.reshape(D_IN, NK, TK)], axis=2)
    w1 = jnp.transpose(w1, (1, 0, 2)).astype(bf16)  # (NK, 256, 2*TK) contiguous chunks
    b1 = jnp.concatenate(
        [params["fcP1_b"].astype(f32).reshape(NK, TK),
         params["fcV1_b"].astype(f32).reshape(NK, TK)], axis=1
    ).reshape(1, NK * 2 * TK)                        # f32; added to f32 accumulator

    wp2 = params["fcP2_w"].astype(f32).T.astype(bf16)   # (2048, 2048)
    wv2 = params["fcV2_w"].astype(f32).T.astype(bf16)   # (2048, 1024)
    bp2 = params["fcP2_b"].astype(f32).reshape(1, H)
    bv2 = params["fcV2_b"].astype(f32).reshape(1, HV)

    # Block-diagonal packed layer-3, zero-padded to 128 output lanes:
    # rows 0..H-1 / cols 0..3 hold Wp3^T, rows H..H+HV-1 / col 4 hold Wv3^T.
    w3 = jnp.zeros((H3, LANE), f32)
    w3 = w3.at[:H, :N_P].set(params["fcP3_w"].astype(f32).T)
    w3 = w3.at[H:, N_P:N_P + N_V].set(params["fcV3_w"].astype(f32).T)
    w3 = w3.astype(bf16)
    b3 = jnp.zeros((1, LANE), f32)
    b3 = b3.at[0, :N_P].set(params["fcP3_b"].astype(f32))
    b3 = b3.at[0, N_P:N_P + N_V].set(params["fcV3_b"].astype(f32))
    return (w1, b1, wp2, wv2, bp2, bv2, w3, b3)


def linearnet_forward(x, params):
    m = x.size // D_IN
    # Row-major flatten, identical to torch x.view(-1, 256) on NCHW input.
    x2 = x.reshape(m, D_IN).astype(jnp.bfloat16)
    packed = _pack_params(params)   # NOTE: in production pre-pack once outside jit.

    grid_spec = pltpu.PrefetchScalarGridSpec(
        num_scalar_prefetch=0,
        grid=(NK,),
        in_specs=[
            pl.BlockSpec((m, D_IN), lambda k: (0, 0)),            # x (resident)
            pl.BlockSpec((1, D_IN, 2 * TK), lambda k: (k, 0, 0)),  # [Wp1|Wv1] chunk k (contiguous)
            pl.BlockSpec((1, 2 * TK), lambda k: (0, k)),          # [bp1|bv1] chunk k
            pl.BlockSpec((TK, H), lambda k: (k, 0)),              # Wp2 row-chunk k
            pl.BlockSpec((TK, HV), lambda k: (k, 0)),             # Wv2 row-chunk k
            pl.BlockSpec((1, H), lambda k: (0, 0)),               # bp2 (resident)
            pl.BlockSpec((1, HV), lambda k: (0, 0)),              # bv2 (resident)
            pl.BlockSpec((H3, LANE), lambda k: (0, 0)),           # packed W3 (resident)
            pl.BlockSpec((1, LANE), lambda k: (0, 0)),            # packed b3 (resident)
        ],
        out_specs=pl.BlockSpec((m, LANE), lambda k: (0, 0)),      # [p|v] lane-dense slab
        scratch_shapes=[
            pltpu.VMEM((m, H), jnp.float32),    # layer-2 policy accumulator
            pltpu.VMEM((m, HV), jnp.float32),   # layer-2 value accumulator
        ],
    )

    # Advisory cost model: DMA-bound, ~15.5 MB streamed, ~1.2e8 flops.
    flops = 2 * m * (D_IN * 2 * H + H * H + H * HV + H3 * LANE)
    bytes_accessed = (sum(int(a.size) * a.dtype.itemsize for a in (x2, *packed))
                      + m * LANE * 4)
    cost = pl.CostEstimate(flops=flops, transcendentals=0,
                           bytes_accessed=bytes_accessed)

    out = pl.pallas_call(
        _linearnet_kernel,
        out_shape=jax.ShapeDtypeStruct((m, LANE), jnp.float32),
        grid_spec=grid_spec,
        cost_estimate=cost,
        compiler_params=pltpu.CompilerParams(
            dimension_semantics=("arbitrary",),   # serial reduction over hidden chunks
            vmem_limit_bytes=32 * 1024 * 1024,    # ~9 MiB live; safe on v5e/v6e/v7x
        ),
    )(x2, *packed)

    return out[:, :N_P], out[:, N_P:N_P + N_V]


def _reference_forward(x, params):
    x2 = x.reshape(-1, D_IN).astype(jnp.float32)
    p = jnp.maximum(x2 @ params["fcP1_w"].T + params["fcP1_b"], 0.0)
    p = jnp.maximum(p @ params["fcP2_w"].T + params["fcP2_b"], 0.0)
    p = p @ params["fcP3_w"].T + params["fcP3_b"]
    v = jnp.maximum(x2 @ params["fcV1_w"].T + params["fcV1_b"], 0.0)
    v = jnp.maximum(v @ params["fcV2_w"].T + params["fcV2_b"], 0.0)
    v = v @ params["fcV3_w"].T + params["fcV3_b"]
    return p, v


if __name__ == "__main__":
    key = jax.random.PRNGKey(0)
    ks = jax.random.split(key, 13)
    f32 = jnp.float32
    s = 0.02
    x = jax.random.normal(ks[0], (2, 4, 16, 16), dtype=f32)
    params = {
        "fcP1_w": s * jax.random.normal(ks[1], (H, D_IN), f32),
        "fcP1_b": s * jax.random.normal(ks[2], (H,), f32),
        "fcP2_w": s * jax.random.normal(ks[3], (H, H), f32),
        "fcP2_b": s * jax.random.normal(ks[4], (H,), f32),
        "fcP3_w": s * jax.random.normal(ks[5], (N_P, H), f32),
        "fcP3_b": s * jax.random.normal(ks[6], (N_P,), f32),
        "fcV1_w": s * jax.random.normal(ks[7], (H, D_IN), f32),
        "fcV1_b": s * jax.random.normal(ks[8], (H,), f32),
        "fcV2_w": s * jax.random.normal(ks[9], (HV, H), f32),
        "fcV2_b": s * jax.random.normal(ks[10], (HV,), f32),
        "fcV3_w": s * jax.random.normal(ks[11], (N_V, HV), f32),
        "fcV3_b": s * jax.random.normal(ks[12], (N_V,), f32),
    }

    p, v = jax.jit(linearnet_forward)(x, params)
    jax.block_until_ready((p, v))

    assert p.shape == (8, N_P) and v.shape == (8, N_V)
    p_ref, v_ref = _reference_forward(x, params)
    max_err = max(float(jnp.max(jnp.abs(p - p_ref))),
                  float(jnp.max(jnp.abs(v - v_ref))))
    assert max_err < 2e-2, f"mismatch vs pure-JAX reference: {max_err}"
    print("KERNEL_OK")
</pallas_src>

<mosaic_0001>
module attributes {stable_mosaic.version = 11 : i64} {
  func.func @_linearnet_kernel(%arg0: i32, %arg1: memref<8x256xbf16, #tpu.memory_space<vmem>>, %arg2: memref<1x256x1024xbf16, #tpu.memory_space<vmem>>, %arg3: memref<1x1024xf32, #tpu.memory_space<vmem>>, %arg4: memref<512x2048xbf16, #tpu.memory_space<vmem>>, %arg5: memref<512x1024xbf16, #tpu.memory_space<vmem>>, %arg6: memref<1x2048xf32, #tpu.memory_space<vmem>>, %arg7: memref<1x1024xf32, #tpu.memory_space<vmem>>, %arg8: memref<3072x128xbf16, #tpu.memory_space<vmem>>, %arg9: memref<1x128xf32, #tpu.memory_space<vmem>>, %arg10: memref<8x128xf32, #tpu.memory_space<vmem>>, %arg11: memref<8x2048xf32, #tpu.memory_space<vmem>>, %arg12: memref<8x1024xf32, #tpu.memory_space<vmem>>) attributes {dimension_semantics = [#tpu.dimension_semantics<arbitrary>], iteration_bounds = array<i64: 4>, scalar_prefetch = 0 : i64, scratch_operands = 2 : i64, tpu.core_type = #tpu.core_type<tc>, window_params = [{pipeline_mode = #tpu.pipeline_mode<synchronous>, transform_indices = @transform_0, window_bounds = array<i64: 8, 256>}, {transform_indices = @transform_1, window_bounds = array<i64: 1, 256, 1024>}, {transform_indices = @transform_2, window_bounds = array<i64: 1, 1024>}, {transform_indices = @transform_3, window_bounds = array<i64: 512, 2048>}, {transform_indices = @transform_4, window_bounds = array<i64: 512, 1024>}, {pipeline_mode = #tpu.pipeline_mode<synchronous>, transform_indices = @transform_5, window_bounds = array<i64: 1, 2048>}, {pipeline_mode = #tpu.pipeline_mode<synchronous>, transform_indices = @transform_6, window_bounds = array<i64: 1, 1024>}, {pipeline_mode = #tpu.pipeline_mode<synchronous>, transform_indices = @transform_7, window_bounds = array<i64: 3072, 128>}, {pipeline_mode = #tpu.pipeline_mode<synchronous>, transform_indices = @transform_8, window_bounds = array<i64: 1, 128>}, {pipeline_mode = #tpu.pipeline_mode<synchronous>, transform_indices = @transform_9, window_bounds = array<i64: 8, 128>}]} {
    %c0_i32 = arith.constant 0 : i32
    %0 = arith.cmpi eq, %arg0, %c0_i32 : i32
    %1 = arith.extui %0 : i1 to i32
    %c0_i32_0 = arith.constant 0 : i32
    %2 = arith.cmpi ne, %1, %c0_i32_0 : i32
    scf.if %2 {
      %cst_23 = arith.constant 0.000000e+00 : f32
      %28 = vector.broadcast %cst_23 : f32 to vector<8x2048xf32>
      %c0_24 = arith.constant 0 : index
      %c0_25 = arith.constant 0 : index
      %29 = vector.load %arg11[%c0_24, %c0_25] : memref<8x2048xf32, #tpu.memory_space<vmem>>, vector<8x2048xf32>
      tpu.vector_store %arg11[%c0_24, %c0_25], %28 {strides = array<i32>} : memref<8x2048xf32, #tpu.memory_space<vmem>>, vector<8x2048xf32>,
      %cst_26 = arith.constant 0.000000e+00 : f32
      %30 = vector.broadcast %cst_26 : f32 to vector<8x1024xf32>
      %c0_27 = arith.constant 0 : index
      %c0_28 = arith.constant 0 : index
      %31 = vector.load %arg12[%c0_27, %c0_28] : memref<8x1024xf32, #tpu.memory_space<vmem>>, vector<8x1024xf32>
      tpu.vector_store %arg12[%c0_27, %c0_28], %30 {strides = array<i32>} : memref<8x1024xf32, #tpu.memory_space<vmem>>, vector<8x1024xf32>,
    } else {
    }
    %c0 = arith.constant 0 : index
    %c0_1 = arith.constant 0 : index
    %3 = vector.load %arg1[%c0, %c0_1] : memref<8x256xbf16, #tpu.memory_space<vmem>>, vector<8x256xbf16>
    %c0_2 = arith.constant 0 : index
    %c0_3 = arith.constant 0 : index
    %c0_4 = arith.constant 0 : index
    %4 = vector.load %arg2[%c0_2, %c0_3, %c0_4] : memref<1x256x1024xbf16, #tpu.memory_space<vmem>>, vector<1x256x1024xbf16>
    %5 = vector.shape_cast %4 : vector<1x256x1024xbf16> to vector<256x1024xbf16>
    %cst = arith.constant dense<0.000000e+00> : vector<8x1024xf32>
    %6 = tpu.matmul %3, %5, %cst {dimension_numbers = #tpu.dot_dimension_numbers<[1], [0], [0], [1], [0, 0, 1, 1], [], []>} : vector<8x256xbf16>, vector<256x1024xbf16>, vector<8x1024xf32> -> vector<8x1024xf32>
    %c0_5 = arith.constant 0 : index
    %c0_6 = arith.constant 0 : index
    %7 = vector.load %arg3[%c0_5, %c0_6] : memref<1x1024xf32, #tpu.memory_space<vmem>>, vector<1x1024xf32>
    %8 = vector.broadcast %7 : vector<1x1024xf32> to vector<8x1024xf32>
    %9 = arith.addf %6, %8 : vector<8x1024xf32>
    %cst_7 = arith.constant 0.000000e+00 : f32
    %10 = vector.broadcast %cst_7 : f32 to vector<8x1024xf32>
    %11 = arith.maximumf %9, %10 : vector<8x1024xf32>
    %12 = arith.truncf %11 : vector<8x1024xf32> to vector<8x1024xbf16>
    %13 = vector.extract_strided_slice %12 {offsets = [0, 0], sizes = [8, 512], strides = [1, 1]} : vector<8x1024xbf16> to vector<8x512xbf16>
    %14 = vector.extract_strided_slice %12 {offsets = [0, 512], sizes = [8, 512], strides = [1, 1]} : vector<8x1024xbf16> to vector<8x512xbf16>
    %c0_8 = arith.constant 0 : index
    %c0_9 = arith.constant 0 : index
    %15 = vector.load %arg11[%c0_8, %c0_9] : memref<8x2048xf32, #tpu.memory_space<vmem>>, vector<8x2048xf32>
    %c0_10 = arith.constant 0 : index
    %c0_11 = arith.constant 0 : index
    %16 = vector.load %arg4[%c0_10, %c0_11] : memref<512x2048xbf16, #tpu.memory_space<vmem>>, vector<512x2048xbf16>
    %cst_12 = arith.constant dense<0.000000e+00> : vector<8x2048xf32>
    %17 = tpu.matmul %13, %16, %cst_12 {dimension_numbers = #tpu.dot_dimension_numbers<[1], [0], [0], [1], [0, 0, 1, 1], [], []>} : vector<8x512xbf16>, vector<512x2048xbf16>, vector<8x2048xf32> -> vector<8x2048xf32>
    %18 = arith.addf %15, %17 : vector<8x2048xf32>
    %c0_13 = arith.constant 0 : index
    %c0_14 = arith.constant 0 : index
    %19 = vector.load %arg11[%c0_13, %c0_14] : memref<8x2048xf32, #tpu.memory_space<vmem>>, vector<8x2048xf32>
    tpu.vector_store %arg11[%c0_13, %c0_14], %18 {strides = array<i32>} : memref<8x2048xf32, #tpu.memory_space<vmem>>, vector<8x2048xf32>,
    %c0_15 = arith.constant 0 : index
    %c0_16 = arith.constant 0 : index
    %20 = vector.load %arg12[%c0_15, %c0_16] : memref<8x1024xf32, #tpu.memory_space<vmem>>, vector<8x1024xf32>
    %c0_17 = arith.constant 0 : index
    %c0_18 = arith.constant 0 : index
    %21 = vector.load %arg5[%c0_17, %c0_18] : memref<512x1024xbf16, #tpu.memory_space<vmem>>, vector<512x1024xbf16>
    %cst_19 = arith.constant dense<0.000000e+00> : vector<8x1024xf32>
    %22 = tpu.matmul %14, %21, %cst_19 {dimension_numbers = #tpu.dot_dimension_numbers<[1], [0], [0], [1], [0, 0, 1, 1], [], []>} : vector<8x512xbf16>, vector<512x1024xbf16>, vector<8x1024xf32> -> vector<8x1024xf32>
    %23 = arith.addf %20, %22 : vector<8x1024xf32>
    %c0_20 = arith.constant 0 : index
    %c0_21 = arith.constant 0 : index
    %24 = vector.load %arg12[%c0_20, %c0_21] : memref<8x1024xf32, #tpu.memory_space<vmem>>, vector<8x1024xf32>
    tpu.vector_store %arg12[%c0_20, %c0_21], %23 {strides = array<i32>} : memref<8x1024xf32, #tpu.memory_space<vmem>>, vector<8x1024xf32>,
    %c3_i32 = arith.constant 3 : i32
    %25 = arith.cmpi eq, %arg0, %c3_i32 : i32
    %26 = arith.extui %25 : i1 to i32
    %c0_i32_22 = arith.constant 0 : i32
    %27 = arith.cmpi ne, %26, %c0_i32_22 : i32
    scf.if %27 {
      %c0_23 = arith.constant 0 : index
      %c0_24 = arith.constant 0 : index
      %28 = vector.load %arg11[%c0_23, %c0_24] : memref<8x2048xf32, #tpu.memory_space<vmem>>, vector<8x2048xf32>
      %c0_25 = arith.constant 0 : index
      %c0_26 = arith.constant 0 : index
      %29 = vector.load %arg6[%c0_25, %c0_26] : memref<1x2048xf32, #tpu.memory_space<vmem>>, vector<1x2048xf32>
      %30 = vector.broadcast %29 : vector<1x2048xf32> to vector<8x2048xf32>
      %31 = arith.addf %28, %30 : vector<8x2048xf32>
      %cst_27 = arith.constant 0.000000e+00 : f32
      %32 = vector.broadcast %cst_27 : f32 to vector<8x2048xf32>
      %33 = arith.maximumf %31, %32 : vector<8x2048xf32>
      %34 = arith.truncf %33 : vector<8x2048xf32> to vector<8x2048xbf16>
      %c0_28 = arith.constant 0 : index
      %c0_29 = arith.constant 0 : index
      %35 = vector.load %arg12[%c0_28, %c0_29] : memref<8x1024xf32, #tpu.memory_space<vmem>>, vector<8x1024xf32>
      %c0_30 = arith.constant 0 : index
      %c0_31 = arith.constant 0 : index
      %36 = vector.load %arg7[%c0_30, %c0_31] : memref<1x1024xf32, #tpu.memory_space<vmem>>, vector<1x1024xf32>
      %37 = vector.broadcast %36 : vector<1x1024xf32> to vector<8x1024xf32>
      %38 = arith.addf %35, %37 : vector<8x1024xf32>
      %cst_32 = arith.constant 0.000000e+00 : f32
      %39 = vector.broadcast %cst_32 : f32 to vector<8x1024xf32>
      %40 = arith.maximumf %38, %39 : vector<8x1024xf32>
      %41 = arith.truncf %40 : vector<8x1024xf32> to vector<8x1024xbf16>
      %c0_33 = arith.constant 0 : index
      %c0_34 = arith.constant 0 : index
      %42 = vector.load %arg8[%c0_33, %c0_34] : memref<3072x128xbf16, #tpu.memory_space<vmem>>, vector<2048x128xbf16>
      %cst_35 = arith.constant dense<0.000000e+00> : vector<8x128xf32>
      %43 = tpu.matmul %34, %42, %cst_35 {dimension_numbers = #tpu.dot_dimension_numbers<[1], [0], [0], [1], [0, 0, 1, 1], [], []>} : vector<8x2048xbf16>, vector<2048x128xbf16>, vector<8x128xf32> -> vector<8x128xf32>
      %c2048 = arith.constant 2048 : index
      %c0_36 = arith.constant 0 : index
      %44 = vector.load %arg8[%c2048, %c0_36] : memref<3072x128xbf16, #tpu.memory_space<vmem>>, vector<1024x128xbf16>
      %cst_37 = arith.constant dense<0.000000e+00> : vector<8x128xf32>
      %45 = tpu.matmul %41, %44, %cst_37 {dimension_numbers = #tpu.dot_dimension_numbers<[1], [0], [0], [1], [0, 0, 1, 1], [], []>} : vector<8x1024xbf16>, vector<1024x128xbf16>, vector<8x128xf32> -> vector<8x128xf32>
      %46 = arith.addf %43, %45 : vector<8x128xf32>
      %c0_38 = arith.constant 0 : index
      %c0_39 = arith.constant 0 : index
      %47 = vector.load %arg9[%c0_38, %c0_39] : memref<1x128xf32, #tpu.memory_space<vmem>>, vector<1x128xf32>
      %48 = vector.broadcast %47 : vector<1x128xf32> to vector<8x128xf32>
      %49 = arith.addf %46, %48 : vector<8x128xf32>
      %c0_40 = arith.constant 0 : index
      %c0_41 = arith.constant 0 : index
      %50 = vector.load %arg10[%c0_40, %c0_41] : memref<8x128xf32, #tpu.memory_space<vmem>>, vector<8x128xf32>
      tpu.vector_store %arg10[%c0_40, %c0_41], %49 {strides = array<i32>} : memref<8x128xf32, #tpu.memory_space<vmem>>, vector<8x128xf32>,
    } else {
    }
    return
  }
  func.func @transform_0(%arg0: i32) -> (i32, i32) {
    %c0_i32 = arith.constant 0 : i32
    %c0_i32_0 = arith.constant 0 : i32
    %c0_i32_1 = arith.constant 0 : i32
    return %c0_i32, %c0_i32_0 : i32, i32
  }
  func.func @transform_1(%arg0: i32) -> (i32, i32, i32) {
    %c0_i32 = arith.constant 0 : i32
    %c0_i32_0 = arith.constant 0 : i32
    %c0_i32_1 = arith.constant 0 : i32
    return %arg0, %c0_i32, %c0_i32_0 : i32, i32, i32
  }
  func.func @transform_2(%arg0: i32) -> (i32, i32) {
    %c0_i32 = arith.constant 0 : i32
    %c0_i32_0 = arith.constant 0 : i32
    return %c0_i32, %arg0 : i32, i32
  }
  func.func @transform_3(%arg0: i32) -> (i32, i32) {
    %c0_i32 = arith.constant 0 : i32
    %c0_i32_0 = arith.constant 0 : i32
    return %arg0, %c0_i32 : i32, i32
  }
  func.func @transform_4(%arg0: i32) -> (i32, i32) {
    %c0_i32 = arith.constant 0 : i32
    %c0_i32_0 = arith.constant 0 : i32
    return %arg0, %c0_i32 : i32, i32
  }
  func.func @transform_5(%arg0: i32) -> (i32, i32) {
    %c0_i32 = arith.constant 0 : i32
    %c0_i32_0 = arith.constant 0 : i32
    %c0_i32_1 = arith.constant 0 : i32
    return %c0_i32, %c0_i32_0 : i32, i32
  }
  func.func @transform_6(%arg0: i32) -> (i32, i32) {
    %c0_i32 = arith.constant 0 : i32
    %c0_i32_0 = arith.constant 0 : i32
    %c0_i32_1 = arith.constant 0 : i32
    return %c0_i32, %c0_i32_0 : i32, i32
  }
  func.func @transform_7(%arg0: i32) -> (i32, i32) {
    %c0_i32 = arith.constant 0 : i32
    %c0_i32_0 = arith.constant 0 : i32
    %c0_i32_1 = arith.constant 0 : i32
    return %c0_i32, %c0_i32_0 : i32, i32
  }
  func.func @transform_8(%arg0: i32) -> (i32, i32) {
    %c0_i32 = arith.constant 0 : i32
    %c0_i32_0 = arith.constant 0 : i32
    %c0_i32_1 = arith.constant 0 : i32
    return %c0_i32, %c0_i32_0 : i32, i32
  }
  func.func @transform_9(%arg0: i32) -> (i32, i32) {
    %c0_i32 = arith.constant 0 : i32
    %c0_i32_0 = arith.constant 0 : i32
    %c0_i32_1 = arith.constant 0 : i32
    return %c0_i32, %c0_i32_0 : i32, i32
  }
}

</mosaic_0001>

<bundles_post_ra>
// kernel: linearnet_forward.1
= control target key start
LH: loop header
LB: loop body
LE: loop exit
PB: predicated region body
PF: predicated region fallthrough
CT: control target
= control target key end

     0   :  { %s11028_s30 = smov 0   ;;  %s12769_s0 = inlined_call_operand.vmem [shape: bf16[8,256], index: 0, kind: input, shape index: {}]   ;;  %s12770_s1 = inlined_call_operand.vmem [shape: bf16[4,256,1024], index: 1, kind: input, shape index: {}]   ;;  %s12771_s2 = inlined_call_operand.vmem [shape: f32[1,4096], index: 2, kind: input, shape index: {}]   ;;  %s12772_s3 = inlined_call_operand.vmem [shape: bf16[2048,2048], index: 3, kind: input, shape index: {}]   ;;  %s12773_s4 = inlined_call_operand.vmem [shape: bf16[2048,1024], index: 4, kind: input, shape index: {}]   ;;  %s12774_s5 = inlined_call_operand.vmem [shape: f32[1,2048], index: 5, kind: input, shape index: {}]   ;;  %s12775_s6 = inlined_call_operand.vmem [shape: f32[1,1024], index: 6, kind: input, shape index: {}]   ;;  %s12776_s7 = inlined_call_operand.vmem [shape: bf16[3072,128], index: 7, kind: input, shape index: {}]   ;;  %s12777_s8 = inlined_call_operand.vmem [shape: f32[1,128], index: 8, kind: input, shape index: {}]   ;;  %s12778_s9 = inlined_call_operand.vmem [shape: f32[8,128], index: 9, kind: output, shape index: {}]  }
   0x1 LB: > { %s11034_s10 = sadd.s32 4294967295, %s10975_s30   ;;  %p9393_p0 = scmp.ge.s32.totalorder %s10975_s30, 1  ;;  %s10975_s30 = sphi %s11028_s30, %s19_s30  }
   0x2   : > { %p316_p1 = scmp.lt.s32.totalorder %s10975_s30, 5 }
   0x4   : > { %p317_p2 = pnand %p9393_p0, %p316_p1 }
   0x5   : > { %p363_p3 = scmp.lt.s32.totalorder (!%p317_p2), %s11034_s10, 3  ;;  %s9396_s11 = sshll.u32 (!%p317_p2), %s11034_s10, 3 }
   0x6   : > { %320 = sbr.rel (%p317_p2) target bundleno = 1623 (0x657), region = 56  ;;  %p369_p4 = scmp.lt.s32.totalorder (!%p317_p2), %s9396_s11, 31 }
   0x7   : > { %s9397_s12 = sshll.u32 (!%p317_p2), %s11034_s10, 6  ;;  %p9403_p6 = scmp.ne.s32.totalorder (!%p317_p2), %s11034_s10, 0 }
   0x8   : > { %p374_p5 = scmp.lt.s32.totalorder (!%p317_p2), %s9397_s12, 255 }
   0xd   : > { %s364_s13 = scalar_select %p363_p3, %s11034_s10, 3 }
   0xe   : > { %s12780_s11 = smov (!%p369_p4, %s9396_s11), 31  ;;  %s12782_s12 = smov (!%p374_p5, %s9397_s12), 255 }
   0xf   : > { %s10498_s14 = sshll.u32 %s364_s13, 10  ;;  %s11050_s20 = scalar_lea.vmem %s12771_s2, %s12780_s11  ;;  %v10977_v0 = vmov (!%p9403_p6), 0.0  }
  0x10   : > { %s11045_s17 = scalar_lea.vmem %s12770_s1, %s10498_s14  ;;  %s10499_s21 = sshll.u32 %s12782_s12, 6  ;;  %392 = vst [vmem:[#allocation2] sm:$0xff] (!%p9403_p6), %v10977_v0  ;;  %393 = vst [vmem:[#allocation2 + $0x8] sm:$0xff] (!%p9403_p6), %v10977_v0 }
  0x11   : > { %s10500_s22 = sshll.u32 %s12782_s12, 5  ;;  %s11055_s25 = scalar_lea.vmem %s12772_s3, %s10499_s21  ;;  %394 = vst [vmem:[#allocation2 + $0x10] sm:$0xff] (!%p9403_p6), %v10977_v0  ;;  %395 = vst [vmem:[#allocation2 + $0x18] sm:$0xff] (!%p9403_p6), %v10977_v0 }
  0x12   : > { %s11060_s28 = scalar_lea.vmem %s12773_s4, %s10500_s22  ;;  %391 = sbr.rel (%p9403_p6) target bundleno = 28 (0x1c), region = 60  ;;  %396 = vst [vmem:[#allocation2 + $0x20] sm:$0xff] (!%p9403_p6), %v10977_v0  ;;  %397 = vst [vmem:[#allocation2 + $0x28] sm:$0xff] (!%p9403_p6), %v10977_v0 }
  0x13   : > { %398 = vst [vmem:[#allocation2 + $0x30] sm:$0xff] (!%p9403_p6), %v10977_v0  ;;  %399 = vst [vmem:[#allocation2 + $0x38] sm:$0xff] (!%p9403_p6), %v10977_v0 }
  0x14   : > { %400 = vst [vmem:[#allocation2 + $0x40] sm:$0xff] (!%p9403_p6), %v10977_v0  ;;  %401 = vst [vmem:[#allocation2 + $0x48] sm:$0xff] (!%p9403_p6), %v10977_v0 }
  0x15   : > { %402 = vst [vmem:[#allocation2 + $0x50] sm:$0xff] (!%p9403_p6), %v10977_v0  ;;  %403 = vst [vmem:[#allocation2 + $0x58] sm:$0xff] (!%p9403_p6), %v10977_v0 }
  0x16   : > { %404 = vst [vmem:[#allocation2 + $0x60] sm:$0xff] (!%p9403_p6), %v10977_v0  ;;  %405 = vst [vmem:[#allocation2 + $0x68] sm:$0xff] (!%p9403_p6), %v10977_v0 }
  0x17   : > { %406 = vst [vmem:[#allocation2 + $0x70] sm:$0xff] (!%p9403_p6), %v10977_v0  ;;  %407 = vst [vmem:[#allocation2 + $0x78] sm:$0xff] (!%p9403_p6), %v10977_v0 }
  0x18   : > { %408 = vst [vmem:[#allocation3] sm:$0xff] (!%p9403_p6), %v10977_v0  ;;  %409 = vst [vmem:[#allocation3 + $0x8] sm:$0xff] (!%p9403_p6), %v10977_v0 }
  0x19   : > { %410 = vst [vmem:[#allocation3 + $0x10] sm:$0xff] %v10977_v0  ;;  %411 = vst [vmem:[#allocation3 + $0x18] sm:$0xff] %v10977_v0 }
  0x1a   : > { %412 = vst [vmem:[#allocation3 + $0x20] sm:$0xff] %v10977_v0  ;;  %413 = vst [vmem:[#allocation3 + $0x28] sm:$0xff] %v10977_v0 }
  0x1b   : > { %414 = vst [vmem:[#allocation3 + $0x30] sm:$0xff] %v10977_v0  ;;  %415 = vst [vmem:[#allocation3 + $0x38] sm:$0xff] %v10977_v0 }
  0x1c PF: > { %v417_v1 = vld [vmem:[%s11045_s17] sm:$0xff]  ;;  %v418_v3 = vld [vmem:[%s11045_s17 + $0x8] sm:$0xff]  ;;  %p10302_p7 = scmp.ne.s32.totalorder %s11034_s10, 3 }
  0x1d   : > { %v421_v2 = vld [vmem:[%s11045_s17 + $0x20] sm:$0xff]  ;;  %v422_v5 = vld [vmem:[%s11045_s17 + $0x28] sm:$0xff] }
  0x1e   : > { %v9407_v4 = vcombine.high %v417_v1, %v421_v2  ;;  %v9406_v6 = vcombine.low %v417_v1, %v421_v2  ;;  %v425_v7 = vld [vmem:[%s11045_s17 + $0x40] sm:$0xff]  ;;  %v9409_v9 = vcombine.high %v418_v3, %v422_v5  ;;  %v9408_v10 = vcombine.low %v418_v3, %v422_v5  ;;  %v426_v12 = vld [vmem:[%s11045_s17 + $0x48] sm:$0xff] }
  0x1f   : > { %v429_v8 = vld [vmem:[%s11045_s17 + $0x60] sm:$0xff]  ;;  %v430_v13 = vld [vmem:[%s11045_s17 + $0x68] sm:$0xff] }
  0x20   : > { %v9415_v11 = vcombine.high %v425_v7, %v429_v8  ;;  %v433_v14 = vld [vmem:[%s11045_s17 + $0x80] sm:$0xff]  ;;  %1234 = vmatprep.subr.bf16.mxu0 %v9407_v4  ;;  %v9417_v15 = vcombine.high %v426_v12, %v430_v13  ;;  %v434_v17 = vld [vmem:[%s11045_s17 + $0x88] sm:$0xff]  ;;  %1275 = vmatprep.subr.bf16.mxu1 %v9409_v9  ;;  %v9414_v19 = vcombine.low %v425_v7, %v429_v8 }
  0x21   : > { %v437_v16 = vld [vmem:[%s11045_s17 + $0xa0] sm:$0xff]  ;;  %v438_v18 = vld [vmem:[%s11045_s17 + $0xa8] sm:$0xff]  ;;  %1235 = vmatpush1.bf16.msra.mxu0 %v9406_v6  ;;  %1276 = vmatpush1.bf16.msra.mxu1 %v9408_v10  ;;  %v9416_v20 = vcombine.low %v426_v12, %v430_v13 }
  0x22   : > { %1236 = vmatprep.subr.bf16.mxu0 %v9415_v11  ;;  %v9423_v21 = vcombine.high %v433_v14, %v437_v16  ;;  %1277 = vmatprep.subr.bf16.mxu1 %v9417_v15  ;;  %v9425_v22 = vcombine.high %v434_v17, %v438_v18  ;;  %v441_v23 = vld [vmem:[%s11045_s17 + $0xc0] sm:$0xff]  ;;  %v442_v25 = vld [vmem:[%s11045_s17 + $0xc8] sm:$0xff]  ;;  %v9422_v27 = vcombine.low %v433_v14, %v437_v16 }
  0x23   : > { %v445_v24 = vld [vmem:[%s11045_s17 + $0xe0] sm:$0xff]  ;;  %v446_v26 = vld [vmem:[%s11045_s17 + $0xe8] sm:$0xff]  ;;  %v9424_v28 = vcombine.low %v434_v17, %v438_v18 }
  0x24   : > { %v9431_v29 = vcombine.high %v441_v23, %v445_v24  ;;  %v9433_v30 = vcombine.high %v442_v25, %v446_v26  ;;  %v449_v31 = vld [vmem:[%s11045_s17 + $0x100] sm:$0xff]  ;;  %v450_v33 = vld [vmem:[%s11045_s17 + $0x108] sm:$0xff]  ;;  %v9430_v35 = vcombine.low %v441_v23, %v445_v24  ;;  %v9432_v36 = vcombine.low %v442_v25, %v446_v26 }
  0x25   : > { %1237 = vmatpush1.bf16.msra.mxu0 %v9414_v19  ;;  %1278 = vmatpush1.bf16.msra.mxu1 %v9416_v20  ;;  %v453_v32 = vld [vmem:[%s11045_s17 + $0x120] sm:$0xff]  ;;  %v454_v34 = vld [vmem:[%s11045_s17 + $0x128] sm:$0xff] }
  0x26   : > { %1238 = vmatprep.subr.bf16.mxu0 %v9423_v21  ;;  %1279 = vmatprep.subr.bf16.mxu1 %v9425_v22  ;;  %v9439_v37 = vcombine.high %v449_v31, %v453_v32  ;;  %v9441_v38 = vcombine.high %v450_v33, %v454_v34  ;;  %v457_v39 = vld [vmem:[%s11045_s17 + $0x140] sm:$0xff]  ;;  %v458_v41 = vld [vmem:[%s11045_s17 + $0x148] sm:$0xff]  ;;  %v9438_v43 = vcombine.low %v449_v31, %v453_v32 }
  0x27   : > { %v461_v40 = vld [vmem:[%s11045_s17 + $0x160] sm:$0xff]  ;;  %v462_v42 = vld [vmem:[%s11045_s17 + $0x168] sm:$0xff]  ;;  %v9440_v44 = vcombine.low %v450_v33, %v454_v34 }
  0x28   : > { %v9447_v45 = vcombine.high %v457_v39, %v461_v40  ;;  %v9449_v46 = vcombine.high %v458_v41, %v462_v42  ;;  %v465_v47 = vld [vmem:[%s11045_s17 + $0x180] sm:$0xff]  ;;  %v466_v49 = vld [vmem:[%s11045_s17 + $0x188] sm:$0xff]  ;;  %v9446_v51 = vcombine.low %v457_v39, %v461_v40  ;;  %v9448_v52 = vcombine.low %v458_v41, %v462_v42 }
  0x29   : > { %1239 = vmatpush1.bf16.msra.mxu0 %v9422_v27  ;;  %1280 = vmatpush1.bf16.msra.mxu1 %v9424_v28  ;;  %v469_v48 = vld [vmem:[%s11045_s17 + $0x1a0] sm:$0xff]  ;;  %v470_v50 = vld [vmem:[%s11045_s17 + $0x1a8] sm:$0xff] }
  0x2a   : > { %1240 = vmatprep.subr.bf16.mxu0 %v9431_v29  ;;  %1281 = vmatprep.subr.bf16.mxu1 %v9433_v30  ;;  %v9455_v53 = vcombine.high %v465_v47, %v469_v48  ;;  %v11094_v54 = vld [vmem:[%s12769_s0] sm:$0xff]  ;;  %v9457_v55 = vcombine.high %v466_v49, %v470_v50  ;;  %v474_v59 = vld [vmem:[%s11045_s17 + $0x1c8] sm:$0xff]  ;;  %v9454_v61 = vcombine.low %v465_v47, %v469_v48 }
  0x2b   : > { %v473_v56 = vld [vmem:[%s11045_s17 + $0x1c0] sm:$0xff]  ;;  %v11100_v58 = vcombine.high %v11094_v54, %v11094_v54  ;;  %v478_v60 = vld [vmem:[%s11045_s17 + $0x1e8] sm:$0xff]  ;;  %v9456_v62 = vcombine.low %v466_v49, %v470_v50 }
  0x2c   : > { %v477_v57 = vld [vmem:[%s11045_s17 + $0x1e0] sm:$0xff]  ;;  %v9465_v0 = vcombine.high %v474_v59, %v478_v60  ;;  %v482_v3 = vld [vmem:[%s11045_s17 + $0x208] sm:$0xff]  ;;  %v9464_v6 = vcombine.low %v474_v59, %v478_v60 }
  0x2d   : > { %1241 = vmatpush1.bf16.msra.mxu0 %v9430_v35  ;;  %1282 = vmatpush1.bf16.msra.mxu1 %v9432_v36  ;;  %v9463_v63 = vcombine.high %v473_v56, %v477_v57  ;;  %v481_v1 = vld [vmem:[%s11045_s17 + $0x200] sm:$0xff]  ;;  %v486_v4 = vld [vmem:[%s11045_s17 + $0x228] sm:$0xff]  ;;  %v9462_v5 = vcombine.low %v473_v56, %v477_v57 }
  0x2e   : > { %1242 = vmatprep.subr.bf16.mxu0 %v9439_v37  ;;  %1283 = vmatprep.subr.bf16.mxu1 %v9441_v38  ;;  %v485_v2 = vld [vmem:[%s11045_s17 + $0x220] sm:$0xff]  ;;  %v9473_v8 = vcombine.high %v482_v3, %v486_v4  ;;  %v490_v11 = vld [vmem:[%s11045_s17 + $0x248] sm:$0xff]  ;;  %v9472_v14 = vcombine.low %v482_v3, %v486_v4  ;;  %v419_v3 = vld [vmem:[%s11045_s17 + $0x10] sm:$0xff] }
  0x2f   : > { %1266 = vmatprep.mubr.bf16.mxu0 %v11100_v58  ;;  %1307 = vmatprep.mubr.bf16.mxu1 %v11100_v58  ;;  %v9471_v7 = vcombine.high %v481_v1, %v485_v2  ;;  %v489_v9 = vld [vmem:[%s11045_s17 + $0x240] sm:$0xff]  ;;  %v494_v12 = vld [vmem:[%s11045_s17 + $0x268] sm:$0xff]  ;;  %v9470_v13 = vcombine.low %v481_v1, %v485_v2  ;;  %v423_v4 = vld [vmem:[%s11045_s17 + $0x30] sm:$0xff] }
  0x30   : > { %v493_v10 = vld [vmem:[%s11045_s17 + $0x260] sm:$0xff]  ;;  %v9481_v16 = vcombine.high %v490_v11, %v494_v12  ;;  %v498_v19 = vld [vmem:[%s11045_s17 + $0x288] sm:$0xff]  ;;  %v9480_v22 = vcombine.low %v490_v11, %v494_v12  ;;  %v427_v11 = vld [vmem:[%s11045_s17 + $0x50] sm:$0xff] }
  0x31   : > { %1243 = vmatpush1.bf16.msra.mxu0 %v9438_v43  ;;  %1284 = vmatpush1.bf16.msra.mxu1 %v9440_v44  ;;  %v9479_v15 = vcombine.high %v489_v9, %v493_v10  ;;  %v497_v17 = vld [vmem:[%s11045_s17 + $0x280] sm:$0xff]  ;;  %v502_v20 = vld [vmem:[%s11045_s17 + $0x2a8] sm:$0xff]  ;;  %v9478_v21 = vcombine.low %v489_v9, %v493_v10  ;;  %v9411_v9 = vcombine.high %v419_v3, %v423_v4  ;;  %v431_v12 = vld [vmem:[%s11045_s17 + $0x70] sm:$0xff] }
  0x32   : > { %1244 = vmatprep.subr.bf16.mxu0 %v9447_v45  ;;  %1285 = vmatprep.subr.bf16.mxu1 %v9449_v46  ;;  %v501_v18 = vld [vmem:[%s11045_s17 + $0x2a0] sm:$0xff]  ;;  %v9489_v24 = vcombine.high %v498_v19, %v502_v20  ;;  %v506_v27 = vld [vmem:[%s11045_s17 + $0x2c8] sm:$0xff]  ;;  %v9488_v30 = vcombine.low %v498_v19, %v502_v20  ;;  %v435_v20 = vld [vmem:[%s11045_s17 + $0x90] sm:$0xff] }
  0x33   : > { %v9487_v23 = vcombine.high %v497_v17, %v501_v18  ;;  %v505_v25 = vld [vmem:[%s11045_s17 + $0x2c0] sm:$0xff]  ;;  %v510_v28 = vld [vmem:[%s11045_s17 + $0x2e8] sm:$0xff]  ;;  %v9486_v29 = vcombine.low %v497_v17, %v501_v18  ;;  %v9419_v18 = vcombine.high %v427_v11, %v431_v12 }
  0x34   : > { %v509_v26 = vld [vmem:[%s11045_s17 + $0x2e0] sm:$0xff]  ;;  %v9497_v32 = vcombine.high %v506_v27, %v510_v28  ;;  %v514_v35 = vld [vmem:[%s11045_s17 + $0x308] sm:$0xff]  ;;  %v9496_v38 = vcombine.low %v506_v27, %v510_v28  ;;  %v443_v27 = vld [vmem:[%s11045_s17 + $0xd0] sm:$0xff] }
  0x35   : > { %1245 = vmatpush1.bf16.msra.mxu0 %v9446_v51  ;;  %1286 = vmatpush1.bf16.msra.mxu1 %v9448_v52  ;;  %v9495_v31 = vcombine.high %v505_v25, %v509_v26  ;;  %v513_v33 = vld [vmem:[%s11045_s17 + $0x300] sm:$0xff]  ;;  %v518_v36 = vld [vmem:[%s11045_s17 + $0x328] sm:$0xff]  ;;  %v9494_v37 = vcombine.low %v505_v25, %v509_v26  ;;  %v447_v28 = vld [vmem:[%s11045_s17 + $0xf0] sm:$0xff] }
  0x36   : > { %1246 = vmatprep.subr.bf16.mxu0 %v9455_v53  ;;  %1287 = vmatprep.subr.bf16.mxu1 %v9457_v55  ;;  %v517_v34 = vld [vmem:[%s11045_s17 + $0x320] sm:$0xff]  ;;  %v9505_v40 = vcombine.high %v514_v35, %v518_v36  ;;  %v522_v43 = vld [vmem:[%s11045_s17 + $0x348] sm:$0xff]  ;;  %v9504_v46 = vcombine.low %v514_v35, %v518_v36  ;;  %v451_v35 = vld [vmem:[%s11045_s17 + $0x110] sm:$0xff] }
  0x37   : > { %v9503_v39 = vcombine.high %v513_v33, %v517_v34  ;;  %v521_v41 = vld [vmem:[%s11045_s17 + $0x340] sm:$0xff]  ;;  %v526_v44 = vld [vmem:[%s11045_s17 + $0x368] sm:$0xff]  ;;  %v9502_v45 = vcombine.low %v513_v33, %v517_v34  ;;  %v9435_v33 = vcombine.high %v443_v27, %v447_v28  ;;  %v455_v36 = vld [vmem:[%s11045_s17 + $0x130] sm:$0xff] }
  0x38   : > { %v525_v42 = vld [vmem:[%s11045_s17 + $0x360] sm:$0xff]  ;;  %v9513_v48 = vcombine.high %v522_v43, %v526_v44  ;;  %v530_v51 = vld [vmem:[%s11045_s17 + $0x388] sm:$0xff]  ;;  %v9512_v55 = vcombine.low %v522_v43, %v526_v44  ;;  %v463_v43 = vld [vmem:[%s11045_s17 + $0x170] sm:$0xff] }
  0x39   : > { %1247 = vmatpush1.bf16.msra.mxu0 %v9454_v61  ;;  %1288 = vmatpush1.bf16.msra.mxu1 %v9456_v62  ;;  %v9511_v47 = vcombine.high %v521_v41, %v525_v42  ;;  %v529_v49 = vld [vmem:[%s11045_s17 + $0x380] sm:$0xff]  ;;  %v534_v52 = vld [vmem:[%s11045_s17 + $0x3a8] sm:$0xff]  ;;  %v9510_v53 = vcombine.low %v521_v41, %v525_v42  ;;  %v459_v42 = vld [vmem:[%s11045_s17 + $0x150] sm:$0xff] }
  0x3a   : > { %1248 = vmatprep.subr.bf16.mxu0 %v9463_v63  ;;  %1289 = vmatprep.subr.bf16.mxu1 %v9465_v0  ;;  %v533_v50 = vld [vmem:[%s11045_s17 + $0x3a0] sm:$0xff]  ;;  %v9521_v57 = vcombine.high %v530_v51, %v534_v52  ;;  %v538_v61 = vld [vmem:[%s11045_s17 + $0x3c8] sm:$0xff]  ;;  %v9520_v0 = vcombine.low %v530_v51, %v534_v52  ;;  %v460_v44 = vld [vmem:[%s11045_s17 + $0x158] sm:$0xff] }
  0x3b   : > { %v9519_v56 = vcombine.high %v529_v49, %v533_v50  ;;  %v537_v59 = vld [vmem:[%s11045_s17 + $0x3c0] sm:$0xff]  ;;  %v542_v62 = vld [vmem:[%s11045_s17 + $0x3e8] sm:$0xff]  ;;  %v9518_v63 = vcombine.low %v529_v49, %v533_v50  ;;  %v467_v50 = vld [vmem:[%s11045_s17 + $0x190] sm:$0xff] }
  0x3c   : > { %v541_v60 = vld [vmem:[%s11045_s17 + $0x3e0] sm:$0xff]  ;;  %v9529_v2 = vcombine.high %v538_v61, %v542_v62  ;;  %v471_v51 = vld [vmem:[%s11045_s17 + $0x1b0] sm:$0xff]  ;;  %v468_v52 = vld [vmem:[%s11045_s17 + $0x198] sm:$0xff] }
  0x3d   : > { %1249 = vmatpush1.bf16.msra.mxu0 %v9462_v5  ;;  %1290 = vmatpush1.bf16.msra.mxu1 %v9464_v6  ;;  %v9527_v1 = vcombine.high %v537_v59, %v541_v60  ;;  %v420_v5 = vld [vmem:[%s11045_s17 + $0x18] sm:$0xff] }
  0x3e   : > { %1250 = vmatprep.subr.bf16.mxu0 %v9471_v7  ;;  %1291 = vmatprep.subr.bf16.mxu1 %v9473_v8  ;;  %v424_v6 = vld [vmem:[%s11045_s17 + $0x38] sm:$0xff]  ;;  %v9526_v7 = vcombine.low %v537_v59, %v541_v60  ;;  %v9528_v8 = vcombine.low %v538_v61, %v542_v62  ;;  %v475_v60 = vld [vmem:[%s11045_s17 + $0x1d0] sm:$0xff] }
  0x3f   : > { %v9413_v10 = vcombine.high %v420_v5, %v424_v6  ;;  %v9412_v17 = vcombine.low %v420_v5, %v424_v6  ;;  %v479_v61 = vld [vmem:[%s11045_s17 + $0x1f0] sm:$0xff]  ;;  %v476_v62 = vld [vmem:[%s11045_s17 + $0x1d8] sm:$0xff] }
  0x40   : > { %v487_v5 = vld [vmem:[%s11045_s17 + $0x230] sm:$0xff]  ;;  %v484_v6 = vld [vmem:[%s11045_s17 + $0x218] sm:$0xff] }
  0x41   : > { %1251 = vmatpush1.bf16.msra.mxu0 %v9470_v13  ;;  %1292 = vmatpush1.bf16.msra.mxu1 %v9472_v14  ;;  %v11146_v13 = vcombine.low %v11094_v54, %v11094_v54  ;;  %v428_v14 = vld [vmem:[%s11045_s17 + $0x58] sm:$0xff] }
  0x42   : > { %1252 = vmatprep.subr.bf16.mxu0 %v9479_v15  ;;  %1293 = vmatprep.subr.bf16.mxu1 %v9481_v16  ;;  %v432_v15 = vld [vmem:[%s11045_s17 + $0x78] sm:$0xff]  ;;  %v9410_v16 = vcombine.low %v419_v3, %v423_v4  ;;  %v483_v4 = vld [vmem:[%s11045_s17 + $0x210] sm:$0xff] }
  0x43   : > { %v9421_v19 = vcombine.high %v428_v14, %v432_v15  ;;  %v436_v54 = vld [vmem:[%s11045_s17 + $0x98] sm:$0xff] }
  0x45   : > { %1253 = vmatpush1.bf16.msra.mxu0 %v9478_v21  ;;  %1294 = vmatpush1.bf16.msra.mxu1 %v9480_v22  ;;  %v439_v21 = vld [vmem:[%s11045_s17 + $0xb0] sm:$0xff]  ;;  %v440_v22 = vld [vmem:[%s11045_s17 + $0xb8] sm:$0xff] }
  0x46   : > { %1254 = vmatprep.subr.bf16.mxu0 %v9487_v23  ;;  %1295 = vmatprep.subr.bf16.mxu1 %v9489_v24  ;;  %v9418_v23 = vcombine.low %v427_v11, %v431_v12  ;;  %v9420_v24 = vcombine.low %v428_v14, %v432_v15  ;;  %v9427_v25 = vcombine.high %v435_v20, %v439_v21  ;;  %v491_v12 = vld [vmem:[%s11045_s17 + $0x250] sm:$0xff]  ;;  %v492_v15 = vld [vmem:[%s11045_s17 + $0x258] sm:$0xff] }
  0x47   : > { %v9429_v26 = vcombine.high %v436_v54, %v440_v22  ;;  %v495_v14 = vld [vmem:[%s11045_s17 + $0x270] sm:$0xff] }
  0x49   : > { %1255 = vmatpush1.bf16.msra.mxu0 %v9486_v29  ;;  %1296 = vmatpush1.bf16.msra.mxu1 %v9488_v30  ;;  %v444_v29 = vld [vmem:[%s11045_s17 + $0xd8] sm:$0xff] }
  0x4a   : > { %1256 = vmatprep.subr.bf16.mxu0 %v9495_v31  ;;  %1297 = vmatprep.subr.bf16.mxu1 %v9497_v32  ;;  %v448_v30 = vld [vmem:[%s11045_s17 + $0xf8] sm:$0xff]  ;;  %v9426_v31 = vcombine.low %v435_v20, %v439_v21  ;;  %v9428_v32 = vcombine.low %v436_v54, %v440_v22  ;;  %v499_v21 = vld [vmem:[%s11045_s17 + $0x290] sm:$0xff] }
  0x4b   : > { %v9437_v34 = vcombine.high %v444_v29, %v448_v30  ;;  %v503_v54 = vld [vmem:[%s11045_s17 + $0x2b0] sm:$0xff]  ;;  %v500_v22 = vld [vmem:[%s11045_s17 + $0x298] sm:$0xff] }
  0x4d   : > { %1257 = vmatpush1.bf16.msra.mxu0 %v9494_v37  ;;  %1298 = vmatpush1.bf16.msra.mxu1 %v9496_v38  ;;  %v452_v37 = vld [vmem:[%s11045_s17 + $0x118] sm:$0xff] }
  0x4e   : > { %1258 = vmatprep.subr.bf16.mxu0 %v9503_v39  ;;  %1299 = vmatprep.subr.bf16.mxu1 %v9505_v40  ;;  %v456_v38 = vld [vmem:[%s11045_s17 + $0x138] sm:$0xff]  ;;  %v9434_v39 = vcombine.low %v443_v27, %v447_v28  ;;  %v9443_v40 = vcombine.high %v451_v35, %v455_v36  ;;  %v507_v28 = vld [vmem:[%s11045_s17 + $0x2d0] sm:$0xff] }
  0x4f   : > { %v9445_v41 = vcombine.high %v452_v37, %v456_v38 }
  0x51   : > { %1259 = vmatpush1.bf16.msra.mxu0 %v9502_v45  ;;  %1300 = vmatpush1.bf16.msra.mxu1 %v9504_v46  ;;  %v464_v45 = vld [vmem:[%s11045_s17 + $0x178] sm:$0xff]  ;;  %v9442_v46 = vcombine.low %v451_v35, %v455_v36  ;;  %v515_v36 = vld [vmem:[%s11045_s17 + $0x310] sm:$0xff] }
  0x52   : > { %1260 = vmatprep.subr.bf16.mxu0 %v9511_v47  ;;  %1301 = vmatprep.subr.bf16.mxu1 %v9513_v48  ;;  %v9444_v47 = vcombine.low %v452_v37, %v456_v38  ;;  %v9451_v48 = vcombine.high %v459_v42, %v463_v43  ;;  %v9453_v49 = vcombine.high %v460_v44, %v464_v45  ;;  %v519_v37 = vld [vmem:[%s11045_s17 + $0x330] sm:$0xff]  ;;  %v516_v38 = vld [vmem:[%s11045_s17 + $0x318] sm:$0xff] }
  0x55   : > { %1261 = vmatpush1.bf16.msra.mxu0 %v9510_v53  ;;  %1302 = vmatpush1.bf16.msra.mxu1 %v9512_v55  ;;  %v472_v53 = vld [vmem:[%s11045_s17 + $0x1b8] sm:$0xff]  ;;  %v9450_v55 = vcombine.low %v459_v42, %v463_v43  ;;  %v523_v43 = vld [vmem:[%s11045_s17 + $0x350] sm:$0xff] }
  0x56   : > { %1262 = vmatprep.subr.bf16.mxu0 %v9519_v56  ;;  %1303 = vmatprep.subr.bf16.mxu1 %v9521_v57  ;;  %v9452_v56 = vcombine.low %v460_v44, %v464_v45  ;;  %v9459_v57 = vcombine.high %v467_v50, %v471_v51  ;;  %v9461_v59 = vcombine.high %v468_v52, %v472_v53  ;;  %v527_v44 = vld [vmem:[%s11045_s17 + $0x370] sm:$0xff]  ;;  %v524_v45 = vld [vmem:[%s11045_s17 + $0x358] sm:$0xff] }
  0x59   : > { %1263 = vmatpush1.bf16.msra.mxu0 %v9518_v63  ;;  %1304 = vmatpush1.bf16.msra.mxu1 %v9520_v0  ;;  %v480_v63 = vld [vmem:[%s11045_s17 + $0x1f8] sm:$0xff]  ;;  %v9458_v0 = vcombine.low %v467_v50, %v471_v51  ;;  %v531_v51 = vld [vmem:[%s11045_s17 + $0x390] sm:$0xff] }
  0x5a   : > { %1264 = vmatprep.subr.bf16.mxu0 %v9527_v1  ;;  %1305 = vmatprep.subr.bf16.mxu1 %v9529_v2  ;;  %v9460_v1 = vcombine.low %v468_v52, %v472_v53  ;;  %v9467_v2 = vcombine.high %v475_v60, %v479_v61  ;;  %v9469_v3 = vcombine.high %v476_v62, %v480_v63  ;;  %v535_v52 = vld [vmem:[%s11045_s17 + $0x3b0] sm:$0xff]  ;;  %v532_v53 = vld [vmem:[%s11045_s17 + $0x398] sm:$0xff] }
  0x5d   : > { %1265 = vmatpush1.bf16.msra.mxu0 %v9526_v7  ;;  %1306 = vmatpush1.bf16.msra.mxu1 %v9528_v8  ;;  %v488_v7 = vld [vmem:[%s11045_s17 + $0x238] sm:$0xff]  ;;  %v9466_v8 = vcombine.low %v475_v60, %v479_v61  ;;  %v539_v61 = vld [vmem:[%s11045_s17 + $0x3d0] sm:$0xff] }
  0x5e   : > { %1316 = vmatprep.subr.bf16.mxu0 %v9411_v9  ;;  %1357 = vmatprep.subr.bf16.mxu1 %v9413_v10  ;;  %v9468_v9 = vcombine.low %v476_v62, %v480_v63  ;;  %v9475_v10 = vcombine.high %v483_v4, %v487_v5  ;;  %v9477_v11 = vcombine.high %v484_v6, %v488_v7  ;;  %v543_v62 = vld [vmem:[%s11045_s17 + $0x3f0] sm:$0xff]  ;;  %v540_v63 = vld [vmem:[%s11045_s17 + $0x3d8] sm:$0xff] }
  0x60   : > { %1267 = vmatmul.mubr.bf16.vlgmr.msra.gmra.mrb[0].mxu0 %v11146_v13  ;;  %1308 = vmatmul.mubr.bf16.vlgmr.msra.gmra.mrb[0].mxu1 %v11146_v13 }
  0x61   : > { %1317 = vmatpush1.bf16.msra.mxu0 %v9410_v16  ;;  %1358 = vmatpush1.bf16.msra.mxu1 %v9412_v17  ;;  %v496_v16 = vld [vmem:[%s11045_s17 + $0x278] sm:$0xff]  ;;  %v9474_v17 = vcombine.low %v483_v4, %v487_v5  ;;  %v1430_v5 = vld [vmem:[%s11055_s25] sm:$0xff] }
  0x62   : > { %1318 = vmatprep.subr.bf16.mxu0 %v9419_v18  ;;  %1359 = vmatprep.subr.bf16.mxu1 %v9421_v19  ;;  %v9476_v18 = vcombine.low %v484_v6, %v488_v7  ;;  %v9483_v19 = vcombine.high %v491_v12, %v495_v14  ;;  %v9485_v20 = vcombine.high %v492_v15, %v496_v16  ;;  %v1438_v6 = vld [vmem:[%s11055_s25 + $0x40] sm:$0xff] }
  0x63   : > { %1348 = vmatprep.mubr.bf16.mxu0 %v11100_v58  ;;  %1389 = vmatprep.mubr.bf16.mxu1 %v11100_v58  ;;  %v9436_v58 = vcombine.low %v444_v29, %v448_v30  ;;  %v511_v29 = vld [vmem:[%s11045_s17 + $0x2f0] sm:$0xff]  ;;  %v508_v30 = vld [vmem:[%s11045_s17 + $0x2d8] sm:$0xff]  ;;  %v1686_v7 = vld [vmem:[%s11055_s25 + $0x800] sm:$0xff] }
  0x65   : > { %1319 = vmatpush1.bf16.msra.mxu0 %v9418_v23  ;;  %1360 = vmatpush1.bf16.msra.mxu1 %v9420_v24  ;;  %v504_v23 = vld [vmem:[%s11045_s17 + $0x2b8] sm:$0xff]  ;;  %v9482_v24 = vcombine.low %v491_v12, %v495_v14  ;;  %v1446_v14 = vld [vmem:[%s11055_s25 + $0x80] sm:$0xff] }
  0x66   : > { %1320 = vmatprep.subr.bf16.mxu0 %v9427_v25  ;;  %1361 = vmatprep.subr.bf16.mxu1 %v9429_v26  ;;  %v9484_v25 = vcombine.low %v492_v15, %v496_v16  ;;  %v9491_v26 = vcombine.high %v499_v21, %v503_v54  ;;  %v9493_v27 = vcombine.high %v500_v22, %v504_v23  ;;  %v1454_v15 = vld [vmem:[%s11055_s25 + $0xc0] sm:$0xff] }
  0x67   : > { %v1702_v16 = vld [vmem:[%s11055_s25 + $0x880] sm:$0xff] }
  0x69   : > { %1321 = vmatpush1.bf16.msra.mxu0 %v9426_v31  ;;  %1362 = vmatpush1.bf16.msra.mxu1 %v9428_v32  ;;  %v512_v31 = vld [vmem:[%s11045_s17 + $0x2f8] sm:$0xff]  ;;  %v9490_v32 = vcombine.low %v499_v21, %v503_v54  ;;  %v1462_v54 = vld [vmem:[%s11055_s25 + $0x100] sm:$0xff] }
  0x6a   : > { %1322 = vmatprep.subr.bf16.mxu0 %v9435_v33  ;;  %1363 = vmatprep.subr.bf16.mxu1 %v9437_v34  ;;  %v9492_v33 = vcombine.low %v500_v22, %v504_v23  ;;  %v9499_v34 = vcombine.high %v507_v28, %v511_v29  ;;  %v9501_v35 = vcombine.high %v508_v30, %v512_v31  ;;  %v1470_v22 = vld [vmem:[%s11055_s25 + $0x140] sm:$0xff] }
  0x6b   : > { %v1718_v23 = vld [vmem:[%s11055_s25 + $0x900] sm:$0xff] }
  0x6d   : > { %1323 = vmatpush1.bf16.msra.mxu0 %v9434_v39  ;;  %1364 = vmatpush1.bf16.msra.mxu1 %v9436_v58  ;;  %v520_v39 = vld [vmem:[%s11045_s17 + $0x338] sm:$0xff]  ;;  %v9498_v58 = vcombine.low %v507_v28, %v511_v29  ;;  %v1478_v29 = vld [vmem:[%s11055_s25 + $0x180] sm:$0xff] }
  0x6e   : > { %1324 = vmatprep.subr.bf16.mxu0 %v9443_v40  ;;  %1365 = vmatprep.subr.bf16.mxu1 %v9445_v41  ;;  %v9500_v40 = vcombine.low %v508_v30, %v512_v31  ;;  %v9507_v41 = vcombine.high %v515_v36, %v519_v37  ;;  %v9509_v42 = vcombine.high %v516_v38, %v520_v39  ;;  %v1486_v30 = vld [vmem:[%s11055_s25 + $0x1c0] sm:$0xff] }
  0x6f   : > { %v1734_v31 = vld [vmem:[%s11055_s25 + $0x980] sm:$0xff] }
  0x71   : > { %1325 = vmatpush1.bf16.msra.mxu0 %v9442_v46  ;;  %1366 = vmatpush1.bf16.msra.mxu1 %v9444_v47  ;;  %v528_v46 = vld [vmem:[%s11045_s17 + $0x378] sm:$0xff]  ;;  %v9506_v47 = vcombine.low %v515_v36, %v519_v37  ;;  %v1494_v36 = vld [vmem:[%s11055_s25 + $0x200] sm:$0xff] }
  0x72   : > { %1326 = vmatprep.subr.bf16.mxu0 %v9451_v48  ;;  %1367 = vmatprep.subr.bf16.mxu1 %v9453_v49  ;;  %v9508_v48 = vcombine.low %v516_v38, %v520_v39  ;;  %v9515_v49 = vcombine.high %v523_v43, %v527_v44  ;;  %v9517_v50 = vcombine.high %v524_v45, %v528_v46  ;;  %v1502_v37 = vld [vmem:[%s11055_s25 + $0x240] sm:$0xff] }
  0x73   : > { %v1750_v38 = vld [vmem:[%s11055_s25 + $0xa00] sm:$0xff] }
  0x74   : > { %v1758_v39 = vld [vmem:[%s11055_s25 + $0xa40] sm:$0xff] }
  0x75   : > { %1327 = vmatpush1.bf16.msra.mxu0 %v9450_v55  ;;  %1368 = vmatpush1.bf16.msra.mxu1 %v9452_v56  ;;  %v536_v55 = vld [vmem:[%s11045_s17 + $0x3b8] sm:$0xff]  ;;  %v9514_v56 = vcombine.low %v523_v43, %v527_v44  ;;  %v1510_v43 = vld [vmem:[%s11055_s25 + $0x280] sm:$0xff] }
  0x76   : > { %1328 = vmatprep.subr.bf16.mxu0 %v9459_v57  ;;  %1369 = vmatprep.subr.bf16.mxu1 %v9461_v59  ;;  %v9516_v57 = vcombine.low %v524_v45, %v528_v46  ;;  %v9523_v59 = vcombine.high %v531_v51, %v535_v52  ;;  %v9525_v60 = vcombine.high %v532_v53, %v536_v55  ;;  %v1518_v44 = vld [vmem:[%s11055_s25 + $0x2c0] sm:$0xff] }
  0x77   : > { %v1766_v45 = vld [vmem:[%s11055_s25 + $0xa80] sm:$0xff] }
  0x78   : > { %v1774_v46 = vld [vmem:[%s11055_s25 + $0xac0] sm:$0xff] }
  0x79   : > { %1329 = vmatpush1.bf16.msra.mxu0 %v9458_v0  ;;  %1370 = vmatpush1.bf16.msra.mxu1 %v9460_v1  ;;  %v544_v0 = vld [vmem:[%s11045_s17 + $0x3f8] sm:$0xff]  ;;  %v9522_v1 = vcombine.low %v531_v51, %v535_v52  ;;  %v1526_v51 = vld [vmem:[%s11055_s25 + $0x300] sm:$0xff] }
  0x7a   : > { %1330 = vmatprep.subr.bf16.mxu0 %v9467_v2  ;;  %1371 = vmatprep.subr.bf16.mxu1 %v9469_v3  ;;  %v9524_v2 = vcombine.low %v532_v53, %v536_v55  ;;  %v9531_v3 = vcombine.high %v539_v61, %v543_v62  ;;  %v9533_v4 = vcombine.high %v540_v63, %v544_v0  ;;  %v1534_v52 = vld [vmem:[%s11055_s25 + $0x340] sm:$0xff] }
  0x7b   : > { %v1782_v53 = vld [vmem:[%s11055_s25 + $0xb00] sm:$0xff] }
  0x7c   : > { %v1790_v55 = vld [vmem:[%s11055_s25 + $0xb40] sm:$0xff] }
  0x7d   : > { %1331 = vmatpush1.bf16.msra.mxu0 %v9466_v8  ;;  %1372 = vmatpush1.bf16.msra.mxu1 %v9468_v9  ;;  %v1694_v8 = vld [vmem:[%s11055_s25 + $0x840] sm:$0xff]  ;;  %v9530_v9 = vcombine.low %v539_v61, %v543_v62 }
  0x7e   : > { %1332 = vmatprep.subr.bf16.mxu0 %v9475_v10  ;;  %1373 = vmatprep.subr.bf16.mxu1 %v9477_v11  ;;  %v9532_v10 = vcombine.low %v540_v63, %v544_v0  ;;  %v9535_v11 = vcombine.high %v1430_v5, %v1438_v6  ;;  %v9791_v12 = vcombine.high %v1686_v7, %v1694_v8  ;;  %v1542_v61 = vld [vmem:[%s11055_s25 + $0x380] sm:$0xff] }
  0x7f   : > { %v1550_v62 = vld [vmem:[%s11055_s25 + $0x3c0] sm:$0xff] }
  0x80   : > { %v1798_v63 = vld [vmem:[%s11055_s25 + $0xb80] sm:$0xff] }
  0x81   : > { %1333 = vmatpush1.bf16.msra.mxu0 %v9474_v17  ;;  %1374 = vmatpush1.bf16.msra.mxu1 %v9476_v18  ;;  %v1710_v17 = vld [vmem:[%s11055_s25 + $0x8c0] sm:$0xff]  ;;  %v9534_v18 = vcombine.low %v1430_v5, %v1438_v6 }
  0x82   : > { %1334 = vmatprep.subr.bf16.mxu0 %v9483_v19  ;;  %1375 = vmatprep.subr.bf16.mxu1 %v9485_v20  ;;  %v9790_v19 = vcombine.low %v1686_v7, %v1694_v8  ;;  %v9551_v20 = vcombine.high %v1446_v14, %v1454_v15  ;;  %v9807_v21 = vcombine.high %v1702_v16, %v1710_v17  ;;  %v1806_v0 = vld [vmem:[%s11055_s25 + $0xbc0] sm:$0xff] }
  0x83   : > { %v1558_v5 = vld [vmem:[%s11055_s25 + $0x400] sm:$0xff] }
  0x84   : > { %v1566_v6 = vld [vmem:[%s11055_s25 + $0x440] sm:$0xff] }
  0x85   : > { %1335 = vmatpush1.bf16.msra.mxu0 %v9482_v24  ;;  %1376 = vmatpush1.bf16.msra.mxu1 %v9484_v25  ;;  %v1726_v24 = vld [vmem:[%s11055_s25 + $0x940] sm:$0xff]  ;;  %v9550_v25 = vcombine.low %v1446_v14, %v1454_v15  ;;  %v9902_v14 = vcombine.low %v1798_v63, %v1806_v0  ;;  %v9663_v15 = vcombine.high %v1558_v5, %v1566_v6 }
  0x86   : > { %1336 = vmatprep.subr.bf16.mxu0 %v9491_v26  ;;  %1377 = vmatprep.subr.bf16.mxu1 %v9493_v27  ;;  %v9806_v26 = vcombine.low %v1702_v16, %v1710_v17  ;;  %v9567_v27 = vcombine.high %v1462_v54, %v1470_v22  ;;  %v9823_v28 = vcombine.high %v1718_v23, %v1726_v24  ;;  %v1814_v7 = vld [vmem:[%s11055_s25 + $0xc00] sm:$0xff]  ;;  %v11258_v16 = vld [vmem:[%s11055_s25 + $0x848] sm:$0xff] }
  0x87   : > { %v1822_v8 = vld [vmem:[%s11055_s25 + $0xc40] sm:$0xff] }
  0x88   : > { %v9919_v17 = vcombine.high %v1814_v7, %v1822_v8 }
  0x89   : > { %1337 = vmatpush1.bf16.msra.mxu0 %v9490_v32  ;;  %1378 = vmatpush1.bf16.msra.mxu1 %v9492_v33  ;;  %v1742_v32 = vld [vmem:[%s11055_s25 + $0x9c0] sm:$0xff]  ;;  %v9566_v33 = vcombine.low %v1462_v54, %v1470_v22 }
  0x8a   : > { %1338 = vmatprep.subr.bf16.mxu0 %v9499_v34  ;;  %1379 = vmatprep.subr.bf16.mxu1 %v9501_v35  ;;  %v9583_v34 = vcombine.high %v1478_v29, %v1486_v30  ;;  %v9839_v35 = vcombine.high %v1734_v31, %v1742_v32  ;;  %v1830_v54 = vld [vmem:[%s11055_s25 + $0xc80] sm:$0xff] }
  0x8b   : > { %v1838_v22 = vld [vmem:[%s11055_s25 + $0xcc0] sm:$0xff] }
  0x8d   : > { %1339 = vmatpush1.bf16.msra.mxu0 %v9498_v58  ;;  %1380 = vmatpush1.bf16.msra.mxu1 %v9500_v40  ;;  %v9582_v58 = vcombine.low %v1478_v29, %v1486_v30  ;;  %v9838_v40 = vcombine.low %v1734_v31, %v1742_v32  ;;  %v1846_v29 = vld [vmem:[%s11055_s25 + $0xd00] sm:$0xff]  ;;  %v9934_v32 = vcombine.low %v1830_v54, %v1838_v22 }
  0x8e   : > { %1340 = vmatprep.subr.bf16.mxu0 %v9507_v41  ;;  %1381 = vmatprep.subr.bf16.mxu1 %v9509_v42  ;;  %v9599_v41 = vcombine.high %v1494_v36, %v1502_v37  ;;  %v9855_v42 = vcombine.high %v1750_v38, %v1758_v39  ;;  %v1854_v30 = vld [vmem:[%s11055_s25 + $0xd40] sm:$0xff] }
  0x91   : > { %1341 = vmatpush1.bf16.msra.mxu0 %v9506_v47  ;;  %1382 = vmatpush1.bf16.msra.mxu1 %v9508_v48  ;;  %v9598_v47 = vcombine.low %v1494_v36, %v1502_v37  ;;  %v9854_v48 = vcombine.low %v1750_v38, %v1758_v39  ;;  %v1862_v36 = vld [vmem:[%s11055_s25 + $0xd80] sm:$0xff]  ;;  %v9950_v39 = vcombine.low %v1846_v29, %v1854_v30 }
  0x92   : > { %1342 = vmatprep.subr.bf16.mxu0 %v9515_v49  ;;  %1383 = vmatprep.subr.bf16.mxu1 %v9517_v50  ;;  %v9615_v49 = vcombine.high %v1510_v43, %v1518_v44  ;;  %v9871_v50 = vcombine.high %v1766_v45, %v1774_v46  ;;  %v1870_v37 = vld [vmem:[%s11055_s25 + $0xdc0] sm:$0xff] }
  0x95   : > { %1343 = vmatpush1.bf16.msra.mxu0 %v9514_v56  ;;  %1384 = vmatpush1.bf16.msra.mxu1 %v9516_v57  ;;  %v9614_v56 = vcombine.low %v1510_v43, %v1518_v44  ;;  %v9870_v57 = vcombine.low %v1766_v45, %v1774_v46  ;;  %v1878_v43 = vld [vmem:[%s11055_s25 + $0xe00] sm:$0xff]  ;;  %v9966_v46 = vcombine.low %v1862_v36, %v1870_v37 }
  0x96   : > { %1344 = vmatprep.subr.bf16.mxu0 %v9523_v59  ;;  %1385 = vmatprep.subr.bf16.mxu1 %v9525_v60  ;;  %v9631_v59 = vcombine.high %v1526_v51, %v1534_v52  ;;  %v9887_v60 = vcombine.high %v1782_v53, %v1790_v55  ;;  %v1886_v44 = vld [vmem:[%s11055_s25 + $0xe40] sm:$0xff] }
  0x99   : > { %1345 = vmatpush1.bf16.msra.mxu0 %v9522_v1  ;;  %1386 = vmatpush1.bf16.msra.mxu1 %v9524_v2  ;;  %v9630_v1 = vcombine.low %v1526_v51, %v1534_v52  ;;  %v9886_v2 = vcombine.low %v1782_v53, %v1790_v55  ;;  %v1894_v51 = vld [vmem:[%s11055_s25 + $0xe80] sm:$0xff]  ;;  %v9982_v55 = vcombine.low %v1878_v43, %v1886_v44 }
  0x9a   : > { %1346 = vmatprep.subr.bf16.mxu0 %v9531_v3  ;;  %1387 = vmatprep.subr.bf16.mxu1 %v9533_v4  ;;  %v9647_v3 = vcombine.high %v1542_v61, %v1550_v62  ;;  %v9903_v4 = vcombine.high %v1798_v63, %v1806_v0  ;;  %v1902_v52 = vld [vmem:[%s11055_s25 + $0xec0] sm:$0xff] }
  0x9b   : > { %v9998_v0 = vcombine.low %v1894_v51, %v1902_v52 }
  0x9d   : > { %1347 = vmatpush1.bf16.msra.mxu0 %v9530_v9  ;;  %1388 = vmatpush1.bf16.msra.mxu1 %v9532_v10  ;;  %v9646_v9 = vcombine.low %v1542_v61, %v1550_v62  ;;  %v11249_v10 = vld [vmem:[%s11055_s25 + $0x8] sm:$0xff]  ;;  %v1910_v61 = vld [vmem:[%s11055_s25 + $0xf00] sm:$0xff] }
  0x9e   : > { %4502 = vmatprep.subr.bf16.mxu0 %v9535_v11  ;;  %4543 = vmatprep.subr.bf16.mxu1 %v9791_v12  ;;  %v11252_v11 = vld [vmem:[%s11055_s25 + $0x48] sm:$0xff]  ;;  %v1918_v62 = vld [vmem:[%s11055_s25 + $0xf40] sm:$0xff] }
  0x9f   : > { %v11255_v12 = vld [vmem:[%s11055_s25 + $0x808] sm:$0xff] }
  0xa0   : > { %1349 = vmatmul.mubr.bf16.vlgmr.msra.gmra.mrb[4].mxu0 %v11146_v13  ;;  %1390 = vmatmul.mubr.bf16.vlgmr.msra.gmra.mrb[4].mxu1 %v11146_v13  ;;  %v9822_v13 = vcombine.low %v1718_v23, %v1726_v24  ;;  %v9662_v23 = vcombine.low %v1558_v5, %v1566_v6  ;;  %v9918_v24 = vcombine.low %v1814_v7, %v1822_v8  ;;  %v1926_v5 = vld [vmem:[%s11055_s25 + $0xf80] sm:$0xff] }
  0xa1   : > { %4503 = vmatpush1.bf16.msra.mxu0 %v9534_v18  ;;  %4544 = vmatpush1.bf16.msra.mxu1 %v9790_v19  ;;  %v1574_v18 = vld [vmem:[%s11055_s25 + $0x480] sm:$0xff]  ;;  %v10014_v8 = vcombine.low %v1910_v61, %v1918_v62 }
  0xa2   : > { %4504 = vmatprep.subr.bf16.mxu0 %v9551_v20  ;;  %4545 = vmatprep.subr.bf16.mxu1 %v9807_v21  ;;  %v1582_v19 = vld [vmem:[%s11055_s25 + $0x4c0] sm:$0xff]  ;;  %v9536_v20 = vcombine.low %v11249_v10, %v11252_v11  ;;  %v9792_v21 = vcombine.low %v11255_v12, %v11258_v16 }
  0xa3   : > { %v9678_v31 = vcombine.low %v1574_v18, %v1582_v19  ;;  %v1934_v6 = vld [vmem:[%s11055_s25 + $0xfc0] sm:$0xff] }
  0xa5   : > { %4505 = vmatpush1.bf16.msra.mxu0 %v9550_v25  ;;  %4546 = vmatpush1.bf16.msra.mxu1 %v9806_v26  ;;  %v9679_v25 = vcombine.high %v1574_v18, %v1582_v19  ;;  %v9935_v26 = vcombine.high %v1830_v54, %v1838_v22  ;;  %v9537_v18 = vcombine.high %v11249_v10, %v11252_v11  ;;  %v547_v54 = vlaneseq  ;;  %v1487_v10 = vld [vmem:[%s11055_s25 + $0x1c8] sm:$0xff] }
  0xa6   : > { %4506 = vmatprep.subr.bf16.mxu0 %v9567_v27  ;;  %4547 = vmatprep.subr.bf16.mxu1 %v9823_v28  ;;  %v1590_v27 = vld [vmem:[%s11055_s25 + $0x500] sm:$0xff]  ;;  %v9793_v19 = vcombine.high %v11255_v12, %v11258_v16  ;;  %v1735_v11 = vld [vmem:[%s11055_s25 + $0x988] sm:$0xff] }
  0xa7   : > { %v1598_v28 = vld [vmem:[%s11055_s25 + $0x540] sm:$0xff]  ;;  %v11296_v22 = vshrl.u32 %v547_v54, 7  ;;  %v1775_v54 = vld [vmem:[%s11055_s25 + $0xac8] sm:$0xff] }
  0xa8   : > { %v9694_v38 = vcombine.low %v1590_v27, %v1598_v28 }
  0xa9   : > { %4507 = vmatpush1.bf16.msra.mxu0 %v9566_v33  ;;  %4548 = vmatpush1.bf16.msra.mxu1 %v9822_v13  ;;  %v9695_v33 = vcombine.high %v1590_v27, %v1598_v28  ;;  %v9951_v13 = vcombine.high %v1846_v29, %v1854_v30  ;;  %v11309_v27 = vsub.s32 3, %v11296_v22 }
  0xaa   : > { %4508 = vmatprep.subr.bf16.mxu0 %v9583_v34  ;;  %4549 = vmatprep.subr.bf16.mxu1 %v9839_v35  ;;  %v1606_v34 = vld [vmem:[%s11055_s25 + $0x580] sm:$0xff] }
  0xab   : > { %v1614_v35 = vld [vmem:[%s11055_s25 + $0x5c0] sm:$0xff] }
  0xac   : > { %v9710_v45 = vcombine.low %v1606_v34, %v1614_v35 }
  0xad   : > { %4509 = vmatpush1.bf16.msra.mxu0 %v9582_v58  ;;  %4550 = vmatpush1.bf16.msra.mxu1 %v9838_v40  ;;  %v9711_v58 = vcombine.high %v1606_v34, %v1614_v35  ;;  %v9967_v40 = vcombine.high %v1862_v36, %v1870_v37 }
  0xae   : > { %4510 = vmatprep.subr.bf16.mxu0 %v9599_v41  ;;  %4551 = vmatprep.subr.bf16.mxu1 %v9855_v42  ;;  %v1622_v41 = vld [vmem:[%s11055_s25 + $0x600] sm:$0xff] }
  0xaf   : > { %v1630_v42 = vld [vmem:[%s11055_s25 + $0x640] sm:$0xff] }
  0xb0   : > { %v9726_v53 = vcombine.low %v1622_v41, %v1630_v42 }
  0xb1   : > { %4511 = vmatpush1.bf16.msra.mxu0 %v9598_v47  ;;  %4552 = vmatpush1.bf16.msra.mxu1 %v9854_v48  ;;  %v9727_v47 = vcombine.high %v1622_v41, %v1630_v42  ;;  %v9983_v48 = vcombine.high %v1878_v43, %v1886_v44 }
  0xb2   : > { %4512 = vmatprep.subr.bf16.mxu0 %v9615_v49  ;;  %4553 = vmatprep.subr.bf16.mxu1 %v9871_v50  ;;  %v1638_v49 = vld [vmem:[%s11055_s25 + $0x680] sm:$0xff] }
  0xb3   : > { %v1646_v50 = vld [vmem:[%s11055_s25 + $0x6c0] sm:$0xff] }
  0xb4   : > { %v9742_v63 = vcombine.low %v1638_v49, %v1646_v50 }
  0xb5   : > { %4513 = vmatpush1.bf16.msra.mxu0 %v9614_v56  ;;  %4554 = vmatpush1.bf16.msra.mxu1 %v9870_v57  ;;  %v9743_v56 = vcombine.high %v1638_v49, %v1646_v50  ;;  %v9999_v57 = vcombine.high %v1894_v51, %v1902_v52  ;;  %v1703_v49 = vld [vmem:[%s11055_s25 + $0x888] sm:$0xff] }
  0xb6   : > { %4514 = vmatprep.subr.bf16.mxu0 %v9631_v59  ;;  %4555 = vmatprep.subr.bf16.mxu1 %v9887_v60  ;;  %v1654_v59 = vld [vmem:[%s11055_s25 + $0x700] sm:$0xff]  ;;  %v1711_v50 = vld [vmem:[%s11055_s25 + $0x8c8] sm:$0xff] }
  0xb7   : > { %v1662_v60 = vld [vmem:[%s11055_s25 + $0x740] sm:$0xff] }
  0xb8   : > { %v9758_v7 = vcombine.low %v1654_v59, %v1662_v60 }
  0xb9   : > { %4515 = vmatpush1.bf16.msra.mxu0 %v9630_v1  ;;  %4556 = vmatpush1.bf16.msra.mxu1 %v9886_v2  ;;  %v9759_v1 = vcombine.high %v1654_v59, %v1662_v60  ;;  %v10015_v2 = vcombine.high %v1910_v61, %v1918_v62  ;;  %v9809_v59 = vcombine.high %v1703_v49, %v1711_v50  ;;  %v1719_v60 = vld [vmem:[%s11055_s25 + $0x908] sm:$0xff] }
  0xba   : > { %4516 = vmatprep.subr.bf16.mxu0 %v9647_v3  ;;  %4557 = vmatprep.subr.bf16.mxu1 %v9903_v4  ;;  %v1670_v3 = vld [vmem:[%s11055_s25 + $0x780] sm:$0xff]  ;;  %v1727_v61 = vld [vmem:[%s11055_s25 + $0x948] sm:$0xff] }
  0xbb   : > { %v1678_v4 = vld [vmem:[%s11055_s25 + $0x7c0] sm:$0xff]  ;;  %v9824_v16 = vcombine.low %v1719_v60, %v1727_v61 }
  0xbd   : > { %4517 = vmatpush1.bf16.msra.mxu0 %v9646_v9  ;;  %4558 = vmatpush1.bf16.msra.mxu1 %v9902_v14  ;;  %v9775_v9 = vcombine.high %v1670_v3, %v1678_v4  ;;  %v10031_v14 = vcombine.high %v1926_v5, %v1934_v6 }
  0xbe   : > { %4518 = vmatprep.subr.bf16.mxu0 %v9663_v15  ;;  %4559 = vmatprep.subr.bf16.mxu1 %v9919_v17  ;;  %v9774_v15 = vcombine.low %v1670_v3, %v1678_v4  ;;  %v10030_v17 = vcombine.low %v1926_v5, %v1934_v6  ;;  %v1495_v4 = vld [vmem:[%s11055_s25 + $0x208] sm:$0xff] }
  0xbf   : > { %v1503_v5 = vld [vmem:[%s11055_s25 + $0x248] sm:$0xff] }
  0xc0   : > { %v1751_v6 = vld [vmem:[%s11055_s25 + $0xa08] sm:$0xff] }
  0xc1   : > { %4519 = vmatpush1.bf16.msra.mxu0 %v9662_v23  ;;  %4560 = vmatpush1.bf16.msra.mxu1 %v9918_v24  ;;  %v11299_v23 = vsub.s32 0, %v11296_v22  ;;  %v545_v24 = vld [vmem:[%s11050_s20] sm:$0xff] }
  0xc2   : > { %4520 = vmatprep.subr.bf16.mxu0 %v9679_v25  ;;  %4561 = vmatprep.subr.bf16.mxu1 %v9935_v26  ;;  %v11303_v25 = vsub.s32 2, %v11296_v22  ;;  %v11306_v26 = vsub.s32 1, %v11296_v22 }
  0xc3   : > { %v550_v28 = vrot.slane %v545_v24, %v11299_v23 }
  0xc4   : > { %v558_v29 = vrot.slane %v545_v24, %v11303_v25  ;;  %v554_v30 = vrot.slane %v545_v24, %v11306_v26 }
  0xc5   : > { %4521 = vmatpush1.bf16.msra.mxu0 %v9678_v31  ;;  %4562 = vmatpush1.bf16.msra.mxu1 %v9934_v32  ;;  %v562_v31 = vrot.slane %v545_v24, %v11309_v27  ;;  %v9600_v24 = vcombine.low %v1495_v4, %v1503_v5 }
  0xc6   : > { %4522 = vmatprep.subr.bf16.mxu0 %v9695_v33  ;;  %4563 = vmatprep.subr.bf16.mxu1 %v9951_v13 }
  0xc9   : > { %4523 = vmatpush1.bf16.msra.mxu0 %v9694_v38  ;;  %4564 = vmatpush1.bf16.msra.mxu1 %v9950_v39 }
  0xca   : > { %4524 = vmatprep.subr.bf16.mxu0 %v9711_v58  ;;  %4565 = vmatprep.subr.bf16.mxu1 %v9967_v40 }
  0xcd   : > { %4525 = vmatpush1.bf16.msra.mxu0 %v9710_v45  ;;  %4566 = vmatpush1.bf16.msra.mxu1 %v9966_v46  ;;  %v1447_v46 = vld [vmem:[%s11055_s25 + $0x88] sm:$0xff] }
  0xce   : > { %4526 = vmatprep.subr.bf16.mxu0 %v9727_v47  ;;  %4567 = vmatprep.subr.bf16.mxu1 %v9983_v48  ;;  %v1455_v47 = vld [vmem:[%s11055_s25 + $0xc8] sm:$0xff] }
  0xcf   : > { %v9552_v62 = vcombine.low %v1447_v46, %v1455_v47 }
  0xd1   : > { %4527 = vmatpush1.bf16.msra.mxu0 %v9726_v53  ;;  %4568 = vmatpush1.bf16.msra.mxu1 %v9982_v55  ;;  %v9553_v55 = vcombine.high %v1447_v46, %v1455_v47  ;;  %v1567_v46 = vld [vmem:[%s11055_s25 + $0x448] sm:$0xff] }
  0xd2   : > { %4528 = vmatprep.subr.bf16.mxu0 %v9743_v56  ;;  %4569 = vmatprep.subr.bf16.mxu1 %v9999_v57  ;;  %v1463_v56 = vld [vmem:[%s11055_s25 + $0x108] sm:$0xff] }
  0xd3   : > { %v1471_v57 = vld [vmem:[%s11055_s25 + $0x148] sm:$0xff] }
  0xd4   : > { %v9568_v12 = vcombine.low %v1463_v56, %v1471_v57  ;;  %v1815_v47 = vld [vmem:[%s11055_s25 + $0xc08] sm:$0xff] }
  0xd5   : > { %4529 = vmatpush1.bf16.msra.mxu0 %v9742_v63  ;;  %4570 = vmatpush1.bf16.msra.mxu1 %v9998_v0  ;;  %v9808_v63 = vcombine.low %v1703_v49, %v1711_v50  ;;  %v9569_v0 = vcombine.high %v1463_v56, %v1471_v57  ;;  %v1823_v49 = vld [vmem:[%s11055_s25 + $0xc48] sm:$0xff] }
  0xd6   : > { %4530 = vmatprep.subr.bf16.mxu0 %v9759_v1  ;;  %4571 = vmatprep.subr.bf16.mxu1 %v10015_v2  ;;  %v9825_v1 = vcombine.high %v1719_v60, %v1727_v61  ;;  %v1479_v2 = vld [vmem:[%s11055_s25 + $0x188] sm:$0xff]  ;;  %v9921_v57 = vcombine.high %v1815_v47, %v1823_v49 }
  0xd7   : > { %v1583_v60 = vld [vmem:[%s11055_s25 + $0x4c8] sm:$0xff] }
  0xd8   : > { %v1831_v61 = vld [vmem:[%s11055_s25 + $0xc88] sm:$0xff] }
  0xd9   : > { %4531 = vmatpush1.bf16.msra.mxu0 %v9758_v7  ;;  %4572 = vmatpush1.bf16.msra.mxu1 %v10014_v8  ;;  %v1759_v7 = vld [vmem:[%s11055_s25 + $0xa48] sm:$0xff]  ;;  %v9584_v8 = vcombine.low %v1479_v2, %v1487_v10 }
  0xda   : > { %4532 = vmatprep.subr.bf16.mxu0 %v9775_v9  ;;  %4573 = vmatprep.subr.bf16.mxu1 %v10031_v14  ;;  %v9601_v14 = vcombine.high %v1495_v4, %v1503_v5  ;;  %v1607_v5 = vld [vmem:[%s11055_s25 + $0x588] sm:$0xff] }
  0xdd   : > { %4533 = vmatpush1.bf16.msra.mxu0 %v9774_v15  ;;  %4574 = vmatpush1.bf16.msra.mxu1 %v10030_v17  ;;  %v9857_v15 = vcombine.high %v1751_v6, %v1759_v7  ;;  %v1511_v17 = vld [vmem:[%s11055_s25 + $0x288] sm:$0xff] }
  0xde   : > { %4584 = vmatprep.subr.bf16.mxu0 %v9537_v18  ;;  %4625 = vmatprep.subr.bf16.mxu1 %v9793_v19  ;;  %v1519_v18 = vld [vmem:[%s11055_s25 + $0x2c8] sm:$0xff] }
  0xdf   : > { %v1767_v19 = vld [vmem:[%s11055_s25 + $0xa88] sm:$0xff] }
 0x133   : > { %v1268_v32 = vpop.f32.mrb[0].mxu0  ;;  %v1309_v13 = vpop.f32.mrb[0].mxu1 }
 0x134   : > { %v1269_v33 = vadd.f32 %v1268_v32, %v550_v28  ;;  %v1270_v34 = vpop.f32.mrb[1].mxu0  ;;  %v1310_v35 = vadd.f32 %v1309_v13, %v558_v29  ;;  %v1311_v37 = vpop.f32.mrb[1].mxu1  ;;  %v9856_v28 = vcombine.low %v1751_v6, %v1759_v7  ;;  %v9617_v29 = vcombine.high %v1511_v17, %v1519_v18  ;;  %v1535_v32 = vld [vmem:[%s11055_s25 + $0x348] sm:$0xff] }
 0x135   : > { %v1271_v36 = vadd.f32 %v1270_v34, %v554_v30  ;;  %v1272_v38 = vpop.f32.mrb[2].mxu0  ;;  %v1312_v58 = vadd.f32 %v1311_v37, %v562_v31  ;;  %v1313_v40 = vpop.f32.mrb[2].mxu1  ;;  %v9873_v30 = vcombine.high %v1767_v19, %v1775_v54  ;;  %v1527_v31 = vld [vmem:[%s11055_s25 + $0x308] sm:$0xff]  ;;  %v9616_v34 = vcombine.low %v1511_v17, %v1519_v18 }
 0x136   : > { %v1398_v39 = vmax.f32 %v1269_v33, 0.0  ;;  %v1273_v41 = vpop.f32.mrb[3].mxu0  ;;  %v1400_v42 = vmax.f32 %v1310_v35, 0.0  ;;  %v1314_v44 = vpop.f32.mrb[3].mxu1  ;;  %v1783_v33 = vld [vmem:[%s11055_s25 + $0xb08] sm:$0xff]  ;;  %v9872_v35 = vcombine.low %v1767_v19, %v1775_v54 }
 0x137   : > { %v1399_v43 = vmax.f32 %v1271_v36, 0.0  ;;  %v1401_v45 = vmax.f32 %v1312_v58, 0.0  ;;  %v1791_v13 = vld [vmem:[%s11055_s25 + $0xb48] sm:$0xff]  ;;  %v9633_v36 = vcombine.high %v1527_v31, %v1535_v32  ;;  %v9632_v41 = vcombine.low %v1527_v31, %v1535_v32 }
 0x138   : > { %v11321_v51 = vpack.c.bf16 %v1398_v39, %v1398_v39  ;;  %v11325_v53 = vpack.c.bf16 %v1400_v42, %v1400_v42  ;;  %v9889_v37 = vcombine.high %v1783_v33, %v1791_v13  ;;  %v1543_v38 = vld [vmem:[%s11055_s25 + $0x388] sm:$0xff]  ;;  %v9888_v42 = vcombine.low %v1783_v33, %v1791_v13 }
 0x139   : > { %v11317_v48 = vpack.c.bf16 %v1399_v43, %v1399_v43  ;;  %v11323_v52 = vpack.c.bf16 %v1401_v45, %v1401_v45  ;;  %v1551_v39 = vld [vmem:[%s11055_s25 + $0x3c8] sm:$0xff] }
 0x13a   : > { %v1799_v58 = vld [vmem:[%s11055_s25 + $0xb88] sm:$0xff]  ;;  %v9649_v43 = vcombine.high %v1543_v38, %v1551_v39  ;;  %v9648_v50 = vcombine.low %v1543_v38, %v1551_v39 }
 0x13b   : > { %4534 = vmatprep.mubr.bf16.mxu0 %v11317_v48  ;;  %4575 = vmatprep.mubr.bf16.mxu1 %v11323_v52  ;;  %v1807_v40 = vld [vmem:[%s11055_s25 + $0xbc8] sm:$0xff] }
 0x13c   : > { %4535 = vmatmul.mubr.bf16.vlgmr.msra.gmra.mrb[8].mxu0 %v11321_v51  ;;  %4576 = vmatmul.mubr.bf16.vlgmr.msra.gmra.mrb[8].mxu1 %v11325_v53  ;;  %v9905_v44 = vcombine.high %v1799_v58, %v1807_v40  ;;  %v1559_v45 = vld [vmem:[%s11055_s25 + $0x408] sm:$0xff] }
 0x13d   : > { %4585 = vmatpush1.bf16.msra.mxu0 %v9536_v20  ;;  %4626 = vmatpush1.bf16.msra.mxu1 %v9792_v21  ;;  %v1743_v20 = vld [vmem:[%s11055_s25 + $0x9c8] sm:$0xff]  ;;  %v9585_v21 = vcombine.high %v1479_v2, %v1487_v10  ;;  %v9665_v56 = vcombine.high %v1559_v45, %v1567_v46 }
 0x13e   : > { %4616 = vmatprep.mubr.bf16.mxu0 %v11317_v48  ;;  %4657 = vmatprep.mubr.bf16.mxu1 %v11323_v52  ;;  %v9841_v3 = vcombine.high %v1735_v11, %v1743_v20  ;;  %v9840_v9 = vcombine.low %v1735_v11, %v1743_v20  ;;  %v1591_v10 = vld [vmem:[%s11055_s25 + $0x508] sm:$0xff] }
 0x13f   : > { %4586 = vmatprep.subr.bf16.mxu0 %v9553_v55  ;;  %4627 = vmatprep.subr.bf16.mxu1 %v9809_v59  ;;  %v9904_v55 = vcombine.low %v1799_v58, %v1807_v40  ;;  %v1575_v59 = vld [vmem:[%s11055_s25 + $0x488] sm:$0xff] }
 0x140   : > { %v1599_v11 = vld [vmem:[%s11055_s25 + $0x548] sm:$0xff] }
 0x141   : > { %4587 = vmatpush1.bf16.msra.mxu0 %v9552_v62  ;;  %4628 = vmatpush1.bf16.msra.mxu1 %v9808_v63  ;;  %v1839_v62 = vld [vmem:[%s11055_s25 + $0xcc8] sm:$0xff]  ;;  %v9664_v63 = vcombine.low %v1559_v45, %v1567_v46 }
 0x142   : > { %4588 = vmatprep.subr.bf16.mxu0 %v9569_v0  ;;  %4629 = vmatprep.subr.bf16.mxu1 %v9825_v1  ;;  %v9920_v0 = vcombine.low %v1815_v47, %v1823_v49  ;;  %v9681_v1 = vcombine.high %v1575_v59, %v1583_v60  ;;  %v9937_v2 = vcombine.high %v1831_v61, %v1839_v62  ;;  %v1847_v20 = vld [vmem:[%s11055_s25 + $0xd08] sm:$0xff] }
 0x143   : > { %v1615_v6 = vld [vmem:[%s11055_s25 + $0x5c8] sm:$0xff] }
 0x144   : > { %v1863_v7 = vld [vmem:[%s11055_s25 + $0xd88] sm:$0xff] }
 0x145   : > { %4589 = vmatpush1.bf16.msra.mxu0 %v9568_v12  ;;  %4630 = vmatpush1.bf16.msra.mxu1 %v9824_v16  ;;  %v1855_v12 = vld [vmem:[%s11055_s25 + $0xd48] sm:$0xff]  ;;  %v9680_v16 = vcombine.low %v1575_v59, %v1583_v60  ;;  %v1432_v60 = vld [vmem:[%s11055_s25 + $0x10] sm:$0xff] }
 0x146   : > { %4590 = vmatprep.subr.bf16.mxu0 %v9585_v21  ;;  %4631 = vmatprep.subr.bf16.mxu1 %v9841_v3  ;;  %v9936_v21 = vcombine.low %v1831_v61, %v1839_v62  ;;  %v9697_v3 = vcombine.high %v1591_v10, %v1599_v11  ;;  %v9953_v4 = vcombine.high %v1847_v20, %v1855_v12  ;;  %v1623_v18 = vld [vmem:[%s11055_s25 + $0x608] sm:$0xff]  ;;  %v1440_v61 = vld [vmem:[%s11055_s25 + $0x50] sm:$0xff] }
 0x147   : > { %v1631_v19 = vld [vmem:[%s11055_s25 + $0x648] sm:$0xff] }
 0x148   : > { %v1879_v54 = vld [vmem:[%s11055_s25 + $0xe08] sm:$0xff] }
 0x149   : > { %4591 = vmatpush1.bf16.msra.mxu0 %v9584_v8  ;;  %4632 = vmatpush1.bf16.msra.mxu1 %v9840_v9  ;;  %v1871_v8 = vld [vmem:[%s11055_s25 + $0xdc8] sm:$0xff]  ;;  %v9696_v9 = vcombine.low %v1591_v10, %v1599_v11 }
 0x14a   : > { %4592 = vmatprep.subr.bf16.mxu0 %v9601_v14  ;;  %4633 = vmatprep.subr.bf16.mxu1 %v9857_v15  ;;  %v9952_v14 = vcombine.low %v1847_v20, %v1855_v12  ;;  %v9713_v15 = vcombine.high %v1607_v5, %v1615_v6  ;;  %v9969_v17 = vcombine.high %v1863_v7, %v1871_v8  ;;  %v1639_v32 = vld [vmem:[%s11055_s25 + $0x688] sm:$0xff] }
 0x14b   : > { %v1647_v33 = vld [vmem:[%s11055_s25 + $0x6c8] sm:$0xff] }
 0x14c   : > { %v1895_v13 = vld [vmem:[%s11055_s25 + $0xe88] sm:$0xff] }
 0x14d   : > { %4593 = vmatpush1.bf16.msra.mxu0 %v9600_v24  ;;  %4634 = vmatpush1.bf16.msra.mxu1 %v9856_v28  ;;  %v1887_v24 = vld [vmem:[%s11055_s25 + $0xe48] sm:$0xff]  ;;  %v9712_v28 = vcombine.low %v1607_v5, %v1615_v6  ;;  %v1448_v6 = vld [vmem:[%s11055_s25 + $0x90] sm:$0xff] }
 0x14e   : > { %4594 = vmatprep.subr.bf16.mxu0 %v9617_v29  ;;  %4635 = vmatprep.subr.bf16.mxu1 %v9873_v30  ;;  %v9968_v29 = vcombine.low %v1863_v7, %v1871_v8  ;;  %v9729_v30 = vcombine.high %v1623_v18, %v1631_v19  ;;  %v9985_v31 = vcombine.high %v1879_v54, %v1887_v24  ;;  %v1655_v39 = vld [vmem:[%s11055_s25 + $0x708] sm:$0xff]  ;;  %v1456_v7 = vld [vmem:[%s11055_s25 + $0xd0] sm:$0xff] }
 0x14f   : > { %v1663_v58 = vld [vmem:[%s11055_s25 + $0x748] sm:$0xff]  ;;  %v9538_v8 = vcombine.low %v1432_v60, %v1440_v61 }
 0x150   : > { %v1911_v40 = vld [vmem:[%s11055_s25 + $0xf08] sm:$0xff] }
 0x151   : > { %4595 = vmatpush1.bf16.msra.mxu0 %v9616_v34  ;;  %4636 = vmatpush1.bf16.msra.mxu1 %v9872_v35  ;;  %v1903_v34 = vld [vmem:[%s11055_s25 + $0xec8] sm:$0xff]  ;;  %v9728_v35 = vcombine.low %v1623_v18, %v1631_v19  ;;  %v1464_v18 = vld [vmem:[%s11055_s25 + $0x110] sm:$0xff] }
 0x152   : > { %4596 = vmatprep.subr.bf16.mxu0 %v9633_v36  ;;  %4637 = vmatprep.subr.bf16.mxu1 %v9889_v37  ;;  %v9984_v36 = vcombine.low %v1879_v54, %v1887_v24  ;;  %v9745_v37 = vcombine.high %v1639_v32, %v1647_v33  ;;  %v10001_v38 = vcombine.high %v1895_v13, %v1903_v34  ;;  %v1671_v46 = vld [vmem:[%s11055_s25 + $0x788] sm:$0xff]  ;;  %v1472_v19 = vld [vmem:[%s11055_s25 + $0x150] sm:$0xff] }
 0x153   : > { %v1679_v47 = vld [vmem:[%s11055_s25 + $0x7c8] sm:$0xff]  ;;  %v1720_v24 = vld [vmem:[%s11055_s25 + $0x910] sm:$0xff] }
 0x154   : > { %v1927_v49 = vld [vmem:[%s11055_s25 + $0xf88] sm:$0xff]  ;;  %v9776_v10 = vcombine.low %v1671_v46, %v1679_v47 }
 0x155   : > { %4597 = vmatpush1.bf16.msra.mxu0 %v9632_v41  ;;  %4638 = vmatpush1.bf16.msra.mxu1 %v9888_v42  ;;  %v1919_v41 = vld [vmem:[%s11055_s25 + $0xf48] sm:$0xff]  ;;  %v9744_v42 = vcombine.low %v1639_v32, %v1647_v33  ;;  %v1480_v33 = vld [vmem:[%s11055_s25 + $0x190] sm:$0xff] }
 0x156   : > { %4598 = vmatprep.subr.bf16.mxu0 %v9649_v43  ;;  %4639 = vmatprep.subr.bf16.mxu1 %v9905_v44  ;;  %v10000_v43 = vcombine.low %v1895_v13, %v1903_v34  ;;  %v9761_v44 = vcombine.high %v1655_v39, %v1663_v58  ;;  %v10017_v45 = vcombine.high %v1911_v40, %v1919_v41  ;;  %v1488_v13 = vld [vmem:[%s11055_s25 + $0x1d0] sm:$0xff] }
 0x157   : > { %v1736_v34 = vld [vmem:[%s11055_s25 + $0x990] sm:$0xff] }
 0x159   : > { %4599 = vmatpush1.bf16.msra.mxu0 %v9648_v50  ;;  %4640 = vmatpush1.bf16.msra.mxu1 %v9904_v55  ;;  %v1935_v50 = vld [vmem:[%s11055_s25 + $0xfc8] sm:$0xff]  ;;  %v9760_v55 = vcombine.low %v1655_v39, %v1663_v58  ;;  %v1496_v58 = vld [vmem:[%s11055_s25 + $0x210] sm:$0xff] }
 0x15a   : > { %4600 = vmatprep.subr.bf16.mxu0 %v9665_v56  ;;  %4641 = vmatprep.subr.bf16.mxu1 %v9921_v57  ;;  %v10016_v56 = vcombine.low %v1911_v40, %v1919_v41  ;;  %v9777_v57 = vcombine.high %v1671_v46, %v1679_v47  ;;  %v10033_v59 = vcombine.high %v1927_v49, %v1935_v50  ;;  %v1504_v40 = vld [vmem:[%s11055_s25 + $0x250] sm:$0xff] }
 0x15b   : > { %v10032_v12 = vcombine.low %v1927_v49, %v1935_v50  ;;  %v1752_v41 = vld [vmem:[%s11055_s25 + $0xa10] sm:$0xff] }
 0x15c   : > { %v1512_v47 = vld [vmem:[%s11055_s25 + $0x290] sm:$0xff] }
 0x15d   : > { %4601 = vmatpush1.bf16.msra.mxu0 %v9664_v63  ;;  %4642 = vmatpush1.bf16.msra.mxu1 %v9920_v0  ;;  %v1688_v63 = vld [vmem:[%s11055_s25 + $0x810] sm:$0xff] }
 0x15e   : > { %4602 = vmatprep.subr.bf16.mxu0 %v9681_v1  ;;  %4643 = vmatprep.subr.bf16.mxu1 %v9937_v2  ;;  %v1696_v0 = vld [vmem:[%s11055_s25 + $0x850] sm:$0xff] }
 0x15f   : > { %v1520_v49 = vld [vmem:[%s11055_s25 + $0x2d0] sm:$0xff] }
 0x160   : > { %v1768_v50 = vld [vmem:[%s11055_s25 + $0xa90] sm:$0xff] }
 0x161   : > { %4603 = vmatpush1.bf16.msra.mxu0 %v9680_v16  ;;  %4644 = vmatpush1.bf16.msra.mxu1 %v9936_v21  ;;  %v9539_v16 = vcombine.high %v1432_v60, %v1440_v61  ;;  %v1528_v61 = vld [vmem:[%s11055_s25 + $0x310] sm:$0xff] }
 0x162   : > { %4604 = vmatprep.subr.bf16.mxu0 %v9697_v3  ;;  %4645 = vmatprep.subr.bf16.mxu1 %v9953_v4  ;;  %v9795_v4 = vcombine.high %v1688_v63, %v1696_v0 }
 0x165   : > { %4605 = vmatpush1.bf16.msra.mxu0 %v9696_v9  ;;  %4646 = vmatpush1.bf16.msra.mxu1 %v9952_v14  ;;  %v1704_v9 = vld [vmem:[%s11055_s25 + $0x890] sm:$0xff] }
 0x166   : > { %4606 = vmatprep.subr.bf16.mxu0 %v9713_v15  ;;  %4647 = vmatprep.subr.bf16.mxu1 %v9969_v17  ;;  %v1712_v14 = vld [vmem:[%s11055_s25 + $0x8d0] sm:$0xff]  ;;  %v9794_v15 = vcombine.low %v1688_v63, %v1696_v0  ;;  %v9555_v17 = vcombine.high %v1448_v6, %v1456_v7 }
 0x167   : > { %v9811_v54 = vcombine.high %v1704_v9, %v1712_v14  ;;  %v1536_v63 = vld [vmem:[%s11055_s25 + $0x350] sm:$0xff] }
 0x168   : > { %v1784_v0 = vld [vmem:[%s11055_s25 + $0xb10] sm:$0xff] }
 0x169   : > { %4607 = vmatpush1.bf16.msra.mxu0 %v9712_v28  ;;  %4648 = vmatpush1.bf16.msra.mxu1 %v9968_v29  ;;  %v1728_v28 = vld [vmem:[%s11055_s25 + $0x950] sm:$0xff]  ;;  %v9554_v29 = vcombine.low %v1448_v6, %v1456_v7  ;;  %v9634_v7 = vcombine.low %v1528_v61, %v1536_v63 }
 0x16a   : > { %4608 = vmatprep.subr.bf16.mxu0 %v9729_v30  ;;  %4649 = vmatprep.subr.bf16.mxu1 %v9985_v31  ;;  %v9810_v30 = vcombine.low %v1704_v9, %v1712_v14  ;;  %v9571_v31 = vcombine.high %v1464_v18, %v1472_v19  ;;  %v9827_v32 = vcombine.high %v1720_v24, %v1728_v28  ;;  %v1808_v6 = vld [vmem:[%s11055_s25 + $0xbd0] sm:$0xff] }
 0x16d   : > { %4609 = vmatpush1.bf16.msra.mxu0 %v9728_v35  ;;  %4650 = vmatpush1.bf16.msra.mxu1 %v9984_v36  ;;  %v1744_v35 = vld [vmem:[%s11055_s25 + $0x9d0] sm:$0xff]  ;;  %v9570_v36 = vcombine.low %v1464_v18, %v1472_v19 }
 0x16e   : > { %4610 = vmatprep.subr.bf16.mxu0 %v9745_v37  ;;  %4651 = vmatprep.subr.bf16.mxu1 %v10001_v38  ;;  %v9826_v37 = vcombine.low %v1720_v24, %v1728_v28  ;;  %v9587_v38 = vcombine.high %v1480_v33, %v1488_v13  ;;  %v9843_v39 = vcombine.high %v1736_v34, %v1744_v35  ;;  %v1816_v18 = vld [vmem:[%s11055_s25 + $0xc10] sm:$0xff] }
 0x16f   : > { %v1824_v19 = vld [vmem:[%s11055_s25 + $0xc50] sm:$0xff] }
 0x171   : > { %4611 = vmatpush1.bf16.msra.mxu0 %v9744_v42  ;;  %4652 = vmatpush1.bf16.msra.mxu1 %v10000_v43  ;;  %v1760_v42 = vld [vmem:[%s11055_s25 + $0xa50] sm:$0xff]  ;;  %v9586_v43 = vcombine.low %v1480_v33, %v1488_v13 }
 0x172   : > { %4612 = vmatprep.subr.bf16.mxu0 %v9761_v44  ;;  %4653 = vmatprep.subr.bf16.mxu1 %v10017_v45  ;;  %v9842_v44 = vcombine.low %v1736_v34, %v1744_v35  ;;  %v9603_v45 = vcombine.high %v1496_v58, %v1504_v40  ;;  %v9859_v46 = vcombine.high %v1752_v41, %v1760_v42  ;;  %v1840_v33 = vld [vmem:[%s11055_s25 + $0xcd0] sm:$0xff] }
 0x173   : > { %v11397_v62 = vpop.f32.mrb[4].mxu0  ;;  %v11401_v1 = vpop.f32.mrb[4].mxu1  ;;  %v9922_v34 = vcombine.low %v1816_v18, %v1824_v19 }
 0x174   : > { %v11403_v2 = vpop.f32.mrb[5].mxu0  ;;  %v11405_v11 = vpop.f32.mrb[5].mxu1 }
 0x175   : > { %4613 = vmatpush1.bf16.msra.mxu0 %v9760_v55  ;;  %v1354_v20 = vpop.f32.mrb[6].mxu0  ;;  %4654 = vmatpush1.bf16.msra.mxu1 %v10016_v56  ;;  %v1395_v21 = vpop.f32.mrb[6].mxu1  ;;  %v1776_v55 = vld [vmem:[%s11055_s25 + $0xad0] sm:$0xff]  ;;  %v9602_v56 = vcombine.low %v1496_v58, %v1504_v40 }
 0x176   : > { %4614 = vmatprep.subr.bf16.mxu0 %v9777_v57  ;;  %v1355_v3 = vpop.f32.mrb[7].mxu0  ;;  %4655 = vmatprep.subr.bf16.mxu1 %v10033_v59  ;;  %v1396_v5 = vpop.f32.mrb[7].mxu1  ;;  %v9858_v57 = vcombine.low %v1752_v41, %v1760_v42  ;;  %v9619_v59 = vcombine.high %v1512_v47, %v1520_v49  ;;  %v9875_v60 = vcombine.high %v1768_v50, %v1776_v55  ;;  %v1856_v58 = vld [vmem:[%s11055_s25 + $0xd50] sm:$0xff] }
 0x177   : > { %v9618_v20 = vcombine.low %v1512_v47, %v1520_v49  ;;  %v1544_v3 = vld [vmem:[%s11055_s25 + $0x390] sm:$0xff] }
 0x178   : > { %v1800_v5 = vld [vmem:[%s11055_s25 + $0xb90] sm:$0xff] }
 0x179   : > { %4615 = vmatpush1.bf16.msra.mxu0 %v9776_v10  ;;  %4656 = vmatpush1.bf16.msra.mxu1 %v10032_v12  ;;  %v1792_v10 = vld [vmem:[%s11055_s25 + $0xb50] sm:$0xff]  ;;  %v9874_v12 = vcombine.low %v1768_v50, %v1776_v55  ;;  %v9907_v14 = vcombine.high %v1800_v5, %v1808_v6  ;;  %v9906_v24 = vcombine.low %v1800_v5, %v1808_v6 }
 0x17a   : > { %4666 = vmatprep.subr.bf16.mxu0 %v9539_v16  ;;  %4707 = vmatprep.subr.bf16.mxu1 %v9795_v4  ;;  %v9635_v16 = vcombine.high %v1528_v61, %v1536_v63  ;;  %v9891_v21 = vcombine.high %v1784_v0, %v1792_v10  ;;  %v1552_v4 = vld [vmem:[%s11055_s25 + $0x3d0] sm:$0xff] }
 0x17b   : > { %v9651_v9 = vcombine.high %v1544_v3, %v1552_v4  ;;  %v1872_v47 = vld [vmem:[%s11055_s25 + $0xdd0] sm:$0xff] }
 0x17c   : > { %4617 = vmatmul.mubr.bf16.vlgmr.msra.gmra.mrb[12].mxu0 %v11321_v51  ;;  %4658 = vmatmul.mubr.bf16.vlgmr.msra.gmra.mrb[12].mxu1 %v11325_v53  ;;  %v1888_v61 = vld [vmem:[%s11055_s25 + $0xe50] sm:$0xff] }
 0x17d   : > { %4667 = vmatpush1.bf16.msra.mxu0 %v9538_v8  ;;  %4698 = vmatprep.mubr.bf16.mxu0 %v11317_v48  ;;  %v9890_v8 = vcombine.low %v1784_v0, %v1792_v10 }
 0x17e   : > { %4708 = vmatpush1.bf16.msra.mxu1 %v9794_v15  ;;  %4739 = vmatprep.mubr.bf16.mxu1 %v11323_v52  ;;  %v1560_v15 = vld [vmem:[%s11055_s25 + $0x410] sm:$0xff] }
 0x17f   : > { %4668 = vmatprep.subr.bf16.mxu0 %v9555_v17  ;;  %4709 = vmatprep.subr.bf16.mxu1 %v9811_v54  ;;  %v1568_v17 = vld [vmem:[%s11055_s25 + $0x450] sm:$0xff]  ;;  %v9650_v54 = vcombine.low %v1544_v3, %v1552_v4 }
 0x180   : > { %v9667_v28 = vcombine.high %v1560_v15, %v1568_v17  ;;  %v9666_v13 = vcombine.low %v1560_v15, %v1568_v17  ;;  %v1904_v3 = vld [vmem:[%s11055_s25 + $0xed0] sm:$0xff] }
 0x181   : > { %4669 = vmatpush1.bf16.msra.mxu0 %v9554_v29  ;;  %v9923_v29 = vcombine.high %v1816_v18, %v1824_v19  ;;  %v1920_v15 = vld [vmem:[%s11055_s25 + $0xf50] sm:$0xff] }
 0x182   : > { %4710 = vmatpush1.bf16.msra.mxu1 %v9810_v30  ;;  %4670 = vmatprep.subr.bf16.mxu0 %v9571_v31  ;;  %v1576_v30 = vld [vmem:[%s11055_s25 + $0x490] sm:$0xff] }
 0x183   : > { %4711 = vmatprep.subr.bf16.mxu1 %v9827_v32  ;;  %v1584_v31 = vld [vmem:[%s11055_s25 + $0x4d0] sm:$0xff] }
 0x184   : > { %v1832_v32 = vld [vmem:[%s11055_s25 + $0xc90] sm:$0xff]  ;;  %v9683_v35 = vcombine.high %v1576_v30, %v1584_v31  ;;  %v9682_v40 = vcombine.low %v1576_v30, %v1584_v31 }
 0x185   : > { %4671 = vmatpush1.bf16.msra.mxu0 %v9570_v36  ;;  %v9939_v36 = vcombine.high %v1832_v32, %v1840_v33  ;;  %v9938_v41 = vcombine.low %v1832_v32, %v1840_v33  ;;  %v1936_v30 = vld [vmem:[%s11055_s25 + $0xfd0] sm:$0xff] }
 0x186   : > { %4712 = vmatpush1.bf16.msra.mxu1 %v9826_v37  ;;  %4672 = vmatprep.subr.bf16.mxu0 %v9587_v38  ;;  %v1592_v37 = vld [vmem:[%s11055_s25 + $0x510] sm:$0xff] }
 0x187   : > { %4713 = vmatprep.subr.bf16.mxu1 %v9843_v39  ;;  %v1600_v38 = vld [vmem:[%s11055_s25 + $0x550] sm:$0xff] }
 0x188   : > { %v1848_v39 = vld [vmem:[%s11055_s25 + $0xd10] sm:$0xff]  ;;  %v9699_v42 = vcombine.high %v1592_v37, %v1600_v38  ;;  %v9698_v49 = vcombine.low %v1592_v37, %v1600_v38  ;;  %v1697_v37 = vld [vmem:[%s11055_s25 + $0x858] sm:$0xff] }
 0x189   : > { %4673 = vmatpush1.bf16.msra.mxu0 %v9586_v43  ;;  %v9955_v43 = vcombine.high %v1848_v39, %v1856_v58  ;;  %v9954_v50 = vcombine.low %v1848_v39, %v1856_v58 }
 0x18a   : > { %4714 = vmatpush1.bf16.msra.mxu1 %v9842_v44  ;;  %4674 = vmatprep.subr.bf16.mxu0 %v9603_v45  ;;  %v1608_v44 = vld [vmem:[%s11055_s25 + $0x590] sm:$0xff] }
 0x18b   : > { %4715 = vmatprep.subr.bf16.mxu1 %v9859_v46  ;;  %v1616_v45 = vld [vmem:[%s11055_s25 + $0x5d0] sm:$0xff] }
 0x18c   : > { %v1864_v46 = vld [vmem:[%s11055_s25 + $0xd90] sm:$0xff]  ;;  %v9715_v55 = vcombine.high %v1608_v44, %v1616_v45  ;;  %v9714_v63 = vcombine.low %v1608_v44, %v1616_v45  ;;  %v1705_v44 = vld [vmem:[%s11055_s25 + $0x898] sm:$0xff] }
 0x18d   : > { %4675 = vmatpush1.bf16.msra.mxu0 %v9602_v56  ;;  %v9971_v56 = vcombine.high %v1864_v46, %v1872_v47  ;;  %v9970_v0 = vcombine.low %v1864_v46, %v1872_v47  ;;  %v1713_v45 = vld [vmem:[%s11055_s25 + $0x8d8] sm:$0xff] }
 0x18e   : > { %4716 = vmatpush1.bf16.msra.mxu1 %v9858_v57  ;;  %4676 = vmatprep.subr.bf16.mxu0 %v9619_v59  ;;  %v1624_v57 = vld [vmem:[%s11055_s25 + $0x610] sm:$0xff] }
 0x18f   : > { %4717 = vmatprep.subr.bf16.mxu1 %v9875_v60  ;;  %v1632_v59 = vld [vmem:[%s11055_s25 + $0x650] sm:$0xff] }
 0x190   : > { %v1880_v60 = vld [vmem:[%s11055_s25 + $0xe10] sm:$0xff]  ;;  %v9731_v10 = vcombine.high %v1624_v57, %v1632_v59  ;;  %v9730_v4 = vcombine.low %v1624_v57, %v1632_v59  ;;  %v1729_v57 = vld [vmem:[%s11055_s25 + $0x958] sm:$0xff] }
 0x191   : > { %4677 = vmatpush1.bf16.msra.mxu0 %v9618_v20  ;;  %v9987_v20 = vcombine.high %v1880_v60, %v1888_v61  ;;  %v9986_v5 = vcombine.low %v1880_v60, %v1888_v61  ;;  %v9812_v60 = vcombine.low %v1705_v44, %v1713_v45 }
 0x192   : > { %4718 = vmatpush1.bf16.msra.mxu1 %v9874_v12  ;;  %4678 = vmatprep.subr.bf16.mxu0 %v9635_v16  ;;  %v1640_v12 = vld [vmem:[%s11055_s25 + $0x690] sm:$0xff] }
 0x193   : > { %4719 = vmatprep.subr.bf16.mxu1 %v9891_v21  ;;  %v1648_v16 = vld [vmem:[%s11055_s25 + $0x6d0] sm:$0xff] }
 0x194   : > { %v1896_v21 = vld [vmem:[%s11055_s25 + $0xe90] sm:$0xff]  ;;  %v9747_v6 = vcombine.high %v1640_v12, %v1648_v16  ;;  %v9746_v17 = vcombine.low %v1640_v12, %v1648_v16  ;;  %v1745_v12 = vld [vmem:[%s11055_s25 + $0x9d8] sm:$0xff] }
 0x195   : > { %4679 = vmatpush1.bf16.msra.mxu0 %v9634_v7  ;;  %v10003_v7 = vcombine.high %v1896_v21, %v1904_v3  ;;  %v10002_v18 = vcombine.low %v1896_v21, %v1904_v3 }
 0x196   : > { %4720 = vmatpush1.bf16.msra.mxu1 %v9890_v8  ;;  %4680 = vmatprep.subr.bf16.mxu0 %v9651_v9  ;;  %v1656_v8 = vld [vmem:[%s11055_s25 + $0x710] sm:$0xff] }
 0x197   : > { %4721 = vmatprep.subr.bf16.mxu1 %v9907_v14  ;;  %v1664_v9 = vld [vmem:[%s11055_s25 + $0x750] sm:$0xff] }
 0x198   : > { %v1912_v14 = vld [vmem:[%s11055_s25 + $0xf10] sm:$0xff]  ;;  %v9763_v19 = vcombine.high %v1656_v8, %v1664_v9  ;;  %v9762_v31 = vcombine.low %v1656_v8, %v1664_v9  ;;  %v1761_v8 = vld [vmem:[%s11055_s25 + $0xa58] sm:$0xff] }
 0x199   : > { %4681 = vmatpush1.bf16.msra.mxu0 %v9650_v54  ;;  %v10019_v54 = vcombine.high %v1912_v14, %v1920_v15  ;;  %v10018_v32 = vcombine.low %v1912_v14, %v1920_v15 }
 0x19a   : > { %4722 = vmatpush1.bf16.msra.mxu1 %v9906_v24  ;;  %4682 = vmatprep.subr.bf16.mxu0 %v9667_v28  ;;  %v1672_v24 = vld [vmem:[%s11055_s25 + $0x790] sm:$0xff] }
 0x19b   : > { %4723 = vmatprep.subr.bf16.mxu1 %v9923_v29  ;;  %v1680_v28 = vld [vmem:[%s11055_s25 + $0x7d0] sm:$0xff] }
 0x19c   : > { %v1928_v29 = vld [vmem:[%s11055_s25 + $0xf90] sm:$0xff]  ;;  %v9779_v33 = vcombine.high %v1672_v24, %v1680_v28  ;;  %v9778_v38 = vcombine.low %v1672_v24, %v1680_v28  ;;  %v1777_v24 = vld [vmem:[%s11055_s25 + $0xad8] sm:$0xff] }
 0x19d   : > { %4683 = vmatpush1.bf16.msra.mxu0 %v9666_v13  ;;  %v10035_v13 = vcombine.high %v1928_v29, %v1936_v30  ;;  %v10034_v39 = vcombine.low %v1928_v29, %v1936_v30 }
 0x19e   : > { %4724 = vmatpush1.bf16.msra.mxu1 %v9922_v34  ;;  %4684 = vmatprep.subr.bf16.mxu0 %v9683_v35  ;;  %v1433_v34 = vld [vmem:[%s11055_s25 + $0x18] sm:$0xff] }
 0x19f   : > { %4725 = vmatprep.subr.bf16.mxu1 %v9939_v36  ;;  %v1441_v35 = vld [vmem:[%s11055_s25 + $0x58] sm:$0xff] }
 0x1a0   : > { %v1689_v36 = vld [vmem:[%s11055_s25 + $0x818] sm:$0xff]  ;;  %v9541_v58 = vcombine.high %v1433_v34, %v1441_v35 }
 0x1a1   : > { %4685 = vmatpush1.bf16.msra.mxu0 %v9682_v40  ;;  %v9797_v40 = vcombine.high %v1689_v36, %v1697_v37  ;;  %v9796_v46 = vcombine.low %v1689_v36, %v1697_v37 }
 0x1a2   : > { %4726 = vmatpush1.bf16.msra.mxu1 %v9938_v41  ;;  %4686 = vmatprep.subr.bf16.mxu0 %v9699_v42  ;;  %v1449_v41 = vld [vmem:[%s11055_s25 + $0x98] sm:$0xff] }
 0x1a3   : > { %4727 = vmatprep.subr.bf16.mxu1 %v9955_v43  ;;  %v1457_v42 = vld [vmem:[%s11055_s25 + $0xd8] sm:$0xff]  ;;  %v9540_v43 = vcombine.low %v1433_v34, %v1441_v35 }
 0x1a4   : > { %v9557_v47 = vcombine.high %v1449_v41, %v1457_v42  ;;  %v9556_v59 = vcombine.low %v1449_v41, %v1457_v42  ;;  %v1793_v34 = vld [vmem:[%s11055_s25 + $0xb58] sm:$0xff] }
 0x1a5   : > { %4687 = vmatpush1.bf16.msra.mxu0 %v9698_v49  ;;  %v1465_v49 = vld [vmem:[%s11055_s25 + $0x118] sm:$0xff] }
 0x1a6   : > { %4728 = vmatpush1.bf16.msra.mxu1 %v9954_v50  ;;  %4688 = vmatprep.subr.bf16.mxu0 %v9715_v55  ;;  %v1473_v50 = vld [vmem:[%s11055_s25 + $0x158] sm:$0xff]  ;;  %v9813_v55 = vcombine.high %v1705_v44, %v1713_v45 }
 0x1a7   : > { %4729 = vmatprep.subr.bf16.mxu1 %v9971_v56  ;;  %v1721_v56 = vld [vmem:[%s11055_s25 + $0x918] sm:$0xff]  ;;  %v9573_v61 = vcombine.high %v1465_v49, %v1473_v50  ;;  %v9572_v16 = vcombine.low %v1465_v49, %v1473_v50 }
 0x1a8   : > { %v9828_v21 = vcombine.low %v1721_v56, %v1729_v57  ;;  %v1809_v41 = vld [vmem:[%s11055_s25 + $0xbd8] sm:$0xff] }
 0x1a9   : > { %4689 = vmatpush1.bf16.msra.mxu0 %v9714_v63  ;;  %v9829_v63 = vcombine.high %v1721_v56, %v1729_v57  ;;  %v1817_v49 = vld [vmem:[%s11055_s25 + $0xc18] sm:$0xff] }
 0x1aa   : > { %4730 = vmatpush1.bf16.msra.mxu1 %v9970_v0  ;;  %4690 = vmatprep.subr.bf16.mxu0 %v9731_v10  ;;  %v1481_v0 = vld [vmem:[%s11055_s25 + $0x198] sm:$0xff] }
 0x1ab   : > { %4731 = vmatprep.subr.bf16.mxu1 %v9987_v20  ;;  %v1489_v10 = vld [vmem:[%s11055_s25 + $0x1d8] sm:$0xff] }
 0x1ac   : > { %v1737_v20 = vld [vmem:[%s11055_s25 + $0x998] sm:$0xff]  ;;  %v9589_v3 = vcombine.high %v1481_v0, %v1489_v10  ;;  %v9588_v9 = vcombine.low %v1481_v0, %v1489_v10 }
 0x1ad   : > { %4691 = vmatpush1.bf16.msra.mxu0 %v9730_v4  ;;  %v9845_v4 = vcombine.high %v1737_v20, %v1745_v12  ;;  %v9844_v14 = vcombine.low %v1737_v20, %v1745_v12  ;;  %v1825_v50 = vld [vmem:[%s11055_s25 + $0xc58] sm:$0xff] }
 0x1ae   : > { %4732 = vmatpush1.bf16.msra.mxu1 %v9986_v5  ;;  %4692 = vmatprep.subr.bf16.mxu0 %v9747_v6  ;;  %v1497_v5 = vld [vmem:[%s11055_s25 + $0x218] sm:$0xff]  ;;  %v9924_v20 = vcombine.low %v1817_v49, %v1825_v50 }
 0x1af   : > { %4733 = vmatprep.subr.bf16.mxu1 %v10003_v7  ;;  %v1505_v6 = vld [vmem:[%s11055_s25 + $0x258] sm:$0xff] }
 0x1b0   : > { %v1753_v7 = vld [vmem:[%s11055_s25 + $0xa18] sm:$0xff]  ;;  %v9605_v15 = vcombine.high %v1497_v5, %v1505_v6  ;;  %v9604_v28 = vcombine.low %v1497_v5, %v1505_v6 }
 0x1b1   : > { %4693 = vmatpush1.bf16.msra.mxu0 %v9746_v17  ;;  %v9861_v17 = vcombine.high %v1753_v7, %v1761_v8  ;;  %v9860_v29 = vcombine.low %v1753_v7, %v1761_v8  ;;  %v1841_v0 = vld [vmem:[%s11055_s25 + $0xcd8] sm:$0xff] }
 0x1b2   : > { %4734 = vmatpush1.bf16.msra.mxu1 %v10002_v18  ;;  %4694 = vmatprep.subr.bf16.mxu0 %v9763_v19  ;;  %v1513_v18 = vld [vmem:[%s11055_s25 + $0x298] sm:$0xff] }
 0x1b3   : > { %4735 = vmatprep.subr.bf16.mxu1 %v10019_v54  ;;  %v1521_v19 = vld [vmem:[%s11055_s25 + $0x2d8] sm:$0xff] }
 0x1b4   : > { %v1769_v54 = vld [vmem:[%s11055_s25 + $0xa98] sm:$0xff]  ;;  %v9621_v30 = vcombine.high %v1513_v18, %v1521_v19  ;;  %v9620_v35 = vcombine.low %v1513_v18, %v1521_v19 }
 0x1b5   : > { %4695 = vmatpush1.bf16.msra.mxu0 %v9762_v31  ;;  %v9877_v31 = vcombine.high %v1769_v54, %v1777_v24  ;;  %v9876_v36 = vcombine.low %v1769_v54, %v1777_v24  ;;  %v1857_v5 = vld [vmem:[%s11055_s25 + $0xd58] sm:$0xff] }
 0x1b6   : > { %4736 = vmatpush1.bf16.msra.mxu1 %v10018_v32  ;;  %4696 = vmatprep.subr.bf16.mxu0 %v9779_v33  ;;  %v1529_v32 = vld [vmem:[%s11055_s25 + $0x318] sm:$0xff] }
 0x1b7   : > { %4737 = vmatprep.subr.bf16.mxu1 %v10035_v13  ;;  %v1537_v33 = vld [vmem:[%s11055_s25 + $0x358] sm:$0xff] }
 0x1b8   : > { %v1785_v13 = vld [vmem:[%s11055_s25 + $0xb18] sm:$0xff]  ;;  %v9637_v37 = vcombine.high %v1529_v32, %v1537_v33  ;;  %v9636_v42 = vcombine.low %v1529_v32, %v1537_v33 }
 0x1b9   : > { %4697 = vmatpush1.bf16.msra.mxu0 %v9778_v38  ;;  %v9893_v38 = vcombine.high %v1785_v13, %v1793_v34  ;;  %v1873_v18 = vld [vmem:[%s11055_s25 + $0xdd8] sm:$0xff] }
 0x1ba   : > { %4738 = vmatpush1.bf16.msra.mxu1 %v10034_v39  ;;  %4748 = vmatprep.subr.bf16.mxu0 %v9541_v58  ;;  %v1545_v39 = vld [vmem:[%s11055_s25 + $0x398] sm:$0xff] }
 0x1bb   : > { %4789 = vmatprep.subr.bf16.mxu1 %v9797_v40  ;;  %v1553_v58 = vld [vmem:[%s11055_s25 + $0x3d8] sm:$0xff] }
 0x1bc   : > { %4699 = vmatmul.mubr.bf16.vlgmr.msra.gmra.mrb[16].mxu0 %v11321_v51  ;;  %v1801_v40 = vld [vmem:[%s11055_s25 + $0xb98] sm:$0xff]  ;;  %v9653_v44 = vcombine.high %v1545_v39, %v1553_v58 }
 0x1bd   : > { %4740 = vmatmul.mubr.bf16.vlgmr.msra.gmra.mrb[16].mxu1 %v11325_v53  ;;  %4749 = vmatpush1.bf16.msra.mxu0 %v9540_v43  ;;  %v9892_v43 = vcombine.low %v1785_v13, %v1793_v34  ;;  %v9909_v45 = vcombine.high %v1801_v40, %v1809_v41  ;;  %v9908_v56 = vcombine.low %v1801_v40, %v1809_v41  ;;  %v1889_v32 = vld [vmem:[%s11055_s25 + $0xe58] sm:$0xff] }
 0x1be   : > { %4780 = vmatprep.mubr.bf16.mxu0 %v11317_v48  ;;  %4790 = vmatpush1.bf16.msra.mxu1 %v9796_v46  ;;  %v1561_v46 = vld [vmem:[%s11055_s25 + $0x418] sm:$0xff] }
 0x1bf   : > { %4821 = vmatprep.mubr.bf16.mxu1 %v11323_v52  ;;  %4750 = vmatprep.subr.bf16.mxu0 %v9557_v47  ;;  %v1569_v47 = vld [vmem:[%s11055_s25 + $0x458] sm:$0xff] }
 0x1c0   : > { %4791 = vmatprep.subr.bf16.mxu1 %v9813_v55  ;;  %v9652_v55 = vcombine.low %v1545_v39, %v1553_v58  ;;  %v9669_v57 = vcombine.high %v1561_v46, %v1569_v47  ;;  %v9668_v10 = vcombine.low %v1561_v46, %v1569_v47  ;;  %v1905_v39 = vld [vmem:[%s11055_s25 + $0xed8] sm:$0xff] }
 0x1c1   : > { %4751 = vmatpush1.bf16.msra.mxu0 %v9556_v59  ;;  %v9925_v59 = vcombine.high %v1817_v49, %v1825_v50  ;;  %v1921_v46 = vld [vmem:[%s11055_s25 + $0xf58] sm:$0xff] }
 0x1c2   : > { %4792 = vmatpush1.bf16.msra.mxu1 %v9812_v60  ;;  %4752 = vmatprep.subr.bf16.mxu0 %v9573_v61  ;;  %v1577_v60 = vld [vmem:[%s11055_s25 + $0x498] sm:$0xff] }
 0x1c3   : > { %4793 = vmatprep.subr.bf16.mxu1 %v9829_v63  ;;  %v1585_v61 = vld [vmem:[%s11055_s25 + $0x4d8] sm:$0xff] }
 0x1c4   : > { %v1833_v63 = vld [vmem:[%s11055_s25 + $0xc98] sm:$0xff]  ;;  %v9685_v12 = vcombine.high %v1577_v60, %v1585_v61  ;;  %v9684_v6 = vcombine.low %v1577_v60, %v1585_v61 }
 0x1c5   : > { %4753 = vmatpush1.bf16.msra.mxu0 %v9572_v16  ;;  %v9941_v16 = vcombine.high %v1833_v63, %v1841_v0  ;;  %v9940_v7 = vcombine.low %v1833_v63, %v1841_v0  ;;  %v1937_v60 = vld [vmem:[%s11055_s25 + $0xfd8] sm:$0xff] }
 0x1c6   : > { %4794 = vmatpush1.bf16.msra.mxu1 %v9828_v21  ;;  %4754 = vmatprep.subr.bf16.mxu0 %v9589_v3  ;;  %v1593_v21 = vld [vmem:[%s11055_s25 + $0x518] sm:$0xff] }
 0x1c7   : > { %4795 = vmatprep.subr.bf16.mxu1 %v9845_v4  ;;  %v1601_v3 = vld [vmem:[%s11055_s25 + $0x558] sm:$0xff] }
 0x1c8   : > { %v1849_v4 = vld [vmem:[%s11055_s25 + $0xd18] sm:$0xff]  ;;  %v9701_v8 = vcombine.high %v1593_v21, %v1601_v3  ;;  %v9700_v19 = vcombine.low %v1593_v21, %v1601_v3  ;;  %v1698_v21 = vld [vmem:[%s11055_s25 + $0x860] sm:$0xff] }
 0x1c9   : > { %4755 = vmatpush1.bf16.msra.mxu0 %v9588_v9  ;;  %v9957_v9 = vcombine.high %v1849_v4, %v1857_v5  ;;  %v9956_v54 = vcombine.low %v1849_v4, %v1857_v5 }
 0x1ca   : > { %4796 = vmatpush1.bf16.msra.mxu1 %v9844_v14  ;;  %4756 = vmatprep.subr.bf16.mxu0 %v9605_v15  ;;  %v1609_v14 = vld [vmem:[%s11055_s25 + $0x598] sm:$0xff] }
 0x1cb   : > { %4797 = vmatprep.subr.bf16.mxu1 %v9861_v17  ;;  %v1617_v15 = vld [vmem:[%s11055_s25 + $0x5d8] sm:$0xff] }
 0x1cc   : > { %v1865_v17 = vld [vmem:[%s11055_s25 + $0xd98] sm:$0xff]  ;;  %v9717_v24 = vcombine.high %v1609_v14, %v1617_v15  ;;  %v9716_v33 = vcombine.low %v1609_v14, %v1617_v15  ;;  %v1706_v14 = vld [vmem:[%s11055_s25 + $0x8a0] sm:$0xff] }
 0x1cd   : > { %4757 = vmatpush1.bf16.msra.mxu0 %v9604_v28  ;;  %v9973_v28 = vcombine.high %v1865_v17, %v1873_v18  ;;  %v9972_v13 = vcombine.low %v1865_v17, %v1873_v18  ;;  %v1714_v15 = vld [vmem:[%s11055_s25 + $0x8e0] sm:$0xff] }
 0x1ce   : > { %4798 = vmatpush1.bf16.msra.mxu1 %v9860_v29  ;;  %4758 = vmatprep.subr.bf16.mxu0 %v9621_v30  ;;  %v1625_v29 = vld [vmem:[%s11055_s25 + $0x618] sm:$0xff] }
 0x1cf   : > { %4799 = vmatprep.subr.bf16.mxu1 %v9877_v31  ;;  %v1633_v30 = vld [vmem:[%s11055_s25 + $0x658] sm:$0xff] }
 0x1d0   : > { %v1881_v31 = vld [vmem:[%s11055_s25 + $0xe18] sm:$0xff]  ;;  %v9733_v34 = vcombine.high %v1625_v29, %v1633_v30  ;;  %v9732_v58 = vcombine.low %v1625_v29, %v1633_v30  ;;  %v1730_v29 = vld [vmem:[%s11055_s25 + $0x960] sm:$0xff] }
 0x1d1   : > { %4759 = vmatpush1.bf16.msra.mxu0 %v9620_v35  ;;  %v9989_v35 = vcombine.high %v1881_v31, %v1889_v32  ;;  %v9988_v40 = vcombine.low %v1881_v31, %v1889_v32  ;;  %v9814_v31 = vcombine.low %v1706_v14, %v1714_v15 }
 0x1d2   : > { %4800 = vmatpush1.bf16.msra.mxu1 %v9876_v36  ;;  %4760 = vmatprep.subr.bf16.mxu0 %v9637_v37  ;;  %v1641_v36 = vld [vmem:[%s11055_s25 + $0x698] sm:$0xff] }
 0x1d3   : > { %4801 = vmatprep.subr.bf16.mxu1 %v9893_v38  ;;  %v1649_v37 = vld [vmem:[%s11055_s25 + $0x6d8] sm:$0xff] }
 0x1d4   : > { %v1897_v38 = vld [vmem:[%s11055_s25 + $0xe98] sm:$0xff]  ;;  %v9749_v41 = vcombine.high %v1641_v36, %v1649_v37  ;;  %v9748_v47 = vcombine.low %v1641_v36, %v1649_v37  ;;  %v1746_v36 = vld [vmem:[%s11055_s25 + $0x9e0] sm:$0xff] }
 0x1d5   : > { %4761 = vmatpush1.bf16.msra.mxu0 %v9636_v42  ;;  %v10005_v42 = vcombine.high %v1897_v38, %v1905_v39  ;;  %v10004_v49 = vcombine.low %v1897_v38, %v1905_v39 }
 0x1d6   : > { %4802 = vmatpush1.bf16.msra.mxu1 %v9892_v43  ;;  %4762 = vmatprep.subr.bf16.mxu0 %v9653_v44  ;;  %v1657_v43 = vld [vmem:[%s11055_s25 + $0x718] sm:$0xff] }
 0x1d7   : > { %4803 = vmatprep.subr.bf16.mxu1 %v9909_v45  ;;  %v1665_v44 = vld [vmem:[%s11055_s25 + $0x758] sm:$0xff] }
 0x1d8   : > { %v1913_v45 = vld [vmem:[%s11055_s25 + $0xf18] sm:$0xff]  ;;  %v9765_v50 = vcombine.high %v1657_v43, %v1665_v44  ;;  %v9764_v61 = vcombine.low %v1657_v43, %v1665_v44  ;;  %v1762_v43 = vld [vmem:[%s11055_s25 + $0xa60] sm:$0xff] }
 0x1d9   : > { %4763 = vmatpush1.bf16.msra.mxu0 %v9652_v55  ;;  %v10021_v55 = vcombine.high %v1913_v45, %v1921_v46  ;;  %v10020_v63 = vcombine.low %v1913_v45, %v1921_v46 }
 0x1da   : > { %4804 = vmatpush1.bf16.msra.mxu1 %v9908_v56  ;;  %4764 = vmatprep.subr.bf16.mxu0 %v9669_v57  ;;  %v1673_v56 = vld [vmem:[%s11055_s25 + $0x798] sm:$0xff] }
 0x1db   : > { %4805 = vmatprep.subr.bf16.mxu1 %v9925_v59  ;;  %v1681_v57 = vld [vmem:[%s11055_s25 + $0x7d8] sm:$0xff] }
 0x1dc   : > { %v1929_v59 = vld [vmem:[%s11055_s25 + $0xf98] sm:$0xff]  ;;  %v9781_v0 = vcombine.high %v1673_v56, %v1681_v57  ;;  %v9780_v3 = vcombine.low %v1673_v56, %v1681_v57  ;;  %v1778_v56 = vld [vmem:[%s11055_s25 + $0xae0] sm:$0xff] }
 0x1dd   : > { %4765 = vmatpush1.bf16.msra.mxu0 %v9668_v10  ;;  %v10037_v10 = vcombine.high %v1929_v59, %v1937_v60  ;;  %v10036_v4 = vcombine.low %v1929_v59, %v1937_v60 }
 0x1de   : > { %4806 = vmatpush1.bf16.msra.mxu1 %v9924_v20  ;;  %4766 = vmatprep.subr.bf16.mxu0 %v9685_v12  ;;  %v1434_v20 = vld [vmem:[%s11055_s25 + $0x20] sm:$0xff] }
 0x1df   : > { %4807 = vmatprep.subr.bf16.mxu1 %v9941_v16  ;;  %v1442_v12 = vld [vmem:[%s11055_s25 + $0x60] sm:$0xff] }
 0x1e0   : > { %v1690_v16 = vld [vmem:[%s11055_s25 + $0x820] sm:$0xff]  ;;  %v9543_v5 = vcombine.high %v1434_v20, %v1442_v12 }
 0x1e1   : > { %4767 = vmatpush1.bf16.msra.mxu0 %v9684_v6  ;;  %v9799_v6 = vcombine.high %v1690_v16, %v1698_v21  ;;  %v9798_v17 = vcombine.low %v1690_v16, %v1698_v21 }
 0x1e2   : > { %4808 = vmatpush1.bf16.msra.mxu1 %v9940_v7  ;;  %4768 = vmatprep.subr.bf16.mxu0 %v9701_v8  ;;  %v1450_v7 = vld [vmem:[%s11055_s25 + $0xa0] sm:$0xff] }
 0x1e3   : > { %4809 = vmatprep.subr.bf16.mxu1 %v9957_v9  ;;  %v1458_v8 = vld [vmem:[%s11055_s25 + $0xe0] sm:$0xff]  ;;  %v9542_v9 = vcombine.low %v1434_v20, %v1442_v12 }
 0x1e4   : > { %v9559_v18 = vcombine.high %v1450_v7, %v1458_v8  ;;  %v9558_v30 = vcombine.low %v1450_v7, %v1458_v8  ;;  %v1794_v20 = vld [vmem:[%s11055_s25 + $0xb60] sm:$0xff] }
 0x1e5   : > { %4769 = vmatpush1.bf16.msra.mxu0 %v9700_v19  ;;  %v1466_v19 = vld [vmem:[%s11055_s25 + $0x120] sm:$0xff] }
 0x1e6   : > { %4810 = vmatpush1.bf16.msra.mxu1 %v9956_v54  ;;  %4770 = vmatprep.subr.bf16.mxu0 %v9717_v24  ;;  %v1474_v54 = vld [vmem:[%s11055_s25 + $0x160] sm:$0xff]  ;;  %v9815_v24 = vcombine.high %v1706_v14, %v1714_v15 }
 0x1e7   : > { %4811 = vmatprep.subr.bf16.mxu1 %v9973_v28  ;;  %v1722_v28 = vld [vmem:[%s11055_s25 + $0x920] sm:$0xff]  ;;  %v9575_v32 = vcombine.high %v1466_v19, %v1474_v54  ;;  %v9574_v37 = vcombine.low %v1466_v19, %v1474_v54 }
 0x1e8   : > { %v9830_v38 = vcombine.low %v1722_v28, %v1730_v29  ;;  %v1414_v7 = vld [vmem:[#allocation2] sm:$0xff] }
 0x1e9   : > { %4771 = vmatpush1.bf16.msra.mxu0 %v9716_v33  ;;  %v9831_v33 = vcombine.high %v1722_v28, %v1730_v29  ;;  %v1802_v14 = vld [vmem:[%s11055_s25 + $0xba0] sm:$0xff] }
 0x1ea   : > { %4812 = vmatpush1.bf16.msra.mxu1 %v9972_v13  ;;  %4772 = vmatprep.subr.bf16.mxu0 %v9733_v34  ;;  %v1482_v13 = vld [vmem:[%s11055_s25 + $0x1a0] sm:$0xff] }
 0x1eb   : > { %4813 = vmatprep.subr.bf16.mxu1 %v9989_v35  ;;  %v1490_v34 = vld [vmem:[%s11055_s25 + $0x1e0] sm:$0xff] }
 0x1ec   : > { %v1738_v35 = vld [vmem:[%s11055_s25 + $0x9a0] sm:$0xff]  ;;  %v9591_v39 = vcombine.high %v1482_v13, %v1490_v34  ;;  %v9590_v44 = vcombine.low %v1482_v13, %v1490_v34 }
 0x1ed   : > { %4773 = vmatpush1.bf16.msra.mxu0 %v9732_v58  ;;  %v9847_v58 = vcombine.high %v1738_v35, %v1746_v36  ;;  %v9846_v45 = vcombine.low %v1738_v35, %v1746_v36  ;;  %v1810_v15 = vld [vmem:[%s11055_s25 + $0xbe0] sm:$0xff] }
 0x1ee   : > { %4814 = vmatpush1.bf16.msra.mxu1 %v9988_v40  ;;  %4774 = vmatprep.subr.bf16.mxu0 %v9749_v41  ;;  %v1498_v40 = vld [vmem:[%s11055_s25 + $0x220] sm:$0xff]  ;;  %v9911_v34 = vcombine.high %v1802_v14, %v1810_v15 }
 0x1ef   : > { %4815 = vmatprep.subr.bf16.mxu1 %v10005_v42  ;;  %v1506_v41 = vld [vmem:[%s11055_s25 + $0x260] sm:$0xff] }
 0x1f0   : > { %v1754_v42 = vld [vmem:[%s11055_s25 + $0xa20] sm:$0xff]  ;;  %v9607_v46 = vcombine.high %v1498_v40, %v1506_v41  ;;  %v9606_v57 = vcombine.low %v1498_v40, %v1506_v41  ;;  %v9910_v40 = vcombine.low %v1802_v14, %v1810_v15 }
 0x1f1   : > { %4775 = vmatpush1.bf16.msra.mxu0 %v9748_v47  ;;  %v9863_v47 = vcombine.high %v1754_v42, %v1762_v43  ;;  %v9862_v59 = vcombine.low %v1754_v42, %v1762_v43  ;;  %v1562_v35 = vld [vmem:[%s11055_s25 + $0x420] sm:$0xff] }
 0x1f2   : > { %4816 = vmatpush1.bf16.msra.mxu1 %v10004_v49  ;;  %4776 = vmatprep.subr.bf16.mxu0 %v9765_v50  ;;  %v1514_v49 = vld [vmem:[%s11055_s25 + $0x2a0] sm:$0xff] }
 0x1f3   : > { %4817 = vmatprep.subr.bf16.mxu1 %v10021_v55  ;;  %v1522_v50 = vld [vmem:[%s11055_s25 + $0x2e0] sm:$0xff] }
 0x1f4   : > { %v1770_v55 = vld [vmem:[%s11055_s25 + $0xaa0] sm:$0xff]  ;;  %v9623_v60 = vcombine.high %v1514_v49, %v1522_v50  ;;  %v9622_v12 = vcombine.low %v1514_v49, %v1522_v50 }
 0x1f5   : > { %4777 = vmatpush1.bf16.msra.mxu0 %v9764_v61  ;;  %v9879_v61 = vcombine.high %v1770_v55, %v1778_v56  ;;  %v9878_v16 = vcombine.low %v1770_v55, %v1778_v56  ;;  %v1570_v36 = vld [vmem:[%s11055_s25 + $0x460] sm:$0xff] }
 0x1f6   : > { %4818 = vmatpush1.bf16.msra.mxu1 %v10020_v63  ;;  %4778 = vmatprep.subr.bf16.mxu0 %v9781_v0  ;;  %v1530_v63 = vld [vmem:[%s11055_s25 + $0x320] sm:$0xff]  ;;  %v9671_v41 = vcombine.high %v1562_v35, %v1570_v36 }
 0x1f7   : > { %4819 = vmatprep.subr.bf16.mxu1 %v10037_v10  ;;  %v1538_v0 = vld [vmem:[%s11055_s25 + $0x360] sm:$0xff] }
 0x1f8   : > { %v1786_v10 = vld [vmem:[%s11055_s25 + $0xb20] sm:$0xff]  ;;  %v9639_v21 = vcombine.high %v1530_v63, %v1538_v0 }
 0x1f9   : > { %4779 = vmatpush1.bf16.msra.mxu0 %v9780_v3  ;;  %v1578_v43 = vld [vmem:[%s11055_s25 + $0x4a0] sm:$0xff] }
 0x1fa   : > { %4820 = vmatpush1.bf16.msra.mxu1 %v10036_v4  ;;  %4830 = vmatprep.subr.bf16.mxu0 %v9543_v5  ;;  %v9895_v4 = vcombine.high %v1786_v10, %v1794_v20  ;;  %v1546_v5 = vld [vmem:[%s11055_s25 + $0x3a0] sm:$0xff] }
 0x1fb   : > { %4871 = vmatprep.subr.bf16.mxu1 %v9799_v6  ;;  %v1554_v6 = vld [vmem:[%s11055_s25 + $0x3e0] sm:$0xff] }
 0x1fc   : > { %4781 = vmatmul.mubr.bf16.vlgmr.msra.gmra.mrb[20].mxu0 %v11321_v51  ;;  %v1594_v56 = vld [vmem:[%s11055_s25 + $0x520] sm:$0xff] }
 0x1fd   : > { %4822 = vmatmul.mubr.bf16.vlgmr.msra.gmra.mrb[20].mxu1 %v11325_v53  ;;  %4831 = vmatpush1.bf16.msra.mxu0 %v9542_v9  ;;  %v1890_v14 = vld [vmem:[%s11055_s25 + $0xe60] sm:$0xff] }
 0x1fe   : > { %4862 = vmatprep.mubr.bf16.mxu0 %v11317_v48  ;;  %4872 = vmatpush1.bf16.msra.mxu1 %v9798_v17 }
 0x1ff   : > { %4903 = vmatprep.mubr.bf16.mxu1 %v11323_v52  ;;  %4832 = vmatprep.subr.bf16.mxu0 %v9559_v18  ;;  %v1415_v18 = vld [vmem:[#allocation2 + $0x8] sm:$0xff] }
 0x200   : > { %4873 = vmatprep.subr.bf16.mxu1 %v9815_v24  ;;  %v9638_v24 = vcombine.low %v1530_v63, %v1538_v0 }
 0x201   : > { %4833 = vmatpush1.bf16.msra.mxu0 %v9558_v30 }
 0x202   : > { %4874 = vmatpush1.bf16.msra.mxu1 %v9814_v31  ;;  %4834 = vmatprep.subr.bf16.mxu0 %v9575_v32  ;;  %v9894_v31 = vcombine.low %v1786_v10, %v1794_v20  ;;  %v9655_v32 = vcombine.high %v1546_v5, %v1554_v6  ;;  %v1610_v20 = vld [vmem:[%s11055_s25 + $0x5a0] sm:$0xff] }
 0x203   : > { %4875 = vmatprep.subr.bf16.mxu1 %v9831_v33 }
 0x205   : > { %4835 = vmatpush1.bf16.msra.mxu0 %v9574_v37 }
 0x206   : > { %4876 = vmatpush1.bf16.msra.mxu1 %v9830_v38  ;;  %4836 = vmatprep.subr.bf16.mxu0 %v9591_v39  ;;  %v1818_v38 = vld [vmem:[%s11055_s25 + $0xc20] sm:$0xff] }
 0x207   : > { %4877 = vmatprep.subr.bf16.mxu1 %v9847_v58  ;;  %v1826_v39 = vld [vmem:[%s11055_s25 + $0xc60] sm:$0xff]  ;;  %v9654_v58 = vcombine.low %v1546_v5, %v1554_v6 }
 0x208   : > { %v9927_v42 = vcombine.high %v1818_v38, %v1826_v39  ;;  %v9926_v49 = vcombine.low %v1818_v38, %v1826_v39 }
 0x209   : > { %4837 = vmatpush1.bf16.msra.mxu0 %v9590_v44  ;;  %v1586_v44 = vld [vmem:[%s11055_s25 + $0x4e0] sm:$0xff] }
 0x20a   : > { %4878 = vmatpush1.bf16.msra.mxu1 %v9846_v45  ;;  %4838 = vmatprep.subr.bf16.mxu0 %v9607_v46  ;;  %v1834_v45 = vld [vmem:[%s11055_s25 + $0xca0] sm:$0xff]  ;;  %v9687_v50 = vcombine.high %v1578_v43, %v1586_v44 }
 0x20b   : > { %4879 = vmatprep.subr.bf16.mxu1 %v9863_v47  ;;  %v1842_v46 = vld [vmem:[%s11055_s25 + $0xce0] sm:$0xff]  ;;  %v9670_v47 = vcombine.low %v1562_v35, %v1570_v36 }
 0x20c   : > { %v9943_v55 = vcombine.high %v1834_v45, %v1842_v46  ;;  %v9942_v63 = vcombine.low %v1834_v45, %v1842_v46  ;;  %v1914_v35 = vld [vmem:[%s11055_s25 + $0xf20] sm:$0xff] }
 0x20d   : > { %4839 = vmatpush1.bf16.msra.mxu0 %v9606_v57  ;;  %v1602_v57 = vld [vmem:[%s11055_s25 + $0x560] sm:$0xff] }
 0x20e   : > { %4880 = vmatpush1.bf16.msra.mxu1 %v9862_v59  ;;  %4840 = vmatprep.subr.bf16.mxu0 %v9623_v60  ;;  %v1850_v59 = vld [vmem:[%s11055_s25 + $0xd20] sm:$0xff]  ;;  %v9703_v0 = vcombine.high %v1594_v56, %v1602_v57 }
 0x20f   : > { %v4536_v3 = vpop.f32.mrb[8].mxu0  ;;  %4881 = vmatprep.subr.bf16.mxu1 %v9879_v61  ;;  %v4577_v8 = vpop.f32.mrb[8].mxu1  ;;  %v1858_v60 = vld [vmem:[%s11055_s25 + $0xd60] sm:$0xff]  ;;  %v9686_v61 = vcombine.low %v1578_v43, %v1586_v44 }
 0x210   : > { %v4538_v9 = vpop.f32.mrb[9].mxu0  ;;  %v4578_v17 = vadd.f32 %v4577_v8, %v4536_v3  ;;  %v4579_v19 = vpop.f32.mrb[9].mxu1  ;;  %v9959_v10 = vcombine.high %v1850_v59, %v1858_v60  ;;  %v9702_v3 = vcombine.low %v1594_v56, %v1602_v57  ;;  %v1634_v8 = vld [vmem:[%s11055_s25 + $0x660] sm:$0xff]  ;;  %v1699_v56 = vld [vmem:[%s11055_s25 + $0x868] sm:$0xff] }
 0x211   : > { %4841 = vmatpush1.bf16.msra.mxu0 %v9622_v12  ;;  %v4540_v54 = vpop.f32.mrb[10].mxu0  ;;  %v4580_v28 = vadd.f32 %v4579_v19, %v4538_v9  ;;  %v4581_v29 = vpop.f32.mrb[10].mxu1  ;;  %v1618_v12 = vld [vmem:[%s11055_s25 + $0x5e0] sm:$0xff] }
 0x212   : > { %4882 = vmatpush1.bf16.msra.mxu1 %v9878_v16  ;;  %v4541_v30 = vpop.f32.mrb[11].mxu0  ;;  %4842 = vmatprep.subr.bf16.mxu0 %v9639_v21  ;;  %v5158_v33 = vadd.f32 %v4578_v17, %v1414_v7  ;;  %v4582_v13 = vpop.f32.mrb[11].mxu1  ;;  %v1866_v16 = vld [vmem:[%s11055_s25 + $0xda0] sm:$0xff]  ;;  %v9719_v5 = vcombine.high %v1610_v20, %v1618_v12  ;;  %v9718_v15 = vcombine.low %v1610_v20, %v1618_v12  ;;  %v1707_v20 = vld [vmem:[%s11055_s25 + $0x8a8] sm:$0xff] }
 0x213   : > { %4883 = vmatprep.subr.bf16.mxu1 %v9895_v4  ;;  %v5159_v37 = vadd.f32 %v4580_v28, %v1415_v18  ;;  %v1874_v21 = vld [vmem:[%s11055_s25 + $0xde0] sm:$0xff]  ;;  %v9958_v4 = vcombine.low %v1850_v59, %v1858_v60  ;;  %v1715_v12 = vld [vmem:[%s11055_s25 + $0x8e8] sm:$0xff] }
 0x214   : > { %5174 = vst [vmem:[#allocation2] sm:$0xff] %v5158_v33  ;;  %v9975_v6 = vcombine.high %v1866_v16, %v1874_v21  ;;  %v1626_v7 = vld [vmem:[%s11055_s25 + $0x620] sm:$0xff]  ;;  %v9974_v17 = vcombine.low %v1866_v16, %v1874_v21 }
 0x215   : > { %4843 = vmatpush1.bf16.msra.mxu0 %v9638_v24  ;;  %5175 = vst [vmem:[#allocation2 + $0x8] sm:$0xff] %v5159_v37  ;;  %v1882_v9 = vld [vmem:[%s11055_s25 + $0xe20] sm:$0xff]  ;;  %v9735_v18 = vcombine.high %v1626_v7, %v1634_v8  ;;  %v9734_v30 = vcombine.low %v1626_v7, %v1634_v8  ;;  %v1731_v7 = vld [vmem:[%s11055_s25 + $0x968] sm:$0xff] }
 0x216   : > { %4884 = vmatpush1.bf16.msra.mxu1 %v9894_v31  ;;  %4844 = vmatprep.subr.bf16.mxu0 %v9655_v32  ;;  %v9991_v19 = vcombine.high %v1882_v9, %v1890_v14  ;;  %v1642_v54 = vld [vmem:[%s11055_s25 + $0x6a0] sm:$0xff]  ;;  %v9990_v31 = vcombine.low %v1882_v9, %v1890_v14  ;;  %v9816_v9 = vcombine.low %v1707_v20, %v1715_v12 }
 0x217   : > { %4885 = vmatprep.subr.bf16.mxu1 %v9911_v34  ;;  %v1650_v24 = vld [vmem:[%s11055_s25 + $0x6e0] sm:$0xff] }
 0x218   : > { %v1898_v28 = vld [vmem:[%s11055_s25 + $0xea0] sm:$0xff]  ;;  %v9751_v32 = vcombine.high %v1642_v54, %v1650_v24  ;;  %v9750_v37 = vcombine.low %v1642_v54, %v1650_v24  ;;  %v1747_v54 = vld [vmem:[%s11055_s25 + $0x9e8] sm:$0xff] }
 0x219   : > { %4845 = vmatpush1.bf16.msra.mxu0 %v9654_v58  ;;  %v1906_v29 = vld [vmem:[%s11055_s25 + $0xee0] sm:$0xff] }
 0x21a   : > { %4886 = vmatpush1.bf16.msra.mxu1 %v9910_v40  ;;  %4846 = vmatprep.subr.bf16.mxu0 %v9671_v41  ;;  %v10007_v33 = vcombine.high %v1898_v28, %v1906_v29  ;;  %v1658_v13 = vld [vmem:[%s11055_s25 + $0x720] sm:$0xff]  ;;  %v10006_v38 = vcombine.low %v1898_v28, %v1906_v29 }
 0x21b   : > { %4887 = vmatprep.subr.bf16.mxu1 %v9927_v42  ;;  %v1666_v34 = vld [vmem:[%s11055_s25 + $0x760] sm:$0xff] }
 0x21c   : > { %v1922_v36 = vld [vmem:[%s11055_s25 + $0xf60] sm:$0xff]  ;;  %v9767_v39 = vcombine.high %v1658_v13, %v1666_v34  ;;  %v9766_v44 = vcombine.low %v1658_v13, %v1666_v34  ;;  %v1763_v13 = vld [vmem:[%s11055_s25 + $0xa68] sm:$0xff] }
 0x21d   : > { %4847 = vmatpush1.bf16.msra.mxu0 %v9670_v47  ;;  %v10023_v58 = vcombine.high %v1914_v35, %v1922_v36  ;;  %v1674_v40 = vld [vmem:[%s11055_s25 + $0x7a0] sm:$0xff]  ;;  %v10022_v45 = vcombine.low %v1914_v35, %v1922_v36 }
 0x21e   : > { %4888 = vmatpush1.bf16.msra.mxu1 %v9926_v49  ;;  %4848 = vmatprep.subr.bf16.mxu0 %v9687_v50  ;;  %v1682_v41 = vld [vmem:[%s11055_s25 + $0x7e0] sm:$0xff]  ;;  %v1435_v49 = vld [vmem:[%s11055_s25 + $0x28] sm:$0xff] }
 0x21f   : > { %4889 = vmatprep.subr.bf16.mxu1 %v9943_v55  ;;  %v1930_v42 = vld [vmem:[%s11055_s25 + $0xfa0] sm:$0xff]  ;;  %v9783_v46 = vcombine.high %v1674_v40, %v1682_v41  ;;  %v1443_v50 = vld [vmem:[%s11055_s25 + $0x68] sm:$0xff]  ;;  %v9782_v57 = vcombine.low %v1674_v40, %v1682_v41 }
 0x220   : > { %v1938_v43 = vld [vmem:[%s11055_s25 + $0xfe0] sm:$0xff]  ;;  %v1691_v55 = vld [vmem:[%s11055_s25 + $0x828] sm:$0xff]  ;;  %v9545_v60 = vcombine.high %v1435_v49, %v1443_v50 }
 0x221   : > { %4849 = vmatpush1.bf16.msra.mxu0 %v9686_v61  ;;  %v10039_v47 = vcombine.high %v1930_v42, %v1938_v43  ;;  %v10038_v59 = vcombine.low %v1930_v42, %v1938_v43  ;;  %v9801_v61 = vcombine.high %v1691_v55, %v1699_v56  ;;  %v9800_v16 = vcombine.low %v1691_v55, %v1699_v56  ;;  %v1779_v40 = vld [vmem:[%s11055_s25 + $0xae8] sm:$0xff] }
 0x222   : > { %4890 = vmatpush1.bf16.msra.mxu1 %v9942_v63  ;;  %4850 = vmatprep.subr.bf16.mxu0 %v9703_v0  ;;  %v1451_v63 = vld [vmem:[%s11055_s25 + $0xa8] sm:$0xff] }
 0x223   : > { %4891 = vmatprep.subr.bf16.mxu1 %v9959_v10  ;;  %v1459_v0 = vld [vmem:[%s11055_s25 + $0xe8] sm:$0xff]  ;;  %v9544_v10 = vcombine.low %v1435_v49, %v1443_v50 }
 0x224   : > { %v9561_v21 = vcombine.high %v1451_v63, %v1459_v0  ;;  %v9560_v8 = vcombine.low %v1451_v63, %v1459_v0  ;;  %v1795_v49 = vld [vmem:[%s11055_s25 + $0xb68] sm:$0xff]  ;;  %v1416_v63 = vld [vmem:[#allocation2 + $0x10] sm:$0xff] }
 0x225   : > { %4851 = vmatpush1.bf16.msra.mxu0 %v9702_v3  ;;  %v1467_v3 = vld [vmem:[%s11055_s25 + $0x128] sm:$0xff] }
 0x226   : > { %4892 = vmatpush1.bf16.msra.mxu1 %v9958_v4  ;;  %4852 = vmatprep.subr.bf16.mxu0 %v9719_v5  ;;  %v1475_v4 = vld [vmem:[%s11055_s25 + $0x168] sm:$0xff]  ;;  %v9817_v5 = vcombine.high %v1707_v20, %v1715_v12 }
 0x227   : > { %4893 = vmatprep.subr.bf16.mxu1 %v9975_v6  ;;  %v1723_v6 = vld [vmem:[%s11055_s25 + $0x928] sm:$0xff]  ;;  %v9577_v14 = vcombine.high %v1467_v3, %v1475_v4  ;;  %v9576_v24 = vcombine.low %v1467_v3, %v1475_v4 }
 0x228   : > { %v9832_v28 = vcombine.low %v1723_v6, %v1731_v7  ;;  %v1803_v20 = vld [vmem:[%s11055_s25 + $0xba8] sm:$0xff] }
 0x229   : > { %4853 = vmatpush1.bf16.msra.mxu0 %v9718_v15  ;;  %v9833_v15 = vcombine.high %v1723_v6, %v1731_v7  ;;  %v1811_v12 = vld [vmem:[%s11055_s25 + $0xbe8] sm:$0xff] }
 0x22a   : > { %4894 = vmatpush1.bf16.msra.mxu1 %v9974_v17  ;;  %4854 = vmatprep.subr.bf16.mxu0 %v9735_v18  ;;  %v1483_v17 = vld [vmem:[%s11055_s25 + $0x1a8] sm:$0xff] }
 0x22b   : > { %4895 = vmatprep.subr.bf16.mxu1 %v9991_v19  ;;  %v1491_v18 = vld [vmem:[%s11055_s25 + $0x1e8] sm:$0xff] }
 0x22c   : > { %v1739_v19 = vld [vmem:[%s11055_s25 + $0x9a8] sm:$0xff]  ;;  %v9593_v29 = vcombine.high %v1483_v17, %v1491_v18  ;;  %v9592_v34 = vcombine.low %v1483_v17, %v1491_v18  ;;  %v9913_v18 = vcombine.high %v1803_v20, %v1811_v12 }
 0x22d   : > { %4855 = vmatpush1.bf16.msra.mxu0 %v9734_v30  ;;  %v9849_v30 = vcombine.high %v1739_v19, %v1747_v54  ;;  %v9848_v35 = vcombine.low %v1739_v19, %v1747_v54  ;;  %v1563_v19 = vld [vmem:[%s11055_s25 + $0x428] sm:$0xff] }
 0x22e   : > { %4896 = vmatpush1.bf16.msra.mxu1 %v9990_v31  ;;  %4856 = vmatprep.subr.bf16.mxu0 %v9751_v32  ;;  %v1499_v31 = vld [vmem:[%s11055_s25 + $0x228] sm:$0xff] }
 0x22f   : > { %4897 = vmatprep.subr.bf16.mxu1 %v10007_v33  ;;  %v1507_v32 = vld [vmem:[%s11055_s25 + $0x268] sm:$0xff] }
 0x230   : > { %v1755_v33 = vld [vmem:[%s11055_s25 + $0xa28] sm:$0xff]  ;;  %v9609_v36 = vcombine.high %v1499_v31, %v1507_v32  ;;  %v9608_v41 = vcombine.low %v1499_v31, %v1507_v32  ;;  %v9912_v31 = vcombine.low %v1803_v20, %v1811_v12 }
 0x231   : > { %4857 = vmatpush1.bf16.msra.mxu0 %v9750_v37  ;;  %v9865_v37 = vcombine.high %v1755_v33, %v1763_v13  ;;  %v9864_v42 = vcombine.low %v1755_v33, %v1763_v13  ;;  %v1571_v54 = vld [vmem:[%s11055_s25 + $0x468] sm:$0xff] }
 0x232   : > { %4898 = vmatpush1.bf16.msra.mxu1 %v10006_v38  ;;  %4858 = vmatprep.subr.bf16.mxu0 %v9767_v39  ;;  %v1515_v38 = vld [vmem:[%s11055_s25 + $0x2a8] sm:$0xff]  ;;  %v9673_v32 = vcombine.high %v1563_v19, %v1571_v54 }
 0x233   : > { %4899 = vmatprep.subr.bf16.mxu1 %v10023_v58  ;;  %v1523_v39 = vld [vmem:[%s11055_s25 + $0x2e8] sm:$0xff] }
 0x234   : > { %v1771_v58 = vld [vmem:[%s11055_s25 + $0xaa8] sm:$0xff]  ;;  %v9625_v43 = vcombine.high %v1515_v38, %v1523_v39  ;;  %v9624_v50 = vcombine.low %v1515_v38, %v1523_v39 }
 0x235   : > { %4859 = vmatpush1.bf16.msra.mxu0 %v9766_v44  ;;  %v9881_v44 = vcombine.high %v1771_v58, %v1779_v40  ;;  %v9880_v55 = vcombine.low %v1771_v58, %v1779_v40  ;;  %v1579_v13 = vld [vmem:[%s11055_s25 + $0x4a8] sm:$0xff] }
 0x236   : > { %4900 = vmatpush1.bf16.msra.mxu1 %v10022_v45  ;;  %4860 = vmatprep.subr.bf16.mxu0 %v9783_v46  ;;  %v1531_v45 = vld [vmem:[%s11055_s25 + $0x328] sm:$0xff] }
 0x237   : > { %4901 = vmatprep.subr.bf16.mxu1 %v10039_v47  ;;  %v1539_v46 = vld [vmem:[%s11055_s25 + $0x368] sm:$0xff] }
 0x238   : > { %v1787_v47 = vld [vmem:[%s11055_s25 + $0xb28] sm:$0xff]  ;;  %v9641_v56 = vcombine.high %v1531_v45, %v1539_v46 }
 0x239   : > { %4861 = vmatpush1.bf16.msra.mxu0 %v9782_v57  ;;  %v1595_v40 = vld [vmem:[%s11055_s25 + $0x528] sm:$0xff] }
 0x23a   : > { %4902 = vmatpush1.bf16.msra.mxu1 %v10038_v59  ;;  %4912 = vmatprep.subr.bf16.mxu0 %v9545_v60  ;;  %v9897_v59 = vcombine.high %v1787_v47, %v1795_v49  ;;  %v1547_v60 = vld [vmem:[%s11055_s25 + $0x3a8] sm:$0xff] }
 0x23b   : > { %4953 = vmatprep.subr.bf16.mxu1 %v9801_v61  ;;  %v1555_v61 = vld [vmem:[%s11055_s25 + $0x3e8] sm:$0xff] }
 0x23c   : > { %4863 = vmatmul.mubr.bf16.vlgmr.msra.gmra.mrb[24].mxu0 %v11321_v51  ;;  %v1891_v20 = vld [vmem:[%s11055_s25 + $0xe68] sm:$0xff] }
 0x23d   : > { %4904 = vmatmul.mubr.bf16.vlgmr.msra.gmra.mrb[24].mxu1 %v11325_v53  ;;  %4913 = vmatpush1.bf16.msra.mxu0 %v9544_v10 }
 0x23e   : > { %4944 = vmatprep.mubr.bf16.mxu0 %v11317_v48  ;;  %4954 = vmatpush1.bf16.msra.mxu1 %v9800_v16 }
 0x23f   : > { %4985 = vmatprep.mubr.bf16.mxu1 %v11323_v52  ;;  %4914 = vmatprep.subr.bf16.mxu0 %v9561_v21  ;;  %v1417_v21 = vld [vmem:[#allocation2 + $0x18] sm:$0xff] }
 0x240   : > { %4955 = vmatprep.subr.bf16.mxu1 %v9817_v5  ;;  %v9640_v5 = vcombine.low %v1531_v45, %v1539_v46 }
 0x241   : > { %4915 = vmatpush1.bf16.msra.mxu0 %v9560_v8 }
 0x242   : > { %4956 = vmatpush1.bf16.msra.mxu1 %v9816_v9  ;;  %4916 = vmatprep.subr.bf16.mxu0 %v9577_v14  ;;  %v9896_v9 = vcombine.low %v1787_v47, %v1795_v49  ;;  %v9657_v14 = vcombine.high %v1547_v60, %v1555_v61  ;;  %v1611_v49 = vld [vmem:[%s11055_s25 + $0x5a8] sm:$0xff] }
 0x243   : > { %4957 = vmatprep.subr.bf16.mxu1 %v9833_v15 }
 0x245   : > { %4917 = vmatpush1.bf16.msra.mxu0 %v9576_v24 }
 0x246   : > { %4958 = vmatpush1.bf16.msra.mxu1 %v9832_v28  ;;  %4918 = vmatprep.subr.bf16.mxu0 %v9593_v29  ;;  %v1819_v28 = vld [vmem:[%s11055_s25 + $0xc28] sm:$0xff] }
 0x247   : > { %4959 = vmatprep.subr.bf16.mxu1 %v9849_v30  ;;  %v1827_v29 = vld [vmem:[%s11055_s25 + $0xc68] sm:$0xff]  ;;  %v9656_v30 = vcombine.low %v1547_v60, %v1555_v61 }
 0x248   : > { %v9929_v33 = vcombine.high %v1819_v28, %v1827_v29  ;;  %v9928_v38 = vcombine.low %v1819_v28, %v1827_v29 }
 0x249   : > { %4919 = vmatpush1.bf16.msra.mxu0 %v9592_v34  ;;  %v1587_v34 = vld [vmem:[%s11055_s25 + $0x4e8] sm:$0xff] }
 0x24a   : > { %4960 = vmatpush1.bf16.msra.mxu1 %v9848_v35  ;;  %4920 = vmatprep.subr.bf16.mxu0 %v9609_v36  ;;  %v1835_v35 = vld [vmem:[%s11055_s25 + $0xca8] sm:$0xff]  ;;  %v9689_v39 = vcombine.high %v1579_v13, %v1587_v34 }
 0x24b   : > { %4961 = vmatprep.subr.bf16.mxu1 %v9865_v37  ;;  %v1843_v36 = vld [vmem:[%s11055_s25 + $0xce8] sm:$0xff]  ;;  %v9672_v37 = vcombine.low %v1563_v19, %v1571_v54 }
 0x24c   : > { %v9945_v58 = vcombine.high %v1835_v35, %v1843_v36  ;;  %v9944_v45 = vcombine.low %v1835_v35, %v1843_v36  ;;  %v1915_v19 = vld [vmem:[%s11055_s25 + $0xf28] sm:$0xff] }
 0x24d   : > { %4921 = vmatpush1.bf16.msra.mxu0 %v9608_v41  ;;  %v1603_v41 = vld [vmem:[%s11055_s25 + $0x568] sm:$0xff] }
 0x24e   : > { %4962 = vmatpush1.bf16.msra.mxu1 %v9864_v42  ;;  %4922 = vmatprep.subr.bf16.mxu0 %v9625_v43  ;;  %v1851_v42 = vld [vmem:[%s11055_s25 + $0xd28] sm:$0xff]  ;;  %v9705_v46 = vcombine.high %v1595_v40, %v1603_v41 }
 0x24f   : > { %v4618_v57 = vpop.f32.mrb[12].mxu0  ;;  %4963 = vmatprep.subr.bf16.mxu1 %v9881_v44  ;;  %v4659_v0 = vpop.f32.mrb[12].mxu1  ;;  %v1859_v43 = vld [vmem:[%s11055_s25 + $0xd68] sm:$0xff]  ;;  %v9688_v44 = vcombine.low %v1579_v13, %v1587_v34 }
 0x250   : > { %v4620_v10 = vpop.f32.mrb[13].mxu0  ;;  %v4660_v16 = vadd.f32 %v4659_v0, %v4618_v57  ;;  %v4661_v3 = vpop.f32.mrb[13].mxu1  ;;  %v9961_v47 = vcombine.high %v1851_v42, %v1859_v43  ;;  %v9704_v57 = vcombine.low %v1595_v40, %v1603_v41  ;;  %v1635_v0 = vld [vmem:[%s11055_s25 + $0x668] sm:$0xff]  ;;  %v1700_v40 = vld [vmem:[%s11055_s25 + $0x870] sm:$0xff] }
 0x251   : > { %v4622_v4 = vpop.f32.mrb[14].mxu0  ;;  %4923 = vmatpush1.bf16.msra.mxu0 %v9624_v50  ;;  %v4662_v6 = vadd.f32 %v4661_v3, %v4620_v10  ;;  %v4663_v7 = vpop.f32.mrb[14].mxu1  ;;  %v1619_v50 = vld [vmem:[%s11055_s25 + $0x5e8] sm:$0xff] }
 0x252   : > { %4964 = vmatpush1.bf16.msra.mxu1 %v9880_v55  ;;  %v4623_v8 = vpop.f32.mrb[15].mxu0  ;;  %4924 = vmatprep.subr.bf16.mxu0 %v9641_v56  ;;  %v5160_v15 = vadd.f32 %v4660_v16, %v1416_v63  ;;  %v4664_v17 = vpop.f32.mrb[15].mxu1  ;;  %v1867_v55 = vld [vmem:[%s11055_s25 + $0xda8] sm:$0xff]  ;;  %v9721_v60 = vcombine.high %v1611_v49, %v1619_v50  ;;  %v9720_v12 = vcombine.low %v1611_v49, %v1619_v50  ;;  %v1708_v49 = vld [vmem:[%s11055_s25 + $0x8b0] sm:$0xff] }
 0x253   : > { %4965 = vmatprep.subr.bf16.mxu1 %v9897_v59  ;;  %v5161_v24 = vadd.f32 %v4662_v6, %v1417_v21  ;;  %v1875_v56 = vld [vmem:[%s11055_s25 + $0xde8] sm:$0xff]  ;;  %v9960_v59 = vcombine.low %v1851_v42, %v1859_v43  ;;  %v1716_v50 = vld [vmem:[%s11055_s25 + $0x8f0] sm:$0xff] }
 0x254   : > { %5176 = vst [vmem:[#allocation2 + $0x10] sm:$0xff] %v5160_v15  ;;  %v9977_v61 = vcombine.high %v1867_v55, %v1875_v56  ;;  %v1627_v63 = vld [vmem:[%s11055_s25 + $0x628] sm:$0xff]  ;;  %v9976_v16 = vcombine.low %v1867_v55, %v1875_v56 }
 0x255   : > { %4925 = vmatpush1.bf16.msra.mxu0 %v9640_v5  ;;  %5177 = vst [vmem:[#allocation2 + $0x18] sm:$0xff] %v5161_v24  ;;  %v1883_v10 = vld [vmem:[%s11055_s25 + $0xe28] sm:$0xff]  ;;  %v9737_v21 = vcombine.high %v1627_v63, %v1635_v0  ;;  %v9736_v8 = vcombine.low %v1627_v63, %v1635_v0  ;;  %v1732_v63 = vld [vmem:[%s11055_s25 + $0x970] sm:$0xff] }
 0x256   : > { %4966 = vmatpush1.bf16.msra.mxu1 %v9896_v9  ;;  %4926 = vmatprep.subr.bf16.mxu0 %v9657_v14  ;;  %v9993_v3 = vcombine.high %v1883_v10, %v1891_v20  ;;  %v1643_v4 = vld [vmem:[%s11055_s25 + $0x6a8] sm:$0xff]  ;;  %v9992_v9 = vcombine.low %v1883_v10, %v1891_v20  ;;  %v9818_v10 = vcombine.low %v1708_v49, %v1716_v50 }
 0x257   : > { %4967 = vmatprep.subr.bf16.mxu1 %v9913_v18  ;;  %v1651_v5 = vld [vmem:[%s11055_s25 + $0x6e8] sm:$0xff] }
 0x258   : > { %v1899_v6 = vld [vmem:[%s11055_s25 + $0xea8] sm:$0xff]  ;;  %v9753_v14 = vcombine.high %v1643_v4, %v1651_v5  ;;  %v9752_v24 = vcombine.low %v1643_v4, %v1651_v5  ;;  %v1748_v4 = vld [vmem:[%s11055_s25 + $0x9f0] sm:$0xff] }
 0x259   : > { %4927 = vmatpush1.bf16.msra.mxu0 %v9656_v30  ;;  %v1907_v7 = vld [vmem:[%s11055_s25 + $0xee8] sm:$0xff] }
 0x25a   : > { %4968 = vmatpush1.bf16.msra.mxu1 %v9912_v31  ;;  %4928 = vmatprep.subr.bf16.mxu0 %v9673_v32  ;;  %v10009_v15 = vcombine.high %v1899_v6, %v1907_v7  ;;  %v1659_v17 = vld [vmem:[%s11055_s25 + $0x728] sm:$0xff]  ;;  %v10008_v28 = vcombine.low %v1899_v6, %v1907_v7 }
 0x25b   : > { %4969 = vmatprep.subr.bf16.mxu1 %v9929_v33  ;;  %v1667_v18 = vld [vmem:[%s11055_s25 + $0x768] sm:$0xff] }
 0x25c   : > { %v1923_v54 = vld [vmem:[%s11055_s25 + $0xf68] sm:$0xff]  ;;  %v9769_v29 = vcombine.high %v1659_v17, %v1667_v18  ;;  %v9768_v34 = vcombine.low %v1659_v17, %v1667_v18  ;;  %v1764_v17 = vld [vmem:[%s11055_s25 + $0xa70] sm:$0xff] }
 0x25d   : > { %4929 = vmatpush1.bf16.msra.mxu0 %v9672_v37  ;;  %v10025_v30 = vcombine.high %v1915_v19, %v1923_v54  ;;  %v1675_v31 = vld [vmem:[%s11055_s25 + $0x7a8] sm:$0xff]  ;;  %v10024_v35 = vcombine.low %v1915_v19, %v1923_v54 }
 0x25e   : > { %4970 = vmatpush1.bf16.msra.mxu1 %v9928_v38  ;;  %4930 = vmatprep.subr.bf16.mxu0 %v9689_v39  ;;  %v1683_v32 = vld [vmem:[%s11055_s25 + $0x7e8] sm:$0xff]  ;;  %v1436_v38 = vld [vmem:[%s11055_s25 + $0x30] sm:$0xff] }
 0x25f   : > { %4971 = vmatprep.subr.bf16.mxu1 %v9945_v58  ;;  %v1931_v33 = vld [vmem:[%s11055_s25 + $0xfa8] sm:$0xff]  ;;  %v9785_v36 = vcombine.high %v1675_v31, %v1683_v32  ;;  %v1444_v39 = vld [vmem:[%s11055_s25 + $0x70] sm:$0xff]  ;;  %v9784_v41 = vcombine.low %v1675_v31, %v1683_v32 }
 0x260   : > { %v1939_v13 = vld [vmem:[%s11055_s25 + $0xfe8] sm:$0xff]  ;;  %v1692_v58 = vld [vmem:[%s11055_s25 + $0x830] sm:$0xff]  ;;  %v9547_v43 = vcombine.high %v1436_v38, %v1444_v39 }
 0x261   : > { %4931 = vmatpush1.bf16.msra.mxu0 %v9688_v44  ;;  %v10041_v37 = vcombine.high %v1931_v33, %v1939_v13  ;;  %v10040_v42 = vcombine.low %v1931_v33, %v1939_v13  ;;  %v9803_v44 = vcombine.high %v1692_v58, %v1700_v40  ;;  %v9802_v55 = vcombine.low %v1692_v58, %v1700_v40  ;;  %v1780_v31 = vld [vmem:[%s11055_s25 + $0xaf0] sm:$0xff] }
 0x262   : > { %4972 = vmatpush1.bf16.msra.mxu1 %v9944_v45  ;;  %4932 = vmatprep.subr.bf16.mxu0 %v9705_v46  ;;  %v1452_v45 = vld [vmem:[%s11055_s25 + $0xb0] sm:$0xff] }
 0x263   : > { %4973 = vmatprep.subr.bf16.mxu1 %v9961_v47  ;;  %v1460_v46 = vld [vmem:[%s11055_s25 + $0xf0] sm:$0xff]  ;;  %v9546_v47 = vcombine.low %v1436_v38, %v1444_v39 }
 0x264   : > { %v9563_v56 = vcombine.high %v1452_v45, %v1460_v46  ;;  %v9562_v0 = vcombine.low %v1452_v45, %v1460_v46  ;;  %v1796_v38 = vld [vmem:[%s11055_s25 + $0xb70] sm:$0xff]  ;;  %v1418_v45 = vld [vmem:[#allocation2 + $0x20] sm:$0xff] }
 0x265   : > { %4933 = vmatpush1.bf16.msra.mxu0 %v9704_v57  ;;  %v1468_v57 = vld [vmem:[%s11055_s25 + $0x130] sm:$0xff] }
 0x266   : > { %4974 = vmatpush1.bf16.msra.mxu1 %v9960_v59  ;;  %4934 = vmatprep.subr.bf16.mxu0 %v9721_v60  ;;  %v1476_v59 = vld [vmem:[%s11055_s25 + $0x170] sm:$0xff]  ;;  %v9819_v60 = vcombine.high %v1708_v49, %v1716_v50 }
 0x267   : > { %4975 = vmatprep.subr.bf16.mxu1 %v9977_v61  ;;  %v1724_v61 = vld [vmem:[%s11055_s25 + $0x930] sm:$0xff]  ;;  %v9579_v20 = vcombine.high %v1468_v57, %v1476_v59  ;;  %v9578_v5 = vcombine.low %v1468_v57, %v1476_v59 }
 0x268   : > { %v9834_v6 = vcombine.low %v1724_v61, %v1732_v63  ;;  %v1804_v49 = vld [vmem:[%s11055_s25 + $0xbb0] sm:$0xff] }
 0x269   : > { %4935 = vmatpush1.bf16.msra.mxu0 %v9720_v12  ;;  %v9835_v12 = vcombine.high %v1724_v61, %v1732_v63  ;;  %v1812_v50 = vld [vmem:[%s11055_s25 + $0xbf0] sm:$0xff] }
 0x26a   : > { %4976 = vmatpush1.bf16.msra.mxu1 %v9976_v16  ;;  %4936 = vmatprep.subr.bf16.mxu0 %v9737_v21  ;;  %v1484_v16 = vld [vmem:[%s11055_s25 + $0x1b0] sm:$0xff] }
 0x26b   : > { %4977 = vmatprep.subr.bf16.mxu1 %v9993_v3  ;;  %v1492_v21 = vld [vmem:[%s11055_s25 + $0x1f0] sm:$0xff] }
 0x26c   : > { %v1740_v3 = vld [vmem:[%s11055_s25 + $0x9b0] sm:$0xff]  ;;  %v9595_v7 = vcombine.high %v1484_v16, %v1492_v21  ;;  %v9594_v18 = vcombine.low %v1484_v16, %v1492_v21  ;;  %v9915_v21 = vcombine.high %v1804_v49, %v1812_v50 }
 0x26d   : > { %4937 = vmatpush1.bf16.msra.mxu0 %v9736_v8  ;;  %v9851_v8 = vcombine.high %v1740_v3, %v1748_v4  ;;  %v9850_v19 = vcombine.low %v1740_v3, %v1748_v4  ;;  %v1564_v3 = vld [vmem:[%s11055_s25 + $0x430] sm:$0xff] }
 0x26e   : > { %4978 = vmatpush1.bf16.msra.mxu1 %v9992_v9  ;;  %4938 = vmatprep.subr.bf16.mxu0 %v9753_v14  ;;  %v1500_v9 = vld [vmem:[%s11055_s25 + $0x230] sm:$0xff] }
 0x26f   : > { %4979 = vmatprep.subr.bf16.mxu1 %v10009_v15  ;;  %v1508_v14 = vld [vmem:[%s11055_s25 + $0x270] sm:$0xff] }
 0x270   : > { %v1756_v15 = vld [vmem:[%s11055_s25 + $0xa30] sm:$0xff]  ;;  %v9611_v54 = vcombine.high %v1500_v9, %v1508_v14  ;;  %v9610_v32 = vcombine.low %v1500_v9, %v1508_v14  ;;  %v9914_v9 = vcombine.low %v1804_v49, %v1812_v50 }
 0x271   : > { %4939 = vmatpush1.bf16.msra.mxu0 %v9752_v24  ;;  %v9867_v24 = vcombine.high %v1756_v15, %v1764_v17  ;;  %v9866_v33 = vcombine.low %v1756_v15, %v1764_v17  ;;  %v1572_v4 = vld [vmem:[%s11055_s25 + $0x470] sm:$0xff] }
 0x272   : > { %4980 = vmatpush1.bf16.msra.mxu1 %v10008_v28  ;;  %4940 = vmatprep.subr.bf16.mxu0 %v9769_v29  ;;  %v1516_v28 = vld [vmem:[%s11055_s25 + $0x2b0] sm:$0xff]  ;;  %v9675_v14 = vcombine.high %v1564_v3, %v1572_v4 }
 0x273   : > { %4981 = vmatprep.subr.bf16.mxu1 %v10025_v30  ;;  %v1524_v29 = vld [vmem:[%s11055_s25 + $0x2f0] sm:$0xff] }
 0x274   : > { %v1772_v30 = vld [vmem:[%s11055_s25 + $0xab0] sm:$0xff]  ;;  %v9627_v13 = vcombine.high %v1516_v28, %v1524_v29  ;;  %v9626_v39 = vcombine.low %v1516_v28, %v1524_v29 }
 0x275   : > { %4941 = vmatpush1.bf16.msra.mxu0 %v9768_v34  ;;  %v9883_v34 = vcombine.high %v1772_v30, %v1780_v31  ;;  %v9882_v58 = vcombine.low %v1772_v30, %v1780_v31  ;;  %v1580_v17 = vld [vmem:[%s11055_s25 + $0x4b0] sm:$0xff] }
 0x276   : > { %4982 = vmatpush1.bf16.msra.mxu1 %v10024_v35  ;;  %4942 = vmatprep.subr.bf16.mxu0 %v9785_v36  ;;  %v1532_v35 = vld [vmem:[%s11055_s25 + $0x330] sm:$0xff] }
 0x277   : > { %4983 = vmatprep.subr.bf16.mxu1 %v10041_v37  ;;  %v1540_v36 = vld [vmem:[%s11055_s25 + $0x370] sm:$0xff] }
 0x278   : > { %v1788_v37 = vld [vmem:[%s11055_s25 + $0xb30] sm:$0xff]  ;;  %v9643_v40 = vcombine.high %v1532_v35, %v1540_v36 }
 0x279   : > { %4943 = vmatpush1.bf16.msra.mxu0 %v9784_v41  ;;  %v1596_v31 = vld [vmem:[%s11055_s25 + $0x530] sm:$0xff] }
 0x27a   : > { %4984 = vmatpush1.bf16.msra.mxu1 %v10040_v42  ;;  %4994 = vmatprep.subr.bf16.mxu0 %v9547_v43  ;;  %v9899_v42 = vcombine.high %v1788_v37, %v1796_v38  ;;  %v1548_v43 = vld [vmem:[%s11055_s25 + $0x3b0] sm:$0xff] }
 0x27b   : > { %5035 = vmatprep.subr.bf16.mxu1 %v9803_v44  ;;  %v1556_v44 = vld [vmem:[%s11055_s25 + $0x3f0] sm:$0xff] }
 0x27c   : > { %4945 = vmatmul.mubr.bf16.vlgmr.msra.gmra.mrb[28].mxu0 %v11321_v51  ;;  %v1892_v49 = vld [vmem:[%s11055_s25 + $0xe70] sm:$0xff] }
 0x27d   : > { %4986 = vmatmul.mubr.bf16.vlgmr.msra.gmra.mrb[28].mxu1 %v11325_v53  ;;  %4995 = vmatpush1.bf16.msra.mxu0 %v9546_v47 }
 0x27e   : > { %5026 = vmatprep.mubr.bf16.mxu0 %v11317_v48  ;;  %5036 = vmatpush1.bf16.msra.mxu1 %v9802_v55 }
 0x27f   : > { %5067 = vmatprep.mubr.bf16.mxu1 %v11323_v52  ;;  %4996 = vmatprep.subr.bf16.mxu0 %v9563_v56  ;;  %v1419_v56 = vld [vmem:[#allocation2 + $0x28] sm:$0xff] }
 0x280   : > { %5037 = vmatprep.subr.bf16.mxu1 %v9819_v60  ;;  %v9642_v60 = vcombine.low %v1532_v35, %v1540_v36 }
 0x281   : > { %4997 = vmatpush1.bf16.msra.mxu0 %v9562_v0 }
 0x282   : > { %5038 = vmatpush1.bf16.msra.mxu1 %v9818_v10  ;;  %4998 = vmatprep.subr.bf16.mxu0 %v9579_v20  ;;  %v9898_v10 = vcombine.low %v1788_v37, %v1796_v38  ;;  %v9659_v20 = vcombine.high %v1548_v43, %v1556_v44  ;;  %v1612_v38 = vld [vmem:[%s11055_s25 + $0x5b0] sm:$0xff] }
 0x283   : > { %5039 = vmatprep.subr.bf16.mxu1 %v9835_v12 }
 0x285   : > { %4999 = vmatpush1.bf16.msra.mxu0 %v9578_v5 }
 0x286   : > { %5040 = vmatpush1.bf16.msra.mxu1 %v9834_v6  ;;  %5000 = vmatprep.subr.bf16.mxu0 %v9595_v7  ;;  %v1820_v6 = vld [vmem:[%s11055_s25 + $0xc30] sm:$0xff] }
 0x287   : > { %5041 = vmatprep.subr.bf16.mxu1 %v9851_v8  ;;  %v1828_v7 = vld [vmem:[%s11055_s25 + $0xc70] sm:$0xff]  ;;  %v9658_v8 = vcombine.low %v1548_v43, %v1556_v44 }
 0x288   : > { %v9931_v15 = vcombine.high %v1820_v6, %v1828_v7  ;;  %v9930_v28 = vcombine.low %v1820_v6, %v1828_v7 }
 0x289   : > { %5001 = vmatpush1.bf16.msra.mxu0 %v9594_v18  ;;  %v1588_v18 = vld [vmem:[%s11055_s25 + $0x4f0] sm:$0xff] }
 0x28a   : > { %5042 = vmatpush1.bf16.msra.mxu1 %v9850_v19  ;;  %5002 = vmatprep.subr.bf16.mxu0 %v9611_v54  ;;  %v1836_v19 = vld [vmem:[%s11055_s25 + $0xcb0] sm:$0xff]  ;;  %v9691_v29 = vcombine.high %v1580_v17, %v1588_v18 }
 0x28b   : > { %5043 = vmatprep.subr.bf16.mxu1 %v9867_v24  ;;  %v1844_v54 = vld [vmem:[%s11055_s25 + $0xcf0] sm:$0xff]  ;;  %v9674_v24 = vcombine.low %v1564_v3, %v1572_v4 }
 0x28c   : > { %v9947_v30 = vcombine.high %v1836_v19, %v1844_v54  ;;  %v9946_v35 = vcombine.low %v1836_v19, %v1844_v54  ;;  %v1916_v3 = vld [vmem:[%s11055_s25 + $0xf30] sm:$0xff] }
 0x28d   : > { %5003 = vmatpush1.bf16.msra.mxu0 %v9610_v32  ;;  %v1604_v32 = vld [vmem:[%s11055_s25 + $0x570] sm:$0xff] }
 0x28e   : > { %5044 = vmatpush1.bf16.msra.mxu1 %v9866_v33  ;;  %5004 = vmatprep.subr.bf16.mxu0 %v9627_v13  ;;  %v1852_v33 = vld [vmem:[%s11055_s25 + $0xd30] sm:$0xff]  ;;  %v9707_v36 = vcombine.high %v1596_v31, %v1604_v32 }
 0x28f   : > { %v4700_v41 = vpop.f32.mrb[16].mxu0  ;;  %5045 = vmatprep.subr.bf16.mxu1 %v9883_v34  ;;  %v1860_v13 = vld [vmem:[%s11055_s25 + $0xd70] sm:$0xff]  ;;  %v9690_v34 = vcombine.low %v1580_v17, %v1588_v18 }
 0x290   : > { %v4741_v46 = vpop.f32.mrb[16].mxu1  ;;  %v4702_v47 = vpop.f32.mrb[17].mxu0  ;;  %v9963_v37 = vcombine.high %v1852_v33, %v1860_v13  ;;  %v1924_v4 = vld [vmem:[%s11055_s25 + $0xf70] sm:$0xff] }
 0x291   : > { %v4742_v55 = vadd.f32 %v4741_v46, %v4700_v41  ;;  %v4743_v57 = vpop.f32.mrb[17].mxu1  ;;  %v4704_v59 = vpop.f32.mrb[18].mxu0  ;;  %5005 = vmatpush1.bf16.msra.mxu0 %v9626_v39  ;;  %v1620_v39 = vld [vmem:[%s11055_s25 + $0x5f0] sm:$0xff]  ;;  %v9706_v41 = vcombine.low %v1596_v31, %v1604_v32  ;;  %v10026_v19 = vcombine.low %v1916_v3, %v1924_v4  ;;  %v1701_v31 = vld [vmem:[%s11055_s25 + $0x878] sm:$0xff] }
 0x292   : > { %v4744_v61 = vadd.f32 %v4743_v57, %v4702_v47  ;;  %v4745_v63 = vpop.f32.mrb[18].mxu1  ;;  %5046 = vmatpush1.bf16.msra.mxu1 %v9882_v58  ;;  %v4705_v0 = vpop.f32.mrb[19].mxu0  ;;  %5006 = vmatprep.subr.bf16.mxu0 %v9643_v40  ;;  %v1868_v58 = vld [vmem:[%s11055_s25 + $0xdb0] sm:$0xff]  ;;  %v9723_v43 = vcombine.high %v1612_v38, %v1620_v39  ;;  %v9722_v50 = vcombine.low %v1612_v38, %v1620_v39  ;;  %v1709_v38 = vld [vmem:[%s11055_s25 + $0x8b8] sm:$0xff] }
 0x293   : > { %v5162_v12 = vadd.f32 %v4742_v55, %v1418_v45  ;;  %v4746_v16 = vpop.f32.mrb[19].mxu1  ;;  %5047 = vmatprep.subr.bf16.mxu1 %v9899_v42  ;;  %v1876_v40 = vld [vmem:[%s11055_s25 + $0xdf0] sm:$0xff]  ;;  %v9962_v42 = vcombine.low %v1852_v33, %v1860_v13  ;;  %v1717_v39 = vld [vmem:[%s11055_s25 + $0x8f8] sm:$0xff] }
 0x294   : > { %v5163_v5 = vadd.f32 %v4744_v61, %v1419_v56  ;;  %v9979_v44 = vcombine.high %v1868_v58, %v1876_v40  ;;  %v1628_v45 = vld [vmem:[%s11055_s25 + $0x630] sm:$0xff]  ;;  %v9978_v55 = vcombine.low %v1868_v58, %v1876_v40 }
 0x295   : > { %5178 = vst [vmem:[#allocation2 + $0x20] sm:$0xff] %v5162_v12  ;;  %5007 = vmatpush1.bf16.msra.mxu0 %v9642_v60  ;;  %v1636_v46 = vld [vmem:[%s11055_s25 + $0x670] sm:$0xff] }
 0x296   : > { %5179 = vst [vmem:[#allocation2 + $0x28] sm:$0xff] %v5163_v5  ;;  %5048 = vmatpush1.bf16.msra.mxu1 %v9898_v10  ;;  %5008 = vmatprep.subr.bf16.mxu0 %v9659_v20  ;;  %v1884_v47 = vld [vmem:[%s11055_s25 + $0xe30] sm:$0xff]  ;;  %v9739_v56 = vcombine.high %v1628_v45, %v1636_v46  ;;  %v9738_v0 = vcombine.low %v1628_v45, %v1636_v46  ;;  %v1733_v45 = vld [vmem:[%s11055_s25 + $0x978] sm:$0xff] }
 0x297   : > { %5049 = vmatprep.subr.bf16.mxu1 %v9915_v21  ;;  %v9995_v57 = vcombine.high %v1884_v47, %v1892_v49  ;;  %v1644_v59 = vld [vmem:[%s11055_s25 + $0x6b0] sm:$0xff]  ;;  %v9994_v10 = vcombine.low %v1884_v47, %v1892_v49  ;;  %v9820_v47 = vcombine.low %v1709_v38, %v1717_v39 }
 0x298   : > { %v1652_v60 = vld [vmem:[%s11055_s25 + $0x6f0] sm:$0xff] }
 0x299   : > { %5009 = vmatpush1.bf16.msra.mxu0 %v9658_v8  ;;  %v1900_v61 = vld [vmem:[%s11055_s25 + $0xeb0] sm:$0xff]  ;;  %v9755_v20 = vcombine.high %v1644_v59, %v1652_v60  ;;  %v9754_v5 = vcombine.low %v1644_v59, %v1652_v60  ;;  %v10027_v8 = vcombine.high %v1916_v3, %v1924_v4  ;;  %v1749_v59 = vld [vmem:[%s11055_s25 + $0x9f8] sm:$0xff] }
 0x29a   : > { %5050 = vmatpush1.bf16.msra.mxu1 %v9914_v9  ;;  %5010 = vmatprep.subr.bf16.mxu0 %v9675_v14  ;;  %v1908_v63 = vld [vmem:[%s11055_s25 + $0xef0] sm:$0xff]  ;;  %v1517_v4 = vld [vmem:[%s11055_s25 + $0x2b8] sm:$0xff] }
 0x29b   : > { %5051 = vmatprep.subr.bf16.mxu1 %v9931_v15  ;;  %v10011_v12 = vcombine.high %v1900_v61, %v1908_v63  ;;  %v1660_v16 = vld [vmem:[%s11055_s25 + $0x730] sm:$0xff]  ;;  %v10010_v6 = vcombine.low %v1900_v61, %v1908_v63  ;;  %v1501_v63 = vld [vmem:[%s11055_s25 + $0x238] sm:$0xff] }
 0x29c   : > { %v1668_v21 = vld [vmem:[%s11055_s25 + $0x770] sm:$0xff] }
 0x29d   : > { %5011 = vmatpush1.bf16.msra.mxu0 %v9674_v24  ;;  %v9771_v7 = vcombine.high %v1660_v16, %v1668_v21  ;;  %v1676_v9 = vld [vmem:[%s11055_s25 + $0x7b0] sm:$0xff]  ;;  %v9770_v18 = vcombine.low %v1660_v16, %v1668_v21 }
 0x29e   : > { %5052 = vmatpush1.bf16.msra.mxu1 %v9930_v28  ;;  %5012 = vmatprep.subr.bf16.mxu0 %v9691_v29  ;;  %v1684_v14 = vld [vmem:[%s11055_s25 + $0x7f0] sm:$0xff]  ;;  %v1437_v28 = vld [vmem:[%s11055_s25 + $0x38] sm:$0xff] }
 0x29f   : > { %5053 = vmatprep.subr.bf16.mxu1 %v9947_v30  ;;  %v1932_v15 = vld [vmem:[%s11055_s25 + $0xfb0] sm:$0xff]  ;;  %v9787_v54 = vcombine.high %v1676_v9, %v1684_v14  ;;  %v1445_v29 = vld [vmem:[%s11055_s25 + $0x78] sm:$0xff]  ;;  %v9786_v32 = vcombine.low %v1676_v9, %v1684_v14 }
 0x2a0   : > { %v1940_v17 = vld [vmem:[%s11055_s25 + $0xff0] sm:$0xff]  ;;  %v1693_v30 = vld [vmem:[%s11055_s25 + $0x838] sm:$0xff]  ;;  %v9549_v13 = vcombine.high %v1437_v28, %v1445_v29 }
 0x2a1   : > { %5013 = vmatpush1.bf16.msra.mxu0 %v9690_v34  ;;  %v10043_v24 = vcombine.high %v1932_v15, %v1940_v17  ;;  %v10042_v33 = vcombine.low %v1932_v15, %v1940_v17  ;;  %v9805_v34 = vcombine.high %v1693_v30, %v1701_v31  ;;  %v9804_v58 = vcombine.low %v1693_v30, %v1701_v31  ;;  %v1533_v17 = vld [vmem:[%s11055_s25 + $0x338] sm:$0xff] }
 0x2a2   : > { %5054 = vmatpush1.bf16.msra.mxu1 %v9946_v35  ;;  %5014 = vmatprep.subr.bf16.mxu0 %v9707_v36  ;;  %v1453_v35 = vld [vmem:[%s11055_s25 + $0xb8] sm:$0xff] }
 0x2a3   : > { %5055 = vmatprep.subr.bf16.mxu1 %v9963_v37  ;;  %v1461_v36 = vld [vmem:[%s11055_s25 + $0xf8] sm:$0xff]  ;;  %v9548_v37 = vcombine.low %v1437_v28, %v1445_v29 }
 0x2a4   : > { %v9565_v40 = vcombine.high %v1453_v35, %v1461_v36  ;;  %v9564_v46 = vcombine.low %v1453_v35, %v1461_v36  ;;  %v1805_v36 = vld [vmem:[%s11055_s25 + $0xbb8] sm:$0xff] }
 0x2a5   : > { %5015 = vmatpush1.bf16.msra.mxu0 %v9706_v41  ;;  %v1469_v41 = vld [vmem:[%s11055_s25 + $0x138] sm:$0xff] }
 0x2a6   : > { %5056 = vmatpush1.bf16.msra.mxu1 %v9962_v42  ;;  %5016 = vmatprep.subr.bf16.mxu0 %v9723_v43  ;;  %v1477_v42 = vld [vmem:[%s11055_s25 + $0x178] sm:$0xff]  ;;  %v9821_v43 = vcombine.high %v1709_v38, %v1717_v39 }
 0x2a7   : > { %5057 = vmatprep.subr.bf16.mxu1 %v9979_v44  ;;  %v1725_v44 = vld [vmem:[%s11055_s25 + $0x938] sm:$0xff]  ;;  %v9581_v49 = vcombine.high %v1469_v41, %v1477_v42  ;;  %v9580_v60 = vcombine.low %v1469_v41, %v1477_v42 }
 0x2a8   : > { %v1421_v39 = vld [vmem:[#allocation2 + $0x38] sm:$0xff] }
 0x2a9   : > { %5017 = vmatpush1.bf16.msra.mxu0 %v9722_v50  ;;  %v9837_v50 = vcombine.high %v1725_v44, %v1733_v45 }
 0x2aa   : > { %5058 = vmatpush1.bf16.msra.mxu1 %v9978_v55  ;;  %5018 = vmatprep.subr.bf16.mxu0 %v9739_v56  ;;  %v1485_v55 = vld [vmem:[%s11055_s25 + $0x1b8] sm:$0xff] }
 0x2ab   : > { %5059 = vmatprep.subr.bf16.mxu1 %v9995_v57  ;;  %v1493_v56 = vld [vmem:[%s11055_s25 + $0x1f8] sm:$0xff] }
 0x2ac   : > { %v1741_v57 = vld [vmem:[%s11055_s25 + $0x9b8] sm:$0xff]  ;;  %v9597_v61 = vcombine.high %v1485_v55, %v1493_v56 }
 0x2ad   : > { %5019 = vmatpush1.bf16.msra.mxu0 %v9738_v0  ;;  %v1509_v0 = vld [vmem:[%s11055_s25 + $0x278] sm:$0xff]  ;;  %v9852_v16 = vcombine.low %v1741_v57, %v1749_v59 }
 0x2ae   : > { %5060 = vmatpush1.bf16.msra.mxu1 %v9994_v10  ;;  %5020 = vmatprep.subr.bf16.mxu0 %v9755_v20  ;;  %v1757_v10 = vld [vmem:[%s11055_s25 + $0xa38] sm:$0xff]  ;;  %v9613_v21 = vcombine.high %v1501_v63, %v1509_v0 }
 0x2af   : > { %5061 = vmatprep.subr.bf16.mxu1 %v10011_v12  ;;  %v1765_v20 = vld [vmem:[%s11055_s25 + $0xa78] sm:$0xff]  ;;  %v9596_v12 = vcombine.low %v1485_v55, %v1493_v56 }
 0x2b0   : > { %v9869_v3 = vcombine.high %v1757_v10, %v1765_v20  ;;  %v9868_v9 = vcombine.low %v1757_v10, %v1765_v20  ;;  %v1565_v55 = vld [vmem:[%s11055_s25 + $0x438] sm:$0xff] }
 0x2b1   : > { %5021 = vmatpush1.bf16.msra.mxu0 %v9754_v5  ;;  %v1525_v5 = vld [vmem:[%s11055_s25 + $0x2f8] sm:$0xff] }
 0x2b2   : > { %5062 = vmatpush1.bf16.msra.mxu1 %v10010_v6  ;;  %5022 = vmatprep.subr.bf16.mxu0 %v9771_v7  ;;  %v1773_v6 = vld [vmem:[%s11055_s25 + $0xab8] sm:$0xff]  ;;  %v9629_v14 = vcombine.high %v1517_v4, %v1525_v5 }
 0x2b3   : > { %5063 = vmatprep.subr.bf16.mxu1 %v10027_v8  ;;  %v1781_v7 = vld [vmem:[%s11055_s25 + $0xaf8] sm:$0xff]  ;;  %v9612_v8 = vcombine.low %v1501_v63, %v1509_v0 }
 0x2b4   : > { %v9885_v15 = vcombine.high %v1773_v6, %v1781_v7  ;;  %v9884_v28 = vcombine.low %v1773_v6, %v1781_v7  ;;  %v1573_v56 = vld [vmem:[%s11055_s25 + $0x478] sm:$0xff] }
 0x2b5   : > { %5023 = vmatpush1.bf16.msra.mxu0 %v9770_v18  ;;  %v1541_v18 = vld [vmem:[%s11055_s25 + $0x378] sm:$0xff] }
 0x2b6   : > { %5064 = vmatpush1.bf16.msra.mxu1 %v10026_v19  ;;  %5024 = vmatprep.subr.bf16.mxu0 %v9787_v54  ;;  %v1789_v19 = vld [vmem:[%s11055_s25 + $0xb38] sm:$0xff]  ;;  %v9645_v29 = vcombine.high %v1533_v17, %v1541_v18  ;;  %v9644_v41 = vcombine.low %v1533_v17, %v1541_v18 }
 0x2b7   : > { %5065 = vmatprep.subr.bf16.mxu1 %v10043_v24  ;;  %v1797_v54 = vld [vmem:[%s11055_s25 + $0xb78] sm:$0xff]  ;;  %v9628_v24 = vcombine.low %v1517_v4, %v1525_v5 }
 0x2b8   : > { %v9901_v31 = vcombine.high %v1789_v19, %v1797_v54  ;;  %v1581_v0 = vld [vmem:[%s11055_s25 + $0x4b8] sm:$0xff] }
 0x2b9   : > { %5025 = vmatpush1.bf16.msra.mxu0 %v9786_v32  ;;  %v1549_v32 = vld [vmem:[%s11055_s25 + $0x3b8] sm:$0xff] }
 0x2ba   : > { %5066 = vmatpush1.bf16.msra.mxu1 %v10042_v33  ;;  %5076 = vmatprep.subr.bf16.mxu0 %v9549_v13  ;;  %v1557_v33 = vld [vmem:[%s11055_s25 + $0x3f8] sm:$0xff]  ;;  %v1420_v13 = vld [vmem:[#allocation2 + $0x30] sm:$0xff] }
 0x2bb   : > { %5117 = vmatprep.subr.bf16.mxu1 %v9805_v34  ;;  %v1589_v10 = vld [vmem:[%s11055_s25 + $0x4f8] sm:$0xff] }
 0x2bc   : > { %5027 = vmatmul.mubr.bf16.vlgmr.msra.gmra.mrb[32].mxu0 %v11321_v51  ;;  %v1837_v20 = vld [vmem:[%s11055_s25 + $0xcb8] sm:$0xff] }
 0x2bd   : > { %5068 = vmatmul.mubr.bf16.vlgmr.msra.gmra.mrb[32].mxu1 %v11325_v53  ;;  %5077 = vmatpush1.bf16.msra.mxu0 %v9548_v37  ;;  %v1813_v37 = vld [vmem:[%s11055_s25 + $0xbf8] sm:$0xff] }
 0x2be   : > { %5108 = vmatprep.mubr.bf16.mxu0 %v11317_v48  ;;  %5118 = vmatpush1.bf16.msra.mxu1 %v9804_v58  ;;  %v9836_v48 = vcombine.low %v1725_v44, %v1733_v45  ;;  %v9900_v45 = vcombine.low %v1789_v19, %v1797_v54  ;;  %v1597_v5 = vld [vmem:[%s11055_s25 + $0x538] sm:$0xff] }
 0x2bf   : > { %5149 = vmatprep.mubr.bf16.mxu1 %v11323_v52  ;;  %5078 = vmatprep.subr.bf16.mxu0 %v9565_v40  ;;  %v9853_v52 = vcombine.high %v1741_v57, %v1749_v59  ;;  %v1821_v59 = vld [vmem:[%s11055_s25 + $0xc38] sm:$0xff] }
 0x2c0   : > { %5119 = vmatprep.subr.bf16.mxu1 %v9821_v43  ;;  %v1605_v6 = vld [vmem:[%s11055_s25 + $0x578] sm:$0xff] }
 0x2c1   : > { %5079 = vmatpush1.bf16.msra.mxu0 %v9564_v46  ;;  %v9661_v46 = vcombine.high %v1549_v32, %v1557_v33  ;;  %v1853_v7 = vld [vmem:[%s11055_s25 + $0xd38] sm:$0xff] }
 0x2c2   : > { %5120 = vmatpush1.bf16.msra.mxu1 %v9820_v47  ;;  %5080 = vmatprep.subr.bf16.mxu0 %v9581_v49  ;;  %v1613_v18 = vld [vmem:[%s11055_s25 + $0x5b8] sm:$0xff] }
 0x2c3   : > { %5121 = vmatprep.subr.bf16.mxu1 %v9837_v50  ;;  %v9917_v50 = vcombine.high %v1805_v36, %v1813_v37  ;;  %v1621_v19 = vld [vmem:[%s11055_s25 + $0x5f8] sm:$0xff] }
 0x2c4   : > { %v1869_v54 = vld [vmem:[%s11055_s25 + $0xdb8] sm:$0xff] }
 0x2c5   : > { %5081 = vmatpush1.bf16.msra.mxu0 %v9580_v60  ;;  %v1829_v60 = vld [vmem:[%s11055_s25 + $0xc78] sm:$0xff] }
 0x2c6   : > { %5122 = vmatpush1.bf16.msra.mxu1 %v9836_v48  ;;  %5082 = vmatprep.subr.bf16.mxu0 %v9597_v61  ;;  %v9660_v48 = vcombine.low %v1549_v32, %v1557_v33  ;;  %v9916_v61 = vcombine.low %v1805_v36, %v1813_v37  ;;  %v9933_v63 = vcombine.high %v1821_v59, %v1829_v60  ;;  %v1629_v32 = vld [vmem:[%s11055_s25 + $0x638] sm:$0xff] }
 0x2c7   : > { %5123 = vmatprep.subr.bf16.mxu1 %v9853_v52  ;;  %v9677_v52 = vcombine.high %v1565_v55, %v1573_v56  ;;  %v1637_v33 = vld [vmem:[%s11055_s25 + $0x678] sm:$0xff] }
 0x2c8   : > { %v9741_v37 = vcombine.high %v1629_v32, %v1637_v33 }
 0x2c9   : > { %5083 = vmatpush1.bf16.msra.mxu0 %v9596_v12  ;;  %v1845_v12 = vld [vmem:[%s11055_s25 + $0xcf8] sm:$0xff] }
 0x2ca   : > { %5124 = vmatpush1.bf16.msra.mxu1 %v9852_v16  ;;  %5084 = vmatprep.subr.bf16.mxu0 %v9613_v21  ;;  %v9676_v16 = vcombine.low %v1565_v55, %v1573_v56  ;;  %v9932_v21 = vcombine.low %v1821_v59, %v1829_v60  ;;  %v9949_v4 = vcombine.high %v1837_v20, %v1845_v12  ;;  %v1925_v55 = vld [vmem:[%s11055_s25 + $0xf78] sm:$0xff]  ;;  %v11811_v56 = vsub.s32 7, %v11296_v22 }
 0x2cb   : > { %5125 = vmatprep.subr.bf16.mxu1 %v9869_v3  ;;  %v9693_v3 = vcombine.high %v1581_v0, %v1589_v10 }
 0x2cd   : > { %5085 = vmatpush1.bf16.msra.mxu0 %v9612_v8  ;;  %v1861_v8 = vld [vmem:[%s11055_s25 + $0xd78] sm:$0xff] }
 0x2ce   : > { %5126 = vmatpush1.bf16.msra.mxu1 %v9868_v9  ;;  %5086 = vmatprep.subr.bf16.mxu0 %v9629_v14  ;;  %v9692_v9 = vcombine.low %v1581_v0, %v1589_v10  ;;  %v9948_v14 = vcombine.low %v1837_v20, %v1845_v12  ;;  %v9965_v17 = vcombine.high %v1853_v7, %v1861_v8  ;;  %v1933_v10 = vld [vmem:[%s11055_s25 + $0xfb8] sm:$0xff] }
 0x2cf   : > { %v4782_v30 = vpop.f32.mrb[20].mxu0  ;;  %5127 = vmatprep.subr.bf16.mxu1 %v9885_v15  ;;  %v9709_v15 = vcombine.high %v1597_v5, %v1605_v6  ;;  %v1941_v20 = vld [vmem:[%s11055_s25 + $0xff8] sm:$0xff] }
 0x2d0   : > { %v4823_v34 = vpop.f32.mrb[20].mxu1  ;;  %v4784_v35 = vpop.f32.mrb[21].mxu0 }
 0x2d1   : > { %v4824_v38 = vadd.f32 %v4823_v34, %v4782_v30  ;;  %v4825_v58 = vpop.f32.mrb[21].mxu1  ;;  %v4786_v40 = vpop.f32.mrb[22].mxu0  ;;  %5087 = vmatpush1.bf16.msra.mxu0 %v9628_v24  ;;  %v1877_v24 = vld [vmem:[%s11055_s25 + $0xdf8] sm:$0xff]  ;;  %v9725_v30 = vcombine.high %v1613_v18, %v1621_v19 }
 0x2d2   : > { %v4826_v42 = vadd.f32 %v4825_v58, %v4784_v35  ;;  %v4827_v43 = vpop.f32.mrb[22].mxu1  ;;  %5128 = vmatpush1.bf16.msra.mxu1 %v9884_v28  ;;  %v4787_v44 = vpop.f32.mrb[23].mxu0  ;;  %5088 = vmatprep.subr.bf16.mxu0 %v9645_v29  ;;  %v9708_v28 = vcombine.low %v1597_v5, %v1605_v6  ;;  %v9964_v29 = vcombine.low %v1853_v7, %v1861_v8  ;;  %v1893_v34 = vld [vmem:[%s11055_s25 + $0xe78] sm:$0xff]  ;;  %v5198_v5 = vld [vmem:[%s11060_s28] sm:$0xff] }
 0x2d3   : > { %v5164_v47 = vadd.f32 %v4824_v38, %v1420_v13  ;;  %v4828_v49 = vpop.f32.mrb[23].mxu1  ;;  %5129 = vmatprep.subr.bf16.mxu1 %v9901_v31  ;;  %v9981_v31 = vcombine.high %v1869_v54, %v1877_v24  ;;  %v1885_v13 = vld [vmem:[%s11055_s25 + $0xe38] sm:$0xff]  ;;  %v9724_v35 = vcombine.low %v1613_v18, %v1621_v19  ;;  %v9980_v36 = vcombine.low %v1869_v54, %v1877_v24  ;;  %v5202_v6 = vld [vmem:[%s11060_s28 + $0x20] sm:$0xff] }
 0x2d4   : > { %v5165_v57 = vadd.f32 %v4826_v42, %v1421_v39  ;;  %v9997_v38 = vcombine.high %v1885_v13, %v1893_v34  ;;  %v1645_v39 = vld [vmem:[%s11055_s25 + $0x6b8] sm:$0xff]  ;;  %v9740_v42 = vcombine.low %v1629_v32, %v1637_v33  ;;  %v9996_v43 = vcombine.low %v1885_v13, %v1893_v34  ;;  %v5326_v8 = vld [vmem:[%s11060_s28 + $0x400] sm:$0xff] }
 0x2d5   : > { %5180 = vst [vmem:[#allocation2 + $0x30] sm:$0xff] %v5164_v47  ;;  %5089 = vmatpush1.bf16.msra.mxu0 %v9644_v41  ;;  %v1653_v58 = vld [vmem:[%s11055_s25 + $0x6f8] sm:$0xff]  ;;  %v11806_v49 = vsub.s32 5, %v11296_v22  ;;  %v10047_v18 = vcombine.high %v5198_v5, %v5202_v6  ;;  %v5206_v24 = vld [vmem:[%s11060_s28 + $0x40] sm:$0xff] }
 0x2d6   : > { %5181 = vst [vmem:[#allocation2 + $0x38] sm:$0xff] %v5165_v57  ;;  %5130 = vmatpush1.bf16.msra.mxu1 %v9900_v45  ;;  %5090 = vmatprep.subr.bf16.mxu0 %v9661_v46  ;;  %v1901_v40 = vld [vmem:[%s11055_s25 + $0xeb8] sm:$0xff]  ;;  %v9757_v44 = vcombine.high %v1645_v39, %v1653_v58  ;;  %v9756_v57 = vcombine.low %v1645_v39, %v1653_v58  ;;  %v5214_v33 = vld [vmem:[%s11060_s28 + $0x80] sm:$0xff] }
 0x2d7   : > { %5131 = vmatprep.subr.bf16.mxu1 %v9917_v50  ;;  %v1909_v41 = vld [vmem:[%s11055_s25 + $0xef8] sm:$0xff]  ;;  %v5218_v13 = vld [vmem:[%s11060_s28 + $0xa0] sm:$0xff] }
 0x2d8   : > { %v10013_v45 = vcombine.high %v1901_v40, %v1909_v41  ;;  %v1661_v46 = vld [vmem:[%s11055_s25 + $0x738] sm:$0xff]  ;;  %v10012_v59 = vcombine.low %v1901_v40, %v1909_v41  ;;  %v10063_v40 = vcombine.high %v5214_v33, %v5218_v13  ;;  %v5222_v41 = vld [vmem:[%s11060_s28 + $0xc0] sm:$0xff] }
 0x2d9   : > { %5091 = vmatpush1.bf16.msra.mxu0 %v9660_v48  ;;  %v1669_v47 = vld [vmem:[%s11055_s25 + $0x778] sm:$0xff] }
 0x2da   : > { %5132 = vmatpush1.bf16.msra.mxu1 %v9916_v61  ;;  %5092 = vmatprep.subr.bf16.mxu0 %v9677_v52  ;;  %v1917_v50 = vld [vmem:[%s11055_s25 + $0xf38] sm:$0xff]  ;;  %v9773_v60 = vcombine.high %v1661_v46, %v1669_v47 }
 0x2db   : > { %5133 = vmatprep.subr.bf16.mxu1 %v9933_v63  ;;  %v10029_v48 = vcombine.high %v1917_v50, %v1925_v55  ;;  %v1677_v61 = vld [vmem:[%s11055_s25 + $0x7b8] sm:$0xff]  ;;  %v11816_v63 = vld [vmem:[%s11050_s20] sm:$0xff] }
 0x2dc   : > { %v1685_v52 = vld [vmem:[%s11055_s25 + $0x7f8] sm:$0xff]  ;;  %v570_v0 = vrot.slane %v11816_v63, %v11806_v49  ;;  %v578_v12 = vrot.slane %v11816_v63, %v11811_v56 }
 0x2dd   : > { %5093 = vmatpush1.bf16.msra.mxu0 %v9676_v16  ;;  %v9772_v16 = vcombine.low %v1661_v46, %v1669_v47 }
 0x2de   : > { %5134 = vmatpush1.bf16.msra.mxu1 %v9932_v21  ;;  %5094 = vmatprep.subr.bf16.mxu0 %v9693_v3  ;;  %v10028_v21 = vcombine.low %v1917_v50, %v1925_v55  ;;  %v9789_v3 = vcombine.high %v1677_v61, %v1685_v52  ;;  %v1353_v7 = vadd.f32 %v11403_v2, %v570_v0  ;;  %v5230_v50 = vld [vmem:[%s11060_s28 + $0x100] sm:$0xff] }
 0x2df   : > { %5135 = vmatprep.subr.bf16.mxu1 %v9949_v4  ;;  %v10045_v4 = vcombine.high %v1933_v10, %v1941_v20  ;;  %v5234_v55 = vld [vmem:[%s11060_s28 + $0x120] sm:$0xff] }
 0x2e0   : > { %v1403_v54 = vmax.f32 %v1353_v7, 0.0  ;;  %v5238_v0 = vld [vmem:[%s11060_s28 + $0x140] sm:$0xff] }
 0x2e1   : > { %5095 = vmatpush1.bf16.msra.mxu0 %v9692_v9  ;;  %v5330_v9 = vld [vmem:[%s11060_s28 + $0x420] sm:$0xff] }
 0x2e2   : > { %5136 = vmatpush1.bf16.msra.mxu1 %v9948_v14  ;;  %5096 = vmatprep.subr.bf16.mxu0 %v9709_v15  ;;  %v1394_v14 = vadd.f32 %v11405_v11, %v578_v12  ;;  %v9788_v15 = vcombine.low %v1677_v61, %v1685_v52  ;;  %v10175_v19 = vcombine.high %v5326_v8, %v5330_v9  ;;  %v5334_v11 = vld [vmem:[%s11060_s28 + $0x440] sm:$0xff] }
 0x2e3   : > { %5137 = vmatprep.subr.bf16.mxu1 %v9965_v17  ;;  %v10044_v17 = vcombine.low %v1933_v10, %v1941_v20  ;;  %v11836_v34 = vpack.c.bf16 %v1403_v54, %v1403_v54  ;;  %v10079_v61 = vcombine.high %v5230_v50, %v5234_v55  ;;  %v5242_v10 = vld [vmem:[%s11060_s28 + $0x160] sm:$0xff] }
 0x2e4   : > { %v1405_v2 = vmax.f32 %v1394_v14, 0.0  ;;  %v5366_v20 = vld [vmem:[%s11060_s28 + $0x540] sm:$0xff] }
 0x2e5   : > { %5097 = vmatpush1.bf16.msra.mxu0 %v9708_v28  ;;  %v5210_v28 = vld [vmem:[%s11060_s28 + $0x60] sm:$0xff] }
 0x2e6   : > { %5138 = vmatpush1.bf16.msra.mxu1 %v9964_v29  ;;  %5098 = vmatprep.subr.bf16.mxu0 %v9725_v30  ;;  %v10046_v29 = vcombine.low %v5198_v5, %v5202_v6  ;;  %v5338_v30 = vld [vmem:[%s11060_s28 + $0x460] sm:$0xff]  ;;  %v10055_v32 = vcombine.high %v5206_v24, %v5210_v28  ;;  %v10054_v39 = vcombine.low %v5206_v24, %v5210_v28 }
 0x2e7   : > { %5139 = vmatprep.subr.bf16.mxu1 %v9981_v31  ;;  %v10174_v31 = vcombine.low %v5326_v8, %v5330_v9  ;;  %v10182_v58 = vcombine.low %v5334_v11, %v5338_v30  ;;  %v5370_v12 = vld [vmem:[%s11060_s28 + $0x560] sm:$0xff]  ;;  %v10086_v9 = vcombine.low %v5238_v0, %v5242_v10 }
 0x2e8   : > { %v5246_v5 = vld [vmem:[%s11060_s28 + $0x180] sm:$0xff]  ;;  %v10214_v14 = vcombine.low %v5366_v20, %v5370_v12 }
 0x2e9   : > { %5099 = vmatpush1.bf16.msra.mxu0 %v9724_v35  ;;  %v10183_v35 = vcombine.high %v5334_v11, %v5338_v30  ;;  %v5250_v6 = vld [vmem:[%s11060_s28 + $0x1a0] sm:$0xff] }
 0x2ea   : > { %5140 = vmatpush1.bf16.msra.mxu1 %v9980_v36  ;;  %5100 = vmatprep.subr.bf16.mxu0 %v9741_v37  ;;  %v5342_v36 = vld [vmem:[%s11060_s28 + $0x480] sm:$0xff] }
 0x2eb   : > { %5141 = vmatprep.subr.bf16.mxu1 %v9997_v38  ;;  %v5346_v37 = vld [vmem:[%s11060_s28 + $0x4a0] sm:$0xff]  ;;  %v11841_v38 = vpack.c.bf16 %v1405_v2, %v1405_v2 }
 0x2ec   : > { %v5374_v7 = vld [vmem:[%s11060_s28 + $0x580] sm:$0xff] }
 0x2ed   : > { %5101 = vmatpush1.bf16.msra.mxu0 %v9740_v42  ;;  %v5226_v42 = vld [vmem:[%s11060_s28 + $0xe0] sm:$0xff] }
 0x2ee   : > { %5142 = vmatpush1.bf16.msra.mxu1 %v9996_v43  ;;  %5102 = vmatprep.subr.bf16.mxu0 %v9757_v44  ;;  %v5350_v43 = vld [vmem:[%s11060_s28 + $0x4c0] sm:$0xff]  ;;  %v10062_v44 = vcombine.low %v5214_v33, %v5218_v13  ;;  %v10071_v46 = vcombine.high %v5222_v41, %v5226_v42  ;;  %v10094_v13 = vcombine.low %v5246_v5, %v5250_v6 }
 0x2ef   : > { %5143 = vmatprep.subr.bf16.mxu1 %v10013_v45  ;;  %v10190_v45 = vcombine.low %v5342_v36, %v5346_v37  ;;  %v5378_v8 = vld [vmem:[%s11060_s28 + $0x5a0] sm:$0xff] }
 0x2f0   : > { %v5258_v54 = vld [vmem:[%s11060_s28 + $0x1e0] sm:$0xff] }
 0x2f1   : > { %5103 = vmatpush1.bf16.msra.mxu0 %v9756_v57  ;;  %v5358_v57 = vld [vmem:[%s11060_s28 + $0x500] sm:$0xff] }
 0x2f2   : > { %5144 = vmatpush1.bf16.msra.mxu1 %v10012_v59  ;;  %5104 = vmatprep.subr.bf16.mxu0 %v9773_v60  ;;  %v5362_v59 = vld [vmem:[%s11060_s28 + $0x520] sm:$0xff]  ;;  %v10070_v60 = vcombine.low %v5222_v41, %v5226_v42 }
 0x2f3   : > { %5145 = vmatprep.subr.bf16.mxu1 %v10029_v48  ;;  %v10207_v52 = vcombine.high %v5358_v57, %v5362_v59  ;;  %v1422_v24 = vld [vmem:[#allocation2 + $0x40] sm:$0xff] }
 0x2f4   : > { %v5386_v11 = vld [vmem:[%s11060_s28 + $0x5e0] sm:$0xff] }
 0x2f5   : > { %5105 = vmatpush1.bf16.msra.mxu0 %v9772_v16  ;;  %v10078_v16 = vcombine.low %v5230_v50, %v5234_v55  ;;  %v5262_v42 = vld [vmem:[%s11060_s28 + $0x200] sm:$0xff] }
 0x2f6   : > { %5146 = vmatpush1.bf16.msra.mxu1 %v10028_v21  ;;  %5106 = vmatprep.subr.bf16.mxu0 %v9789_v3  ;;  %v10206_v21 = vcombine.low %v5358_v57, %v5362_v59  ;;  %v10087_v3 = vcombine.high %v5238_v0, %v5242_v10  ;;  %v5270_v57 = vld [vmem:[%s11060_s28 + $0x240] sm:$0xff] }
 0x2f7   : > { %5147 = vmatprep.subr.bf16.mxu1 %v10045_v4  ;;  %v10215_v4 = vcombine.high %v5366_v20, %v5370_v12  ;;  %v5274_v59 = vld [vmem:[%s11060_s28 + $0x260] sm:$0xff] }
 0x2f8   : > { %v10119_v0 = vcombine.high %v5270_v57, %v5274_v59  ;;  %v5278_v20 = vld [vmem:[%s11060_s28 + $0x280] sm:$0xff] }
 0x2f9   : > { %5107 = vmatpush1.bf16.msra.mxu0 %v9788_v15  ;;  %v10095_v15 = vcombine.high %v5246_v5, %v5250_v6  ;;  %v5282_v12 = vld [vmem:[%s11060_s28 + $0x2a0] sm:$0xff] }
 0x2fa   : > { %5148 = vmatpush1.bf16.msra.mxu1 %v10044_v17  ;;  %6734 = vmatprep.subr.bf16.mxu0 %v10047_v18  ;;  %v10223_v18 = vcombine.high %v5374_v7, %v5378_v8  ;;  %v10127_v5 = vcombine.high %v5278_v20, %v5282_v12 }
 0x2fb   : > { %6775 = vmatprep.subr.bf16.mxu1 %v10175_v19  ;;  %v5254_v19 = vld [vmem:[%s11060_s28 + $0x1c0] sm:$0xff] }
 0x2fc   : > { %5109 = vmatmul.mubr.bf16.vlgmr.msra.gmra.mrb[36].mxu0 %v11321_v51  ;;  %v10191_v51 = vcombine.high %v5342_v36, %v5346_v37 }
 0x2fd   : > { %5150 = vmatmul.mubr.bf16.vlgmr.msra.gmra.mrb[36].mxu1 %v11325_v53  ;;  %6735 = vmatpush1.bf16.msra.mxu0 %v10046_v29  ;;  %v5354_v53 = vld [vmem:[%s11060_s28 + $0x4e0] sm:$0xff] }
 0x2fe   : > { %6766 = vmatprep.mubr.bf16.mxu0 %v11836_v34  ;;  %6776 = vmatpush1.bf16.msra.mxu1 %v10174_v31  ;;  %v10199_v47 = vcombine.high %v5350_v43, %v5354_v53  ;;  %v10198_v48 = vcombine.low %v5350_v43, %v5354_v53  ;;  %v5382_v29 = vld [vmem:[%s11060_s28 + $0x5c0] sm:$0xff]  ;;  %v1423_v31 = vld [vmem:[#allocation2 + $0x48] sm:$0xff] }
 0x2ff   : > { %6807 = vmatprep.mubr.bf16.mxu1 %v11841_v38  ;;  %6736 = vmatprep.subr.bf16.mxu0 %v10055_v32  ;;  %v10231_v41 = vcombine.high %v5382_v29, %v5386_v11  ;;  %v5266_v43 = vld [vmem:[%s11060_s28 + $0x220] sm:$0xff] }
 0x300   : > { %6777 = vmatprep.subr.bf16.mxu1 %v10183_v35  ;;  %v10111_v50 = vcombine.high %v5262_v42, %v5266_v43 }
 0x301   : > { %6737 = vmatpush1.bf16.msra.mxu0 %v10054_v39  ;;  %v10222_v39 = vcombine.low %v5374_v7, %v5378_v8  ;;  %v5286_v7 = vld [vmem:[%s11060_s28 + $0x2c0] sm:$0xff] }
 0x302   : > { %6778 = vmatpush1.bf16.msra.mxu1 %v10182_v58  ;;  %6738 = vmatprep.subr.bf16.mxu0 %v10063_v40  ;;  %v10103_v58 = vcombine.high %v5254_v19, %v5258_v54  ;;  %v5290_v8 = vld [vmem:[%s11060_s28 + $0x2e0] sm:$0xff] }
 0x303   : > { %6779 = vmatprep.subr.bf16.mxu1 %v10191_v51 }
 0x305   : > { %6739 = vmatpush1.bf16.msra.mxu0 %v10062_v44  ;;  %v5390_v44 = vld [vmem:[%s11060_s28 + $0x600] sm:$0xff] }
 0x306   : > { %6780 = vmatpush1.bf16.msra.mxu1 %v10190_v45  ;;  %6740 = vmatprep.subr.bf16.mxu0 %v10071_v46  ;;  %v5394_v45 = vld [vmem:[%s11060_s28 + $0x620] sm:$0xff]  ;;  %v10102_v46 = vcombine.low %v5254_v19, %v5258_v54 }
 0x307   : > { %6781 = vmatprep.subr.bf16.mxu1 %v10199_v47  ;;  %v10230_v47 = vcombine.low %v5382_v29, %v5386_v11  ;;  %v10239_v55 = vcombine.high %v5390_v44, %v5394_v45  ;;  %v5294_v54 = vld [vmem:[%s11060_s28 + $0x300] sm:$0xff]  ;;  %v10134_v29 = vcombine.low %v5286_v7, %v5290_v8 }
 0x309   : > { %6741 = vmatpush1.bf16.msra.mxu0 %v10070_v60  ;;  %v5398_v60 = vld [vmem:[%s11060_s28 + $0x640] sm:$0xff] }
 0x30a   : > { %6782 = vmatpush1.bf16.msra.mxu1 %v10198_v48  ;;  %6742 = vmatprep.subr.bf16.mxu0 %v10079_v61  ;;  %v5402_v48 = vld [vmem:[%s11060_s28 + $0x660] sm:$0xff]  ;;  %v10110_v61 = vcombine.low %v5262_v42, %v5266_v43 }
 0x30b   : > { %6783 = vmatprep.subr.bf16.mxu1 %v10207_v52  ;;  %v10238_v52 = vcombine.low %v5390_v44, %v5394_v45  ;;  %v10247_v10 = vcombine.high %v5398_v60, %v5402_v48  ;;  %v5314_v42 = vld [vmem:[%s11060_s28 + $0x3a0] sm:$0xff] }
 0x30c   : > { %v5438_v43 = vld [vmem:[%s11060_s28 + $0x780] sm:$0xff] }
 0x30d   : > { %6743 = vmatpush1.bf16.msra.mxu0 %v10078_v16  ;;  %v5406_v16 = vld [vmem:[%s11060_s28 + $0x680] sm:$0xff] }
 0x30e   : > { %6784 = vmatpush1.bf16.msra.mxu1 %v10206_v21  ;;  %6744 = vmatprep.subr.bf16.mxu0 %v10087_v3  ;;  %v5410_v21 = vld [vmem:[%s11060_s28 + $0x6a0] sm:$0xff]  ;;  %v10118_v3 = vcombine.low %v5270_v57, %v5274_v59 }
 0x30f   : > { %v4864_v17 = vpop.f32.mrb[24].mxu0  ;;  %6785 = vmatprep.subr.bf16.mxu1 %v10215_v4  ;;  %v10246_v4 = vcombine.low %v5398_v60, %v5402_v48  ;;  %v10255_v6 = vcombine.high %v5406_v16, %v5410_v21  ;;  %v5322_v57 = vld [vmem:[%s11060_s28 + $0x3e0] sm:$0xff] }
 0x310   : > { %v4905_v28 = vpop.f32.mrb[24].mxu1  ;;  %v4866_v2 = vpop.f32.mrb[25].mxu0  ;;  %v5446_v59 = vld [vmem:[%s11060_s28 + $0x7c0] sm:$0xff] }
 0x311   : > { %v4906_v30 = vadd.f32 %v4905_v28, %v4864_v17  ;;  %v4907_v32 = vpop.f32.mrb[25].mxu1  ;;  %v4868_v33 = vpop.f32.mrb[26].mxu0  ;;  %6745 = vmatpush1.bf16.msra.mxu0 %v10086_v9  ;;  %v5414_v9 = vld [vmem:[%s11060_s28 + $0x6c0] sm:$0xff]  ;;  %v10254_v17 = vcombine.low %v5406_v16, %v5410_v21  ;;  %v5327_v16 = vld [vmem:[%s11060_s28 + $0x408] sm:$0xff] }
 0x312   : > { %v4908_v35 = vadd.f32 %v4907_v32, %v4866_v2  ;;  %v4909_v36 = vpop.f32.mrb[26].mxu1  ;;  %6786 = vmatpush1.bf16.msra.mxu1 %v10214_v14  ;;  %v4869_v37 = vpop.f32.mrb[27].mxu0  ;;  %6746 = vmatprep.subr.bf16.mxu0 %v10095_v15  ;;  %v5418_v14 = vld [vmem:[%s11060_s28 + $0x6e0] sm:$0xff]  ;;  %v10126_v15 = vcombine.low %v5278_v20, %v5282_v12  ;;  %v5199_v20 = vld [vmem:[%s11060_s28 + $0x8] sm:$0xff] }
 0x313   : > { %v5166_v40 = vadd.f32 %v4906_v30, %v1422_v24  ;;  %v4910_v51 = vpop.f32.mrb[27].mxu1  ;;  %6787 = vmatprep.subr.bf16.mxu1 %v10223_v18  ;;  %v10135_v18 = vcombine.high %v5286_v7, %v5290_v8  ;;  %v10263_v19 = vcombine.high %v5414_v9, %v5418_v14  ;;  %v5298_v24 = vld [vmem:[%s11060_s28 + $0x320] sm:$0xff]  ;;  %v10262_v11 = vcombine.low %v5414_v9, %v5418_v14  ;;  %v5203_v12 = vld [vmem:[%s11060_s28 + $0x28] sm:$0xff] }
 0x314   : > { %v5167_v53 = vadd.f32 %v4908_v35, %v1423_v31  ;;  %v5422_v28 = vld [vmem:[%s11060_s28 + $0x700] sm:$0xff]  ;;  %v10143_v30 = vcombine.high %v5294_v54, %v5298_v24  ;;  %v10142_v36 = vcombine.low %v5294_v54, %v5298_v24  ;;  %v11891_v37 = vsub.s32 4, %v11296_v22  ;;  %v5331_v21 = vld [vmem:[%s11060_s28 + $0x428] sm:$0xff] }
 0x315   : > { %5182 = vst [vmem:[#allocation2 + $0x40] sm:$0xff] %v5166_v40  ;;  %6747 = vmatpush1.bf16.msra.mxu0 %v10094_v13  ;;  %v5426_v2 = vld [vmem:[%s11060_s28 + $0x720] sm:$0xff]  ;;  %v11894_v40 = vsub.s32 6, %v11296_v22  ;;  %v5207_v7 = vld [vmem:[%s11060_s28 + $0x48] sm:$0xff]  ;;  %v10048_v9 = vcombine.low %v5199_v20, %v5203_v12 }
 0x316   : > { %5183 = vst [vmem:[#allocation2 + $0x48] sm:$0xff] %v5167_v53  ;;  %6788 = vmatpush1.bf16.msra.mxu1 %v10222_v39  ;;  %6748 = vmatprep.subr.bf16.mxu0 %v10103_v58  ;;  %v10271_v31 = vcombine.high %v5422_v28, %v5426_v2  ;;  %v5302_v32 = vld [vmem:[%s11060_s28 + $0x340] sm:$0xff]  ;;  %v10270_v39 = vcombine.low %v5422_v28, %v5426_v2  ;;  %v5211_v8 = vld [vmem:[%s11060_s28 + $0x68] sm:$0xff] }
 0x317   : > { %6789 = vmatprep.subr.bf16.mxu1 %v10231_v41  ;;  %v5306_v33 = vld [vmem:[%s11060_s28 + $0x360] sm:$0xff]  ;;  %v566_v45 = vrot.slane %v11816_v63, %v11891_v37  ;;  %v5335_v14 = vld [vmem:[%s11060_s28 + $0x448] sm:$0xff]  ;;  %v10057_v54 = vcombine.high %v5207_v7, %v5211_v8 }
 0x318   : > { %v5430_v13 = vld [vmem:[%s11060_s28 + $0x740] sm:$0xff]  ;;  %v10151_v58 = vcombine.high %v5302_v32, %v5306_v33  ;;  %v10150_v44 = vcombine.low %v5302_v32, %v5306_v33  ;;  %v5215_v24 = vld [vmem:[%s11060_s28 + $0x88] sm:$0xff] }
 0x319   : > { %6749 = vmatpush1.bf16.msra.mxu0 %v10102_v46  ;;  %v5434_v35 = vld [vmem:[%s11060_s28 + $0x760] sm:$0xff]  ;;  %v5219_v28 = vld [vmem:[%s11060_s28 + $0xa8] sm:$0xff] }
 0x31a   : > { %6790 = vmatpush1.bf16.msra.mxu1 %v10230_v47  ;;  %6750 = vmatprep.subr.bf16.mxu0 %v10111_v50  ;;  %v10279_v51 = vcombine.high %v5430_v13, %v5434_v35  ;;  %v5310_v41 = vld [vmem:[%s11060_s28 + $0x380] sm:$0xff]  ;;  %v10278_v46 = vcombine.low %v5430_v13, %v5434_v35  ;;  %v574_v47 = vrot.slane %v11816_v63, %v11894_v40  ;;  %v5223_v13 = vld [vmem:[%s11060_s28 + $0xc8] sm:$0xff] }
 0x31b   : > { %6791 = vmatprep.subr.bf16.mxu1 %v10239_v55  ;;  %v5442_v53 = vld [vmem:[%s11060_s28 + $0x7a0] sm:$0xff]  ;;  %v10159_v22 = vcombine.high %v5310_v41, %v5314_v42  ;;  %v10158_v48 = vcombine.low %v5310_v41, %v5314_v42  ;;  %v10065_v32 = vcombine.high %v5215_v24, %v5219_v28  ;;  %v5227_v35 = vld [vmem:[%s11060_s28 + $0xe8] sm:$0xff] }
 0x31c   : > { %v10287_v50 = vcombine.high %v5438_v43, %v5442_v53  ;;  %v5318_v55 = vld [vmem:[%s11060_s28 + $0x3c0] sm:$0xff]  ;;  %v1392_v63 = vadd.f32 %v11401_v1, %v574_v47  ;;  %v10177_v1 = vcombine.high %v5327_v16, %v5331_v21  ;;  %v10073_v41 = vcombine.high %v5223_v13, %v5227_v35 }
 0x31d   : > { %6751 = vmatpush1.bf16.msra.mxu0 %v10110_v61  ;;  %v5450_v60 = vld [vmem:[%s11060_s28 + $0x7e0] sm:$0xff]  ;;  %v1351_v61 = vadd.f32 %v11397_v62, %v566_v45  ;;  %v5363_v45 = vld [vmem:[%s11060_s28 + $0x528] sm:$0xff] }
 0x31e   : > { %6792 = vmatpush1.bf16.msra.mxu1 %v10238_v52  ;;  %6752 = vmatprep.subr.bf16.mxu0 %v10119_v0  ;;  %v10286_v52 = vcombine.low %v5438_v43, %v5442_v53  ;;  %v10167_v0 = vcombine.high %v5318_v55, %v5322_v57  ;;  %v10294_v62 = vcombine.low %v5446_v59, %v5450_v60  ;;  %v5231_v43 = vld [vmem:[%s11060_s28 + $0x108] sm:$0xff] }
 0x31f   : > { %6793 = vmatprep.subr.bf16.mxu1 %v10247_v10  ;;  %v10295_v10 = vcombine.high %v5446_v59, %v5450_v60  ;;  %v5235_v53 = vld [vmem:[%s11060_s28 + $0x128] sm:$0xff] }
 0x320   : > { %v10081_v47 = vcombine.high %v5231_v43, %v5235_v53  ;;  %v5367_v59 = vld [vmem:[%s11060_s28 + $0x548] sm:$0xff] }
 0x321   : > { %6753 = vmatpush1.bf16.msra.mxu0 %v10118_v3  ;;  %v10166_v3 = vcombine.low %v5318_v55, %v5322_v57  ;;  %v5239_v55 = vld [vmem:[%s11060_s28 + $0x148] sm:$0xff] }
 0x322   : > { %6794 = vmatpush1.bf16.msra.mxu1 %v10246_v4  ;;  %6754 = vmatprep.subr.bf16.mxu0 %v10127_v5  ;;  %v1402_v4 = vmax.f32 %v1351_v61, 0.0  ;;  %v10049_v5 = vcombine.high %v5199_v20, %v5203_v12  ;;  %v5243_v57 = vld [vmem:[%s11060_s28 + $0x168] sm:$0xff] }
 0x323   : > { %6795 = vmatprep.subr.bf16.mxu1 %v10255_v6  ;;  %v1404_v6 = vmax.f32 %v1392_v63, 0.0  ;;  %v5371_v60 = vld [vmem:[%s11060_s28 + $0x568] sm:$0xff] }
 0x324   : > { %v5247_v63 = vld [vmem:[%s11060_s28 + $0x188] sm:$0xff] }
 0x325   : > { %6755 = vmatpush1.bf16.msra.mxu0 %v10126_v15  ;;  %v5339_v15 = vld [vmem:[%s11060_s28 + $0x468] sm:$0xff] }
 0x326   : > { %6796 = vmatpush1.bf16.msra.mxu1 %v10254_v17  ;;  %6756 = vmatprep.subr.bf16.mxu0 %v10135_v18  ;;  %v11918_v17 = vpack.c.bf16 %v1402_v4, %v1402_v4  ;;  %v10176_v18 = vcombine.low %v5327_v16, %v5331_v21  ;;  %v10185_v2 = vcombine.high %v5335_v14, %v5339_v15  ;;  %v5375_v20 = vld [vmem:[%s11060_s28 + $0x588] sm:$0xff] }
 0x327   : > { %6797 = vmatprep.subr.bf16.mxu1 %v10263_v19  ;;  %v11920_v19 = vpack.c.bf16 %v1404_v6, %v1404_v6  ;;  %v5379_v12 = vld [vmem:[%s11060_s28 + $0x5a8] sm:$0xff]  ;;  %v10088_v16 = vcombine.low %v5239_v55, %v5243_v57  ;;  %v10216_v21 = vcombine.low %v5367_v59, %v5371_v60 }
 0x328   : > { %v5259_v6 = vld [vmem:[%s11060_s28 + $0x1e8] sm:$0xff] }
 0x329   : > { %6757 = vmatpush1.bf16.msra.mxu0 %v10134_v29  ;;  %v5343_v29 = vld [vmem:[%s11060_s28 + $0x488] sm:$0xff] }
 0x32a   : > { %6798 = vmatpush1.bf16.msra.mxu1 %v10262_v11  ;;  %6758 = vmatprep.subr.bf16.mxu0 %v10143_v30  ;;  %v5347_v11 = vld [vmem:[%s11060_s28 + $0x4a8] sm:$0xff]  ;;  %v10056_v30 = vcombine.low %v5207_v7, %v5211_v8 }
 0x32b   : > { %6799 = vmatprep.subr.bf16.mxu1 %v10271_v31  ;;  %v10184_v31 = vcombine.low %v5335_v14, %v5339_v15  ;;  %v10193_v33 = vcombine.high %v5343_v29, %v5347_v11  ;;  %v5387_v14 = vld [vmem:[%s11060_s28 + $0x5e8] sm:$0xff] }
 0x32d   : > { %6759 = vmatpush1.bf16.msra.mxu0 %v10142_v36  ;;  %v5351_v36 = vld [vmem:[%s11060_s28 + $0x4c8] sm:$0xff] }
 0x32e   : > { %6800 = vmatpush1.bf16.msra.mxu1 %v10270_v39  ;;  %6760 = vmatprep.subr.bf16.mxu0 %v10151_v58  ;;  %v5355_v39 = vld [vmem:[%s11060_s28 + $0x4e8] sm:$0xff]  ;;  %v10064_v58 = vcombine.low %v5215_v24, %v5219_v28 }
 0x32f   : > { %6801 = vmatprep.subr.bf16.mxu1 %v10279_v51  ;;  %v10192_v51 = vcombine.low %v5343_v29, %v5347_v11  ;;  %v10201_v42 = vcombine.high %v5351_v36, %v5355_v39 }
 0x331   : > { %6761 = vmatpush1.bf16.msra.mxu0 %v10150_v44  ;;  %v5359_v44 = vld [vmem:[%s11060_s28 + $0x508] sm:$0xff] }
 0x332   : > { %6802 = vmatpush1.bf16.msra.mxu1 %v10278_v46  ;;  %6762 = vmatprep.subr.bf16.mxu0 %v10159_v22  ;;  %v10072_v46 = vcombine.low %v5223_v13, %v5227_v35  ;;  %v10200_v22 = vcombine.low %v5351_v36, %v5355_v39  ;;  %v10208_v61 = vcombine.low %v5359_v44, %v5363_v45  ;;  %v5263_v35 = vld [vmem:[%s11060_s28 + $0x208] sm:$0xff] }
 0x333   : > { %6803 = vmatprep.subr.bf16.mxu1 %v10287_v50  ;;  %v10209_v50 = vcombine.high %v5359_v44, %v5363_v45  ;;  %v5267_v36 = vld [vmem:[%s11060_s28 + $0x228] sm:$0xff] }
 0x334   : > { %v5271_v44 = vld [vmem:[%s11060_s28 + $0x248] sm:$0xff] }
 0x335   : > { %6763 = vmatpush1.bf16.msra.mxu0 %v10158_v48  ;;  %v10080_v48 = vcombine.low %v5231_v43, %v5235_v53  ;;  %v10113_v43 = vcombine.high %v5263_v35, %v5267_v36  ;;  %v5275_v45 = vld [vmem:[%s11060_s28 + $0x268] sm:$0xff] }
 0x336   : > { %6804 = vmatpush1.bf16.msra.mxu1 %v10286_v52  ;;  %6764 = vmatprep.subr.bf16.mxu0 %v10167_v0  ;;  %v10089_v52 = vcombine.high %v5239_v55, %v5243_v57  ;;  %v10217_v0 = vcombine.high %v5367_v59, %v5371_v60  ;;  %v10121_v55 = vcombine.high %v5271_v44, %v5275_v45  ;;  %v5279_v59 = vld [vmem:[%s11060_s28 + $0x288] sm:$0xff] }
 0x337   : > { %6805 = vmatprep.subr.bf16.mxu1 %v10295_v10  ;;  %v5251_v10 = vld [vmem:[%s11060_s28 + $0x1a8] sm:$0xff] }
 0x338   : > { %v10096_v28 = vcombine.low %v5247_v63, %v5251_v10  ;;  %v5283_v60 = vld [vmem:[%s11060_s28 + $0x2a8] sm:$0xff] }
 0x339   : > { %6765 = vmatpush1.bf16.msra.mxu0 %v10166_v3  ;;  %v10097_v3 = vcombine.high %v5247_v63, %v5251_v10  ;;  %v10129_v63 = vcombine.high %v5279_v59, %v5283_v60 }
 0x33a   : > { %6806 = vmatpush1.bf16.msra.mxu1 %v10294_v62  ;;  %6816 = vmatprep.subr.bf16.mxu0 %v10049_v5  ;;  %v10225_v62 = vcombine.high %v5375_v20, %v5379_v12  ;;  %v5255_v5 = vld [vmem:[%s11060_s28 + $0x1c8] sm:$0xff] }
 0x33b   : > { %6857 = vmatprep.subr.bf16.mxu1 %v10177_v1  ;;  %v1424_v1 = vld [vmem:[#allocation2 + $0x50] sm:$0xff] }
 0x33c   : > { %6767 = vmatmul.mubr.bf16.vlgmr.msra.gmra.mrb[40].mxu0 %v11918_v17 }
 0x33d   : > { %6808 = vmatmul.mubr.bf16.vlgmr.msra.gmra.mrb[40].mxu1 %v11920_v19  ;;  %6817 = vmatpush1.bf16.msra.mxu0 %v10048_v9  ;;  %v5383_v9 = vld [vmem:[%s11060_s28 + $0x5c8] sm:$0xff] }
 0x33e   : > { %6848 = vmatprep.mubr.bf16.mxu0 %v11836_v34  ;;  %6858 = vmatpush1.bf16.msra.mxu1 %v10176_v18  ;;  %v1425_v18 = vld [vmem:[#allocation2 + $0x58] sm:$0xff]  ;;  %v10233_v13 = vcombine.high %v5383_v9, %v5387_v14 }
 0x33f   : > { %6889 = vmatprep.mubr.bf16.mxu1 %v11841_v38  ;;  %6818 = vmatprep.subr.bf16.mxu0 %v10057_v54 }
 0x340   : > { %6859 = vmatprep.subr.bf16.mxu1 %v10185_v2 }
 0x341   : > { %6819 = vmatpush1.bf16.msra.mxu0 %v10056_v30  ;;  %v10224_v30 = vcombine.low %v5375_v20, %v5379_v12  ;;  %v5287_v20 = vld [vmem:[%s11060_s28 + $0x2c8] sm:$0xff] }
 0x342   : > { %6860 = vmatpush1.bf16.msra.mxu1 %v10184_v31  ;;  %6820 = vmatprep.subr.bf16.mxu0 %v10065_v32  ;;  %v10105_v31 = vcombine.high %v5255_v5, %v5259_v6  ;;  %v5291_v12 = vld [vmem:[%s11060_s28 + $0x2e8] sm:$0xff] }
 0x343   : > { %6861 = vmatprep.subr.bf16.mxu1 %v10193_v33 }
 0x345   : > { %6821 = vmatpush1.bf16.msra.mxu0 %v10064_v58  ;;  %v5391_v58 = vld [vmem:[%s11060_s28 + $0x608] sm:$0xff] }
 0x346   : > { %6862 = vmatpush1.bf16.msra.mxu1 %v10192_v51  ;;  %6822 = vmatprep.subr.bf16.mxu0 %v10073_v41  ;;  %v5395_v51 = vld [vmem:[%s11060_s28 + $0x628] sm:$0xff]  ;;  %v10104_v41 = vcombine.low %v5255_v5, %v5259_v6 }
 0x347   : > { %6863 = vmatprep.subr.bf16.mxu1 %v10201_v42  ;;  %v10232_v42 = vcombine.low %v5383_v9, %v5387_v14  ;;  %v10241_v53 = vcombine.high %v5391_v58, %v5395_v51  ;;  %v5295_v6 = vld [vmem:[%s11060_s28 + $0x308] sm:$0xff]  ;;  %v10136_v9 = vcombine.low %v5287_v20, %v5291_v12 }
 0x349   : > { %6823 = vmatpush1.bf16.msra.mxu0 %v10072_v46  ;;  %v5399_v46 = vld [vmem:[%s11060_s28 + $0x648] sm:$0xff] }
 0x34a   : > { %6864 = vmatpush1.bf16.msra.mxu1 %v10200_v22  ;;  %6824 = vmatprep.subr.bf16.mxu0 %v10081_v47  ;;  %v5403_v22 = vld [vmem:[%s11060_s28 + $0x668] sm:$0xff]  ;;  %v10112_v47 = vcombine.low %v5263_v35, %v5267_v36 }
 0x34b   : > { %6865 = vmatprep.subr.bf16.mxu1 %v10209_v50  ;;  %v10240_v50 = vcombine.low %v5391_v58, %v5395_v51  ;;  %v10249_v57 = vcombine.high %v5399_v46, %v5403_v22  ;;  %v5443_v35 = vld [vmem:[%s11060_s28 + $0x7a8] sm:$0xff] }
 0x34d   : > { %6825 = vmatpush1.bf16.msra.mxu0 %v10080_v48  ;;  %v5407_v48 = vld [vmem:[%s11060_s28 + $0x688] sm:$0xff] }
 0x34e   : > { %6866 = vmatpush1.bf16.msra.mxu1 %v10208_v61  ;;  %6826 = vmatprep.subr.bf16.mxu0 %v10089_v52  ;;  %v5411_v61 = vld [vmem:[%s11060_s28 + $0x6a8] sm:$0xff]  ;;  %v10120_v52 = vcombine.low %v5271_v44, %v5275_v45 }
 0x34f   : > { %v4946_v4 = vpop.f32.mrb[28].mxu0  ;;  %6867 = vmatprep.subr.bf16.mxu1 %v10217_v0  ;;  %v10248_v0 = vcombine.low %v5399_v46, %v5403_v22  ;;  %v10257_v10 = vcombine.high %v5407_v48, %v5411_v61 }
 0x350   : > { %v4987_v7 = vpop.f32.mrb[28].mxu1  ;;  %v4948_v8 = vpop.f32.mrb[29].mxu0 }
 0x351   : > { %v4988_v15 = vadd.f32 %v4987_v7, %v4946_v4  ;;  %v4989_v54 = vpop.f32.mrb[29].mxu1  ;;  %v4950_v24 = vpop.f32.mrb[30].mxu0  ;;  %6827 = vmatpush1.bf16.msra.mxu0 %v10088_v16  ;;  %v5415_v16 = vld [vmem:[%s11060_s28 + $0x6c8] sm:$0xff]  ;;  %v10256_v4 = vcombine.low %v5407_v48, %v5411_v61 }
 0x352   : > { %v4990_v2 = vadd.f32 %v4989_v54, %v4948_v8  ;;  %v4991_v29 = vpop.f32.mrb[30].mxu1  ;;  %6868 = vmatpush1.bf16.msra.mxu1 %v10216_v21  ;;  %v4951_v11 = vpop.f32.mrb[31].mxu0  ;;  %6828 = vmatprep.subr.bf16.mxu0 %v10097_v3  ;;  %v5419_v21 = vld [vmem:[%s11060_s28 + $0x6e8] sm:$0xff]  ;;  %v10128_v3 = vcombine.low %v5279_v59, %v5283_v60 }
 0x353   : > { %v5168_v32 = vadd.f32 %v4988_v15, %v1424_v1  ;;  %v4992_v33 = vpop.f32.mrb[31].mxu1  ;;  %6869 = vmatprep.subr.bf16.mxu1 %v10225_v62  ;;  %v10137_v62 = vcombine.high %v5287_v20, %v5291_v12  ;;  %v10265_v5 = vcombine.high %v5415_v16, %v5419_v21  ;;  %v5299_v1 = vld [vmem:[%s11060_s28 + $0x328] sm:$0xff]  ;;  %v10264_v14 = vcombine.low %v5415_v16, %v5419_v21  ;;  %v5340_v20 = vld [vmem:[%s11060_s28 + $0x470] sm:$0xff] }
 0x354   : > { %v5169_v39 = vadd.f32 %v4990_v2, %v1425_v18  ;;  %v5423_v7 = vld [vmem:[%s11060_s28 + $0x708] sm:$0xff]  ;;  %v10145_v15 = vcombine.high %v5295_v6, %v5299_v1  ;;  %v10144_v29 = vcombine.low %v5295_v6, %v5299_v1  ;;  %v5216_v21 = vld [vmem:[%s11060_s28 + $0x90] sm:$0xff] }
 0x355   : > { %5184 = vst [vmem:[#allocation2 + $0x50] sm:$0xff] %v5168_v32  ;;  %6829 = vmatpush1.bf16.msra.mxu0 %v10096_v28  ;;  %v5427_v8 = vld [vmem:[%s11060_s28 + $0x728] sm:$0xff] }
 0x356   : > { %5185 = vst [vmem:[#allocation2 + $0x58] sm:$0xff] %v5169_v39  ;;  %6870 = vmatpush1.bf16.msra.mxu1 %v10224_v30  ;;  %6830 = vmatprep.subr.bf16.mxu0 %v10105_v31  ;;  %v10273_v18 = vcombine.high %v5423_v7, %v5427_v8  ;;  %v5303_v54 = vld [vmem:[%s11060_s28 + $0x348] sm:$0xff]  ;;  %v10272_v11 = vcombine.low %v5423_v7, %v5427_v8 }
 0x357   : > { %6871 = vmatprep.subr.bf16.mxu1 %v10233_v13  ;;  %v5307_v24 = vld [vmem:[%s11060_s28 + $0x368] sm:$0xff] }
 0x358   : > { %v5431_v28 = vld [vmem:[%s11060_s28 + $0x748] sm:$0xff]  ;;  %v10153_v30 = vcombine.high %v5303_v54, %v5307_v24  ;;  %v10152_v36 = vcombine.low %v5303_v54, %v5307_v24 }
 0x359   : > { %6831 = vmatpush1.bf16.msra.mxu0 %v10104_v41  ;;  %v5435_v2 = vld [vmem:[%s11060_s28 + $0x768] sm:$0xff] }
 0x35a   : > { %6872 = vmatpush1.bf16.msra.mxu1 %v10232_v42  ;;  %6832 = vmatprep.subr.bf16.mxu0 %v10113_v43  ;;  %v10281_v31 = vcombine.high %v5431_v28, %v5435_v2  ;;  %v5311_v32 = vld [vmem:[%s11060_s28 + $0x388] sm:$0xff]  ;;  %v10280_v39 = vcombine.low %v5431_v28, %v5435_v2 }
 0x35b   : > { %6873 = vmatprep.subr.bf16.mxu1 %v10241_v53  ;;  %v5315_v33 = vld [vmem:[%s11060_s28 + $0x3a8] sm:$0xff] }
 0x35c   : > { %v5439_v13 = vld [vmem:[%s11060_s28 + $0x788] sm:$0xff]  ;;  %v10161_v58 = vcombine.high %v5311_v32, %v5315_v33  ;;  %v10160_v44 = vcombine.low %v5311_v32, %v5315_v33 }
 0x35d   : > { %6833 = vmatpush1.bf16.msra.mxu0 %v10112_v47  ;;  %v10289_v51 = vcombine.high %v5439_v13, %v5443_v35  ;;  %v5319_v41 = vld [vmem:[%s11060_s28 + $0x3c8] sm:$0xff]  ;;  %v10288_v45 = vcombine.low %v5439_v13, %v5443_v35  ;;  %v5200_v47 = vld [vmem:[%s11060_s28 + $0x10] sm:$0xff] }
 0x35e   : > { %6874 = vmatpush1.bf16.msra.mxu1 %v10240_v50  ;;  %6834 = vmatprep.subr.bf16.mxu0 %v10121_v55  ;;  %v5323_v42 = vld [vmem:[%s11060_s28 + $0x3e8] sm:$0xff]  ;;  %v5204_v50 = vld [vmem:[%s11060_s28 + $0x30] sm:$0xff] }
 0x35f   : > { %6875 = vmatprep.subr.bf16.mxu1 %v10249_v57  ;;  %v5447_v43 = vld [vmem:[%s11060_s28 + $0x7c8] sm:$0xff]  ;;  %v10169_v46 = vcombine.high %v5319_v41, %v5323_v42  ;;  %v5328_v55 = vld [vmem:[%s11060_s28 + $0x410] sm:$0xff]  ;;  %v10168_v59 = vcombine.low %v5319_v41, %v5323_v42  ;;  %v10051_v48 = vcombine.high %v5200_v47, %v5204_v50 }
 0x360   : > { %v5451_v53 = vld [vmem:[%s11060_s28 + $0x7e8] sm:$0xff]  ;;  %v5332_v57 = vld [vmem:[%s11060_s28 + $0x430] sm:$0xff] }
 0x361   : > { %6835 = vmatpush1.bf16.msra.mxu0 %v10120_v52  ;;  %v10297_v22 = vcombine.high %v5447_v43, %v5451_v53  ;;  %v10296_v60 = vcombine.low %v5447_v43, %v5451_v53  ;;  %v10179_v61 = vcombine.high %v5328_v55, %v5332_v57  ;;  %v5208_v52 = vld [vmem:[%s11060_s28 + $0x50] sm:$0xff]  ;;  %v10178_v12 = vcombine.low %v5328_v55, %v5332_v57 }
 0x362   : > { %6876 = vmatpush1.bf16.msra.mxu1 %v10248_v0  ;;  %6836 = vmatprep.subr.bf16.mxu0 %v10129_v63  ;;  %v5212_v0 = vld [vmem:[%s11060_s28 + $0x70] sm:$0xff]  ;;  %v10050_v63 = vcombine.low %v5200_v47, %v5204_v50 }
 0x363   : > { %6877 = vmatprep.subr.bf16.mxu1 %v10257_v10  ;;  %v5336_v10 = vld [vmem:[%s11060_s28 + $0x450] sm:$0xff]  ;;  %v10059_v16 = vcombine.high %v5208_v52, %v5212_v0  ;;  %v10058_v6 = vcombine.low %v5208_v52, %v5212_v0 }
 0x364   : > { %v10186_v1 = vcombine.low %v5336_v10, %v5340_v20 }
 0x365   : > { %6837 = vmatpush1.bf16.msra.mxu0 %v10128_v3  ;;  %v5220_v3 = vld [vmem:[%s11060_s28 + $0xb0] sm:$0xff] }
 0x366   : > { %6878 = vmatpush1.bf16.msra.mxu1 %v10256_v4  ;;  %6838 = vmatprep.subr.bf16.mxu0 %v10137_v62  ;;  %v10187_v4 = vcombine.high %v5336_v10, %v5340_v20  ;;  %v5344_v62 = vld [vmem:[%s11060_s28 + $0x490] sm:$0xff]  ;;  %v10067_v7 = vcombine.high %v5216_v21, %v5220_v3  ;;  %v10066_v54 = vcombine.low %v5216_v21, %v5220_v3 }
 0x367   : > { %6879 = vmatprep.subr.bf16.mxu1 %v10265_v5  ;;  %v5348_v5 = vld [vmem:[%s11060_s28 + $0x4b0] sm:$0xff] }
 0x368   : > { %v10195_v8 = vcombine.high %v5344_v62, %v5348_v5  ;;  %v10194_v24 = vcombine.low %v5344_v62, %v5348_v5  ;;  %v5388_v10 = vld [vmem:[%s11060_s28 + $0x5f0] sm:$0xff] }
 0x369   : > { %6839 = vmatpush1.bf16.msra.mxu0 %v10136_v9  ;;  %v5224_v9 = vld [vmem:[%s11060_s28 + $0xd0] sm:$0xff] }
 0x36a   : > { %6880 = vmatpush1.bf16.msra.mxu1 %v10264_v14  ;;  %6840 = vmatprep.subr.bf16.mxu0 %v10145_v15  ;;  %v5228_v14 = vld [vmem:[%s11060_s28 + $0xf0] sm:$0xff] }
 0x36b   : > { %6881 = vmatprep.subr.bf16.mxu1 %v10273_v18  ;;  %v5352_v15 = vld [vmem:[%s11060_s28 + $0x4d0] sm:$0xff]  ;;  %v10075_v28 = vcombine.high %v5224_v9, %v5228_v14  ;;  %v10074_v32 = vcombine.low %v5224_v9, %v5228_v14 }
 0x36c   : > { %v5356_v18 = vld [vmem:[%s11060_s28 + $0x4f0] sm:$0xff] }
 0x36d   : > { %6841 = vmatpush1.bf16.msra.mxu0 %v10144_v29  ;;  %v10203_v2 = vcombine.high %v5352_v15, %v5356_v18  ;;  %v5232_v29 = vld [vmem:[%s11060_s28 + $0x110] sm:$0xff]  ;;  %v10202_v33 = vcombine.low %v5352_v15, %v5356_v18 }
 0x36e   : > { %6882 = vmatpush1.bf16.msra.mxu1 %v10272_v11  ;;  %6842 = vmatprep.subr.bf16.mxu0 %v10153_v30  ;;  %v5236_v11 = vld [vmem:[%s11060_s28 + $0x130] sm:$0xff] }
 0x36f   : > { %6883 = vmatprep.subr.bf16.mxu1 %v10281_v31  ;;  %v5360_v30 = vld [vmem:[%s11060_s28 + $0x510] sm:$0xff]  ;;  %v10083_v13 = vcombine.high %v5232_v29, %v5236_v11  ;;  %v10082_v41 = vcombine.low %v5232_v29, %v5236_v11 }
 0x370   : > { %v5364_v31 = vld [vmem:[%s11060_s28 + $0x530] sm:$0xff] }
 0x371   : > { %6843 = vmatpush1.bf16.msra.mxu0 %v10152_v36  ;;  %v10211_v35 = vcombine.high %v5360_v30, %v5364_v31  ;;  %v5240_v36 = vld [vmem:[%s11060_s28 + $0x150] sm:$0xff]  ;;  %v10210_v42 = vcombine.low %v5360_v30, %v5364_v31 }
 0x372   : > { %6884 = vmatpush1.bf16.msra.mxu1 %v10280_v39  ;;  %6844 = vmatprep.subr.bf16.mxu0 %v10161_v58  ;;  %v5244_v39 = vld [vmem:[%s11060_s28 + $0x170] sm:$0xff] }
 0x373   : > { %6885 = vmatprep.subr.bf16.mxu1 %v10289_v51  ;;  %v5368_v58 = vld [vmem:[%s11060_s28 + $0x550] sm:$0xff]  ;;  %v10091_v43 = vcombine.high %v5240_v36, %v5244_v39  ;;  %v10090_v47 = vcombine.low %v5240_v36, %v5244_v39 }
 0x374   : > { %v5372_v51 = vld [vmem:[%s11060_s28 + $0x570] sm:$0xff] }
 0x375   : > { %6845 = vmatpush1.bf16.msra.mxu0 %v10160_v44  ;;  %v10219_v53 = vcombine.high %v5368_v58, %v5372_v51  ;;  %v5248_v44 = vld [vmem:[%s11060_s28 + $0x190] sm:$0xff]  ;;  %v10218_v50 = vcombine.low %v5368_v58, %v5372_v51 }
 0x376   : > { %6886 = vmatpush1.bf16.msra.mxu1 %v10288_v45  ;;  %6846 = vmatprep.subr.bf16.mxu0 %v10169_v46  ;;  %v5252_v45 = vld [vmem:[%s11060_s28 + $0x1b0] sm:$0xff] }
 0x377   : > { %6887 = vmatprep.subr.bf16.mxu1 %v10297_v22  ;;  %v5376_v46 = vld [vmem:[%s11060_s28 + $0x590] sm:$0xff]  ;;  %v10099_v55 = vcombine.high %v5248_v44, %v5252_v45  ;;  %v10098_v3 = vcombine.low %v5248_v44, %v5252_v45 }
 0x378   : > { %v5380_v22 = vld [vmem:[%s11060_s28 + $0x5b0] sm:$0xff] }
 0x379   : > { %6847 = vmatpush1.bf16.msra.mxu0 %v10168_v59  ;;  %v10227_v59 = vcombine.high %v5376_v46, %v5380_v22  ;;  %v5264_v14 = vld [vmem:[%s11060_s28 + $0x210] sm:$0xff] }
 0x37a   : > { %6888 = vmatpush1.bf16.msra.mxu1 %v10296_v60  ;;  %6898 = vmatprep.subr.bf16.mxu0 %v10051_v48  ;;  %v5256_v60 = vld [vmem:[%s11060_s28 + $0x1d0] sm:$0xff] }
 0x37b   : > { %6939 = vmatprep.subr.bf16.mxu1 %v10179_v61  ;;  %v5260_v48 = vld [vmem:[%s11060_s28 + $0x1f0] sm:$0xff]  ;;  %v1426_v61 = vld [vmem:[#allocation2 + $0x60] sm:$0xff] }
 0x37c   : > { %6849 = vmatmul.mubr.bf16.vlgmr.msra.gmra.mrb[44].mxu0 %v11918_v17  ;;  %v5268_v15 = vld [vmem:[%s11060_s28 + $0x230] sm:$0xff] }
 0x37d   : > { %6890 = vmatmul.mubr.bf16.vlgmr.msra.gmra.mrb[44].mxu1 %v11920_v19  ;;  %6899 = vmatpush1.bf16.msra.mxu0 %v10050_v63  ;;  %v5384_v63 = vld [vmem:[%s11060_s28 + $0x5d0] sm:$0xff]  ;;  %v10115_v29 = vcombine.high %v5264_v14, %v5268_v15 }
 0x37e   : > { %6930 = vmatprep.mubr.bf16.mxu0 %v11836_v34  ;;  %6940 = vmatpush1.bf16.msra.mxu1 %v10178_v12  ;;  %v1427_v12 = vld [vmem:[#allocation2 + $0x68] sm:$0xff]  ;;  %v10235_v9 = vcombine.high %v5384_v63, %v5388_v10  ;;  %v5272_v30 = vld [vmem:[%s11060_s28 + $0x250] sm:$0xff] }
 0x37f   : > { %6971 = vmatprep.mubr.bf16.mxu1 %v11841_v38  ;;  %6900 = vmatprep.subr.bf16.mxu0 %v10059_v16  ;;  %v5276_v31 = vld [vmem:[%s11060_s28 + $0x270] sm:$0xff] }
 0x380   : > { %6941 = vmatprep.subr.bf16.mxu1 %v10187_v4  ;;  %v10123_v36 = vcombine.high %v5272_v30, %v5276_v31  ;;  %v5280_v58 = vld [vmem:[%s11060_s28 + $0x290] sm:$0xff] }
 0x381   : > { %6901 = vmatpush1.bf16.msra.mxu0 %v10058_v6  ;;  %v10226_v6 = vcombine.low %v5376_v46, %v5380_v22  ;;  %v5284_v51 = vld [vmem:[%s11060_s28 + $0x2b0] sm:$0xff] }
 0x382   : > { %6942 = vmatpush1.bf16.msra.mxu1 %v10186_v1  ;;  %6902 = vmatprep.subr.bf16.mxu0 %v10067_v7  ;;  %v10107_v1 = vcombine.high %v5256_v60, %v5260_v48  ;;  %v10131_v44 = vcombine.high %v5280_v58, %v5284_v51  ;;  %v5288_v46 = vld [vmem:[%s11060_s28 + $0x2d0] sm:$0xff] }
 0x383   : > { %6943 = vmatprep.subr.bf16.mxu1 %v10195_v8  ;;  %v5292_v22 = vld [vmem:[%s11060_s28 + $0x2f0] sm:$0xff] }
 0x385   : > { %6903 = vmatpush1.bf16.msra.mxu0 %v10066_v54  ;;  %v5392_v54 = vld [vmem:[%s11060_s28 + $0x610] sm:$0xff] }
 0x386   : > { %6944 = vmatpush1.bf16.msra.mxu1 %v10194_v24  ;;  %6904 = vmatprep.subr.bf16.mxu0 %v10075_v28  ;;  %v5396_v24 = vld [vmem:[%s11060_s28 + $0x630] sm:$0xff]  ;;  %v10106_v28 = vcombine.low %v5256_v60, %v5260_v48 }
 0x387   : > { %6945 = vmatprep.subr.bf16.mxu1 %v10203_v2  ;;  %v10234_v2 = vcombine.low %v5384_v63, %v5388_v10  ;;  %v10243_v11 = vcombine.high %v5392_v54, %v5396_v24  ;;  %v5296_v48 = vld [vmem:[%s11060_s28 + $0x310] sm:$0xff]  ;;  %v10138_v63 = vcombine.low %v5288_v46, %v5292_v22 }
 0x389   : > { %6905 = vmatpush1.bf16.msra.mxu0 %v10074_v32  ;;  %v5400_v32 = vld [vmem:[%s11060_s28 + $0x650] sm:$0xff] }
 0x38a   : > { %6946 = vmatpush1.bf16.msra.mxu1 %v10202_v33  ;;  %6906 = vmatprep.subr.bf16.mxu0 %v10083_v13  ;;  %v5404_v33 = vld [vmem:[%s11060_s28 + $0x670] sm:$0xff]  ;;  %v10114_v13 = vcombine.low %v5264_v14, %v5268_v15 }
 0x38b   : > { %6947 = vmatprep.subr.bf16.mxu1 %v10211_v35  ;;  %v10242_v35 = vcombine.low %v5392_v54, %v5396_v24  ;;  %v10251_v39 = vcombine.high %v5400_v32, %v5404_v33  ;;  %v5444_v14 = vld [vmem:[%s11060_s28 + $0x7b0] sm:$0xff] }
 0x38d   : > { %6907 = vmatpush1.bf16.msra.mxu0 %v10082_v41  ;;  %v5408_v41 = vld [vmem:[%s11060_s28 + $0x690] sm:$0xff] }
 0x38e   : > { %6948 = vmatpush1.bf16.msra.mxu1 %v10210_v42  ;;  %6908 = vmatprep.subr.bf16.mxu0 %v10091_v43  ;;  %v5412_v42 = vld [vmem:[%s11060_s28 + $0x6b0] sm:$0xff]  ;;  %v10122_v43 = vcombine.low %v5272_v30, %v5276_v31 }
 0x38f   : > { %v5028_v57 = vpop.f32.mrb[32].mxu0  ;;  %6949 = vmatprep.subr.bf16.mxu1 %v10219_v53  ;;  %v10250_v53 = vcombine.low %v5400_v32, %v5404_v33  ;;  %v10259_v45 = vcombine.high %v5408_v41, %v5412_v42 }
 0x390   : > { %v5069_v52 = vpop.f32.mrb[32].mxu1  ;;  %v5030_v0 = vpop.f32.mrb[33].mxu0 }
 0x391   : > { %v5070_v20 = vadd.f32 %v5069_v52, %v5028_v57  ;;  %v5071_v16 = vpop.f32.mrb[33].mxu1  ;;  %v5032_v21 = vpop.f32.mrb[34].mxu0  ;;  %6909 = vmatpush1.bf16.msra.mxu0 %v10090_v47  ;;  %v5416_v47 = vld [vmem:[%s11060_s28 + $0x6d0] sm:$0xff]  ;;  %v10258_v57 = vcombine.low %v5408_v41, %v5412_v42 }
 0x392   : > { %v5072_v4 = vadd.f32 %v5071_v16, %v5030_v0  ;;  %v5073_v62 = vpop.f32.mrb[34].mxu1  ;;  %6950 = vmatpush1.bf16.msra.mxu1 %v10218_v50  ;;  %v5033_v5 = vpop.f32.mrb[35].mxu0  ;;  %6910 = vmatprep.subr.bf16.mxu0 %v10099_v55  ;;  %v5420_v50 = vld [vmem:[%s11060_s28 + $0x6f0] sm:$0xff]  ;;  %v10130_v55 = vcombine.low %v5280_v58, %v5284_v51 }
 0x393   : > { %v5170_v7 = vadd.f32 %v5070_v20, %v1426_v61  ;;  %v5074_v8 = vpop.f32.mrb[35].mxu1  ;;  %6951 = vmatprep.subr.bf16.mxu1 %v10227_v59  ;;  %v10139_v59 = vcombine.high %v5288_v46, %v5292_v22  ;;  %v10267_v60 = vcombine.high %v5416_v47, %v5420_v50  ;;  %v5300_v61 = vld [vmem:[%s11060_s28 + $0x330] sm:$0xff]  ;;  %v10266_v10 = vcombine.low %v5416_v47, %v5420_v50  ;;  %v5341_v46 = vld [vmem:[%s11060_s28 + $0x478] sm:$0xff] }
 0x394   : > { %v5171_v18 = vadd.f32 %v5072_v4, %v1427_v12  ;;  %v5424_v52 = vld [vmem:[%s11060_s28 + $0x710] sm:$0xff]  ;;  %v10147_v20 = vcombine.high %v5296_v48, %v5300_v61  ;;  %v10146_v62 = vcombine.low %v5296_v48, %v5300_v61  ;;  %v5217_v50 = vld [vmem:[%s11060_s28 + $0x98] sm:$0xff] }
 0x395   : > { %5186 = vst [vmem:[#allocation2 + $0x60] sm:$0xff] %v5170_v7  ;;  %6911 = vmatpush1.bf16.msra.mxu0 %v10098_v3  ;;  %v5428_v0 = vld [vmem:[%s11060_s28 + $0x730] sm:$0xff] }
 0x396   : > { %5187 = vst [vmem:[#allocation2 + $0x68] sm:$0xff] %v5171_v18  ;;  %6952 = vmatpush1.bf16.msra.mxu1 %v10226_v6  ;;  %6912 = vmatprep.subr.bf16.mxu0 %v10107_v1  ;;  %v10275_v12 = vcombine.high %v5424_v52, %v5428_v0  ;;  %v5304_v16 = vld [vmem:[%s11060_s28 + $0x350] sm:$0xff]  ;;  %v10274_v5 = vcombine.low %v5424_v52, %v5428_v0 }
 0x397   : > { %6953 = vmatprep.subr.bf16.mxu1 %v10235_v9  ;;  %v5308_v21 = vld [vmem:[%s11060_s28 + $0x370] sm:$0xff] }
 0x398   : > { %v5432_v3 = vld [vmem:[%s11060_s28 + $0x750] sm:$0xff]  ;;  %v10155_v6 = vcombine.high %v5304_v16, %v5308_v21  ;;  %v10154_v15 = vcombine.low %v5304_v16, %v5308_v21 }
 0x399   : > { %6913 = vmatpush1.bf16.msra.mxu0 %v10106_v28  ;;  %v5436_v4 = vld [vmem:[%s11060_s28 + $0x770] sm:$0xff] }
 0x39a   : > { %6954 = vmatpush1.bf16.msra.mxu1 %v10234_v2  ;;  %6914 = vmatprep.subr.bf16.mxu0 %v10115_v29  ;;  %v10283_v1 = vcombine.high %v5432_v3, %v5436_v4  ;;  %v5312_v7 = vld [vmem:[%s11060_s28 + $0x390] sm:$0xff]  ;;  %v10282_v18 = vcombine.low %v5432_v3, %v5436_v4  ;;  %v5233_v3 = vld [vmem:[%s11060_s28 + $0x118] sm:$0xff] }
 0x39b   : > { %6955 = vmatprep.subr.bf16.mxu1 %v10243_v11  ;;  %v5316_v8 = vld [vmem:[%s11060_s28 + $0x3b0] sm:$0xff]  ;;  %v5237_v4 = vld [vmem:[%s11060_s28 + $0x138] sm:$0xff] }
 0x39c   : > { %v5440_v9 = vld [vmem:[%s11060_s28 + $0x790] sm:$0xff]  ;;  %v10163_v54 = vcombine.high %v5312_v7, %v5316_v8  ;;  %v10162_v30 = vcombine.low %v5312_v7, %v5316_v8  ;;  %v10085_v7 = vcombine.high %v5233_v3, %v5237_v4 }
 0x39d   : > { %6915 = vmatpush1.bf16.msra.mxu0 %v10114_v13  ;;  %v10291_v24 = vcombine.high %v5440_v9, %v5444_v14  ;;  %v5320_v28 = vld [vmem:[%s11060_s28 + $0x3d0] sm:$0xff]  ;;  %v10290_v31 = vcombine.low %v5440_v9, %v5444_v14  ;;  %v5201_v13 = vld [vmem:[%s11060_s28 + $0x18] sm:$0xff] }
 0x39e   : > { %6956 = vmatpush1.bf16.msra.mxu1 %v10242_v35  ;;  %6916 = vmatprep.subr.bf16.mxu0 %v10123_v36  ;;  %v5324_v2 = vld [vmem:[%s11060_s28 + $0x3f0] sm:$0xff]  ;;  %v5205_v35 = vld [vmem:[%s11060_s28 + $0x38] sm:$0xff] }
 0x39f   : > { %6957 = vmatprep.subr.bf16.mxu1 %v10251_v39  ;;  %v5448_v29 = vld [vmem:[%s11060_s28 + $0x7d0] sm:$0xff]  ;;  %v10171_v32 = vcombine.high %v5320_v28, %v5324_v2  ;;  %v5329_v36 = vld [vmem:[%s11060_s28 + $0x418] sm:$0xff]  ;;  %v10170_v58 = vcombine.low %v5320_v28, %v5324_v2  ;;  %v10053_v41 = vcombine.high %v5201_v13, %v5205_v35 }
 0x3a0   : > { %v5452_v11 = vld [vmem:[%s11060_s28 + $0x7f0] sm:$0xff]  ;;  %v5333_v39 = vld [vmem:[%s11060_s28 + $0x438] sm:$0xff] }
 0x3a1   : > { %6917 = vmatpush1.bf16.msra.mxu0 %v10122_v43  ;;  %v10299_v33 = vcombine.high %v5448_v29, %v5452_v11  ;;  %v10298_v51 = vcombine.low %v5448_v29, %v5452_v11  ;;  %v10181_v42 = vcombine.high %v5329_v36, %v5333_v39  ;;  %v5209_v43 = vld [vmem:[%s11060_s28 + $0x58] sm:$0xff]  ;;  %v10180_v22 = vcombine.low %v5329_v36, %v5333_v39 }
 0x3a2   : > { %6958 = vmatpush1.bf16.msra.mxu1 %v10250_v53  ;;  %6918 = vmatprep.subr.bf16.mxu0 %v10131_v44  ;;  %v5213_v53 = vld [vmem:[%s11060_s28 + $0x78] sm:$0xff]  ;;  %v10052_v44 = vcombine.low %v5201_v13, %v5205_v35 }
 0x3a3   : > { %6959 = vmatprep.subr.bf16.mxu1 %v10259_v45  ;;  %v5337_v45 = vld [vmem:[%s11060_s28 + $0x458] sm:$0xff]  ;;  %v10061_v47 = vcombine.high %v5209_v43, %v5213_v53  ;;  %v10060_v48 = vcombine.low %v5209_v43, %v5213_v53 }
 0x3a4   : > { %v10188_v61 = vcombine.low %v5337_v45, %v5341_v46  ;;  %v5241_v9 = vld [vmem:[%s11060_s28 + $0x158] sm:$0xff] }
 0x3a5   : > { %6919 = vmatpush1.bf16.msra.mxu0 %v10130_v55  ;;  %v5221_v55 = vld [vmem:[%s11060_s28 + $0xb8] sm:$0xff] }
 0x3a6   : > { %6960 = vmatpush1.bf16.msra.mxu1 %v10258_v57  ;;  %6920 = vmatprep.subr.bf16.mxu0 %v10139_v59  ;;  %v10189_v57 = vcombine.high %v5337_v45, %v5341_v46  ;;  %v5345_v59 = vld [vmem:[%s11060_s28 + $0x498] sm:$0xff]  ;;  %v10069_v52 = vcombine.high %v5217_v50, %v5221_v55  ;;  %v10068_v16 = vcombine.low %v5217_v50, %v5221_v55 }
 0x3a7   : > { %6961 = vmatprep.subr.bf16.mxu1 %v10267_v60  ;;  %v5349_v60 = vld [vmem:[%s11060_s28 + $0x4b8] sm:$0xff] }
 0x3a8   : > { %v10197_v0 = vcombine.high %v5345_v59, %v5349_v60  ;;  %v5245_v14 = vld [vmem:[%s11060_s28 + $0x178] sm:$0xff] }
 0x3a9   : > { %6921 = vmatpush1.bf16.msra.mxu0 %v10138_v63  ;;  %v5225_v63 = vld [vmem:[%s11060_s28 + $0xd8] sm:$0xff]  ;;  %v10093_v28 = vcombine.high %v5241_v9, %v5245_v14 }
 0x3aa   : > { %6962 = vmatpush1.bf16.msra.mxu1 %v10266_v10  ;;  %6922 = vmatprep.subr.bf16.mxu0 %v10147_v20  ;;  %v5229_v10 = vld [vmem:[%s11060_s28 + $0xf8] sm:$0xff] }
 0x3ab   : > { %6963 = vmatprep.subr.bf16.mxu1 %v10275_v12  ;;  %v5353_v20 = vld [vmem:[%s11060_s28 + $0x4d8] sm:$0xff]  ;;  %v10077_v21 = vcombine.high %v5225_v63, %v5229_v10 }
 0x3ac   : > { %v5357_v12 = vld [vmem:[%s11060_s28 + $0x4f8] sm:$0xff] }
 0x3ad   : > { %6923 = vmatpush1.bf16.msra.mxu0 %v10146_v62  ;;  %v5361_v62 = vld [vmem:[%s11060_s28 + $0x518] sm:$0xff] }
 0x3ae   : > { %6964 = vmatpush1.bf16.msra.mxu1 %v10274_v5  ;;  %6924 = vmatprep.subr.bf16.mxu0 %v10155_v6  ;;  %v5365_v5 = vld [vmem:[%s11060_s28 + $0x538] sm:$0xff]  ;;  %v10076_v6 = vcombine.low %v5225_v63, %v5229_v10 }
 0x3af   : > { %6965 = vmatprep.subr.bf16.mxu1 %v10283_v1  ;;  %v10204_v1 = vcombine.low %v5353_v20, %v5357_v12  ;;  %v10213_v8 = vcombine.high %v5361_v62, %v5365_v5  ;;  %v5249_v29 = vld [vmem:[%s11060_s28 + $0x198] sm:$0xff] }
 0x3b0   : > { %v5253_v11 = vld [vmem:[%s11060_s28 + $0x1b8] sm:$0xff] }
 0x3b1   : > { %6925 = vmatpush1.bf16.msra.mxu0 %v10154_v15  ;;  %v5369_v15 = vld [vmem:[%s11060_s28 + $0x558] sm:$0xff]  ;;  %v10101_v13 = vcombine.high %v5249_v29, %v5253_v11 }
 0x3b2   : > { %6966 = vmatpush1.bf16.msra.mxu1 %v10282_v18  ;;  %6926 = vmatprep.subr.bf16.mxu0 %v10163_v54  ;;  %v5373_v18 = vld [vmem:[%s11060_s28 + $0x578] sm:$0xff]  ;;  %v10084_v54 = vcombine.low %v5233_v3, %v5237_v4 }
 0x3b3   : > { %6967 = vmatprep.subr.bf16.mxu1 %v10291_v24  ;;  %v10212_v24 = vcombine.low %v5361_v62, %v5365_v5  ;;  %v10221_v2 = vcombine.high %v5369_v15, %v5373_v18  ;;  %v5257_v39 = vld [vmem:[%s11060_s28 + $0x1d8] sm:$0xff] }
 0x3b4   : > { %v5385_v43 = vld [vmem:[%s11060_s28 + $0x5d8] sm:$0xff] }
 0x3b5   : > { %6927 = vmatpush1.bf16.msra.mxu0 %v10162_v30  ;;  %v5377_v30 = vld [vmem:[%s11060_s28 + $0x598] sm:$0xff] }
 0x3b6   : > { %6968 = vmatpush1.bf16.msra.mxu1 %v10290_v31  ;;  %6928 = vmatprep.subr.bf16.mxu0 %v10171_v32  ;;  %v5381_v31 = vld [vmem:[%s11060_s28 + $0x5b8] sm:$0xff]  ;;  %v10092_v32 = vcombine.low %v5241_v9, %v5245_v14 }
 0x3b7   : > { %6969 = vmatprep.subr.bf16.mxu1 %v10299_v33  ;;  %v10220_v33 = vcombine.low %v5369_v15, %v5373_v18  ;;  %v10229_v36 = vcombine.high %v5377_v30, %v5381_v31  ;;  %v5389_v53 = vld [vmem:[%s11060_s28 + $0x5f8] sm:$0xff] }
 0x3b8   : > { %v1429_v45 = vld [vmem:[#allocation2 + $0x78] sm:$0xff] }
 0x3b9   : > { %6929 = vmatpush1.bf16.msra.mxu0 %v10170_v58  ;;  %v5261_v58 = vld [vmem:[%s11060_s28 + $0x1f8] sm:$0xff] }
 0x3ba   : > { %6970 = vmatpush1.bf16.msra.mxu1 %v10298_v51  ;;  %6980 = vmatprep.subr.bf16.mxu0 %v10053_v41  ;;  %v1428_v51 = vld [vmem:[#allocation2 + $0x70] sm:$0xff]  ;;  %v5269_v63 = vld [vmem:[%s11060_s28 + $0x238] sm:$0xff] }
 0x3bb   : > { %7021 = vmatprep.subr.bf16.mxu1 %v10181_v42  ;;  %v5273_v3 = vld [vmem:[%s11060_s28 + $0x258] sm:$0xff] }
 0x3bc   : > { %6931 = vmatmul.mubr.bf16.vlgmr.msra.gmra.mrb[48].mxu0 %v11918_v17  ;;  %v5277_v4 = vld [vmem:[%s11060_s28 + $0x278] sm:$0xff] }
 0x3bd   : > { %6972 = vmatmul.mubr.bf16.vlgmr.msra.gmra.mrb[48].mxu1 %v11920_v19  ;;  %6981 = vmatpush1.bf16.msra.mxu0 %v10052_v44  ;;  %v5401_v62 = vld [vmem:[%s11060_s28 + $0x658] sm:$0xff] }
 0x3be   : > { %7012 = vmatprep.mubr.bf16.mxu0 %v11836_v34  ;;  %7022 = vmatpush1.bf16.msra.mxu1 %v10180_v22  ;;  %v10196_v34 = vcombine.low %v5345_v59, %v5349_v60  ;;  %v10228_v59 = vcombine.low %v5377_v30, %v5381_v31  ;;  %v10109_v60 = vcombine.high %v5257_v39, %v5261_v58  ;;  %v5405_v5 = vld [vmem:[%s11060_s28 + $0x678] sm:$0xff] }
 0x3bf   : > { %7053 = vmatprep.mubr.bf16.mxu1 %v11841_v38  ;;  %6982 = vmatprep.subr.bf16.mxu0 %v10061_v47  ;;  %v10205_v38 = vcombine.high %v5353_v20, %v5357_v12  ;;  %v10100_v47 = vcombine.low %v5249_v29, %v5253_v11  ;;  %v5393_v20 = vld [vmem:[%s11060_s28 + $0x618] sm:$0xff] }
 0x3c0   : > { %7023 = vmatprep.subr.bf16.mxu1 %v10189_v57  ;;  %v5397_v12 = vld [vmem:[%s11060_s28 + $0x638] sm:$0xff] }
 0x3c1   : > { %6983 = vmatpush1.bf16.msra.mxu0 %v10060_v48  ;;  %v5281_v9 = vld [vmem:[%s11060_s28 + $0x298] sm:$0xff] }
 0x3c2   : > { %7024 = vmatpush1.bf16.msra.mxu1 %v10188_v61  ;;  %6984 = vmatprep.subr.bf16.mxu0 %v10069_v52  ;;  %v10237_v52 = vcombine.high %v5385_v43, %v5389_v53  ;;  %v5285_v14 = vld [vmem:[%s11060_s28 + $0x2b8] sm:$0xff] }
 0x3c3   : > { %7025 = vmatprep.subr.bf16.mxu1 %v10197_v0  ;;  %v5265_v0 = vld [vmem:[%s11060_s28 + $0x218] sm:$0xff] }
 0x3c4   : > { %v5409_v15 = vld [vmem:[%s11060_s28 + $0x698] sm:$0xff] }
 0x3c5   : > { %6985 = vmatpush1.bf16.msra.mxu0 %v10068_v16  ;;  %v10108_v16 = vcombine.low %v5257_v39, %v5261_v58  ;;  %v5413_v18 = vld [vmem:[%s11060_s28 + $0x6b8] sm:$0xff] }
 0x3c6   : > { %7026 = vmatpush1.bf16.msra.mxu1 %v10196_v34  ;;  %6986 = vmatprep.subr.bf16.mxu0 %v10077_v21  ;;  %v10236_v34 = vcombine.low %v5385_v43, %v5389_v53  ;;  %v10117_v21 = vcombine.high %v5265_v0, %v5269_v63  ;;  %v5289_v29 = vld [vmem:[%s11060_s28 + $0x2d8] sm:$0xff] }
 0x3c7   : > { %7027 = vmatprep.subr.bf16.mxu1 %v10205_v38  ;;  %v10245_v38 = vcombine.high %v5393_v20, %v5397_v12  ;;  %v5293_v11 = vld [vmem:[%s11060_s28 + $0x2f8] sm:$0xff] }
 0x3c8   : > { %v5417_v30 = vld [vmem:[%s11060_s28 + $0x6d8] sm:$0xff] }
 0x3c9   : > { %6987 = vmatpush1.bf16.msra.mxu0 %v10076_v6  ;;  %v10116_v6 = vcombine.low %v5265_v0, %v5269_v63  ;;  %v5421_v31 = vld [vmem:[%s11060_s28 + $0x6f8] sm:$0xff] }
 0x3ca   : > { %7028 = vmatpush1.bf16.msra.mxu1 %v10204_v1  ;;  %6988 = vmatprep.subr.bf16.mxu0 %v10085_v7  ;;  %v10244_v1 = vcombine.low %v5393_v20, %v5397_v12  ;;  %v10125_v7 = vcombine.high %v5273_v3, %v5277_v4  ;;  %v5301_v39 = vld [vmem:[%s11060_s28 + $0x338] sm:$0xff] }
 0x3cb   : > { %7029 = vmatprep.subr.bf16.mxu1 %v10213_v8  ;;  %v10253_v8 = vcombine.high %v5401_v62, %v5405_v5  ;;  %v5425_v58 = vld [vmem:[%s11060_s28 + $0x718] sm:$0xff] }
 0x3cc   : > { %v5321_v20 = vld [vmem:[%s11060_s28 + $0x3d8] sm:$0xff] }
 0x3cd   : > { %6989 = vmatpush1.bf16.msra.mxu0 %v10084_v54  ;;  %v10124_v54 = vcombine.low %v5273_v3, %v5277_v4  ;;  %v5325_v12 = vld [vmem:[%s11060_s28 + $0x3f8] sm:$0xff] }
 0x3ce   : > { %7030 = vmatpush1.bf16.msra.mxu1 %v10212_v24  ;;  %6990 = vmatprep.subr.bf16.mxu0 %v10093_v28  ;;  %v10252_v24 = vcombine.low %v5401_v62, %v5405_v5  ;;  %v10133_v28 = vcombine.high %v5281_v9, %v5285_v14  ;;  %v10173_v3 = vcombine.high %v5321_v20, %v5325_v12 }
 0x3cf   : > { %v5110_v35 = vpop.f32.mrb[36].mxu0  ;;  %7031 = vmatprep.subr.bf16.mxu1 %v10221_v2  ;;  %v10261_v2 = vcombine.high %v5409_v15, %v5413_v18  ;;  %v10172_v62 = vcombine.low %v5321_v20, %v5325_v12  ;;  %v5197_v12 = vld [vmem:[#allocation3 + $0x38] sm:$0xff] }
 0x3d0   : > { %v5151_v41 = vpop.f32.mrb[36].mxu1  ;;  %v5112_v42 = vpop.f32.mrb[37].mxu0 }
 0x3d1   : > { %v5152_v44 = vadd.f32 %v5151_v41, %v5110_v35  ;;  %v5153_v46 = vpop.f32.mrb[37].mxu1  ;;  %v5114_v22 = vpop.f32.mrb[38].mxu0  ;;  %6991 = vmatpush1.bf16.msra.mxu0 %v10092_v32  ;;  %v10132_v32 = vcombine.low %v5281_v9, %v5285_v14  ;;  %v10269_v35 = vcombine.high %v5417_v30, %v5421_v31  ;;  %v10140_v41 = vcombine.low %v5289_v29, %v5293_v11  ;;  %v5191_v14 = vld [vmem:[#allocation3 + $0x8] sm:$0xff] }
 0x3d2   : > { %v5154_v50 = vadd.f32 %v5153_v46, %v5112_v42  ;;  %v5155_v55 = vpop.f32.mrb[38].mxu1  ;;  %7032 = vmatpush1.bf16.msra.mxu1 %v10220_v33  ;;  %v5115_v57 = vpop.f32.mrb[39].mxu0  ;;  %6992 = vmatprep.subr.bf16.mxu0 %v10101_v13  ;;  %v10260_v33 = vcombine.low %v5409_v15, %v5413_v18  ;;  %v10141_v13 = vcombine.high %v5289_v29, %v5293_v11  ;;  %v5433_v46 = vld [vmem:[%s11060_s28 + $0x758] sm:$0xff] }
 0x3d3   : > { %v5172_v48 = vadd.f32 %v5152_v44, %v1428_v51  ;;  %v5156_v61 = vpop.f32.mrb[39].mxu1  ;;  %7033 = vmatprep.subr.bf16.mxu1 %v10229_v36  ;;  %v5297_v36 = vld [vmem:[%s11060_s28 + $0x318] sm:$0xff]  ;;  %v10268_v42 = vcombine.low %v5417_v30, %v5421_v31 }
 0x3d4   : > { %v5173_v10 = vadd.f32 %v5154_v50, %v1429_v45  ;;  %v5429_v51 = vld [vmem:[%s11060_s28 + $0x738] sm:$0xff]  ;;  %v10149_v43 = vcombine.high %v5297_v36, %v5301_v39 }
 0x3d5   : > { %5188 = vst [vmem:[#allocation2 + $0x70] sm:$0xff] %v5172_v48  ;;  %6993 = vmatpush1.bf16.msra.mxu0 %v10100_v47  ;;  %v10277_v53 = vcombine.high %v5425_v58, %v5429_v51  ;;  %v5305_v44 = vld [vmem:[%s11060_s28 + $0x358] sm:$0xff]  ;;  %v10148_v47 = vcombine.low %v5297_v36, %v5301_v39  ;;  %v10276_v50 = vcombine.low %v5425_v58, %v5429_v51 }
 0x3d6   : > { %5189 = vst [vmem:[#allocation2 + $0x78] sm:$0xff] %v5173_v10  ;;  %7034 = vmatpush1.bf16.msra.mxu1 %v10228_v59  ;;  %6994 = vmatprep.subr.bf16.mxu0 %v10109_v60  ;;  %v5309_v45 = vld [vmem:[%s11060_s28 + $0x378] sm:$0xff] }
 0x3d7   : > { %7035 = vmatprep.subr.bf16.mxu1 %v10237_v52  ;;  %v5437_v22 = vld [vmem:[%s11060_s28 + $0x778] sm:$0xff]  ;;  %v10157_v55 = vcombine.high %v5305_v44, %v5309_v45  ;;  %v10156_v52 = vcombine.low %v5305_v44, %v5309_v45 }
 0x3d8   : > { %v10285_v57 = vcombine.high %v5433_v46, %v5437_v22  ;;  %v5313_v59 = vld [vmem:[%s11060_s28 + $0x398] sm:$0xff]  ;;  %v10284_v0 = vcombine.low %v5433_v46, %v5437_v22  ;;  %v5195_v22 = vld [vmem:[#allocation3 + $0x28] sm:$0xff] }
 0x3d9   : > { %6995 = vmatpush1.bf16.msra.mxu0 %v10108_v16  ;;  %v5317_v60 = vld [vmem:[%s11060_s28 + $0x3b8] sm:$0xff] }
 0x3da   : > { %7036 = vmatpush1.bf16.msra.mxu1 %v10236_v34  ;;  %6996 = vmatprep.subr.bf16.mxu0 %v10117_v21  ;;  %v5441_v48 = vld [vmem:[%s11060_s28 + $0x798] sm:$0xff]  ;;  %v10165_v63 = vcombine.high %v5313_v59, %v5317_v60  ;;  %v10164_v21 = vcombine.low %v5313_v59, %v5317_v60 }
 0x3db   : > { %7037 = vmatprep.subr.bf16.mxu1 %v10245_v38  ;;  %v5445_v61 = vld [vmem:[%s11060_s28 + $0x7b8] sm:$0xff] }
 0x3dc   : > { %v10293_v10 = vcombine.high %v5441_v48, %v5445_v61  ;;  %v5449_v16 = vld [vmem:[%s11060_s28 + $0x7d8] sm:$0xff]  ;;  %v10292_v38 = vcombine.low %v5441_v48, %v5445_v61 }
 0x3dd   : > { %6997 = vmatpush1.bf16.msra.mxu0 %v10116_v6  ;;  %v5453_v34 = vld [vmem:[%s11060_s28 + $0x7f8] sm:$0xff] }
 0x3de   : > { %7038 = vmatpush1.bf16.msra.mxu1 %v10244_v1  ;;  %6998 = vmatprep.subr.bf16.mxu0 %v10125_v7  ;;  %v10301_v4 = vcombine.high %v5449_v16, %v5453_v34  ;;  %v10300_v5 = vcombine.low %v5449_v16, %v5453_v34  ;;  %v5190_v1 = vld [vmem:[#allocation3] sm:$0xff] }
 0x3df   : > { %7039 = vmatprep.subr.bf16.mxu1 %v10253_v8 }
 0x3e1   : > { %6999 = vmatpush1.bf16.msra.mxu0 %v10124_v54 }
 0x3e2   : > { %7040 = vmatpush1.bf16.msra.mxu1 %v10252_v24  ;;  %7000 = vmatprep.subr.bf16.mxu0 %v10133_v28 }
 0x3e3   : > { %7041 = vmatprep.subr.bf16.mxu1 %v10261_v2 }
 0x3e5   : > { %7001 = vmatpush1.bf16.msra.mxu0 %v10132_v32 }
 0x3e6   : > { %7042 = vmatpush1.bf16.msra.mxu1 %v10260_v33  ;;  %7002 = vmatprep.subr.bf16.mxu0 %v10141_v13  ;;  %v5193_v33 = vld [vmem:[#allocation3 + $0x18] sm:$0xff] }
 0x3e7   : > { %7043 = vmatprep.subr.bf16.mxu1 %v10269_v35 }
 0x3e9   : > { %7003 = vmatpush1.bf16.msra.mxu0 %v10140_v41 }
 0x3ea   : > { %7044 = vmatpush1.bf16.msra.mxu1 %v10268_v42  ;;  %7004 = vmatprep.subr.bf16.mxu0 %v10149_v43 }
 0x3eb   : > { %7045 = vmatprep.subr.bf16.mxu1 %v10277_v53  ;;  %v5194_v53 = vld [vmem:[#allocation3 + $0x20] sm:$0xff] }
 0x3ed   : > { %7005 = vmatpush1.bf16.msra.mxu0 %v10148_v47 }
 0x3ee   : > { %7046 = vmatpush1.bf16.msra.mxu1 %v10276_v50  ;;  %7006 = vmatprep.subr.bf16.mxu0 %v10157_v55 }
 0x3ef   : > { %7047 = vmatprep.subr.bf16.mxu1 %v10285_v57 }
 0x3f1   : > { %7007 = vmatpush1.bf16.msra.mxu0 %v10156_v52 }
 0x3f2   : > { %7048 = vmatpush1.bf16.msra.mxu1 %v10284_v0  ;;  %7008 = vmatprep.subr.bf16.mxu0 %v10165_v63  ;;  %v5196_v0 = vld [vmem:[#allocation3 + $0x30] sm:$0xff] }
 0x3f3   : > { %7049 = vmatprep.subr.bf16.mxu1 %v10293_v10 }
 0x3f5   : > { %7009 = vmatpush1.bf16.msra.mxu0 %v10164_v21 }
 0x3f6   : > { %7050 = vmatpush1.bf16.msra.mxu1 %v10292_v38  ;;  %7010 = vmatprep.subr.bf16.mxu0 %v10173_v3 }
 0x3f7   : > { %7051 = vmatprep.subr.bf16.mxu1 %v10301_v4 }
 0x3f9   : > { %7011 = vmatpush1.bf16.msra.mxu0 %v10172_v62 }
 0x3fa   : > { %7052 = vmatpush1.bf16.msra.mxu1 %v10300_v5 }
 0x3fc   : > { %7013 = vmatmul.mubr.bf16.vlgmr.msra.gmra.mrb[52].mxu0 %v11918_v17  ;;  %v5192_v17 = vld [vmem:[#allocation3 + $0x10] sm:$0xff] }
 0x3fd   : > { %7054 = vmatmul.mubr.bf16.vlgmr.msra.gmra.mrb[52].mxu1 %v11920_v19 }
 0x40f   : > { %v6768_v6 = vpop.f32.mrb[40].mxu0 }
 0x410   : > { %v6809_v7 = vpop.f32.mrb[40].mxu1  ;;  %v6770_v8 = vpop.f32.mrb[41].mxu0 }
 0x411   : > { %v6810_v9 = vadd.f32 %v6809_v7, %v6768_v6  ;;  %v6811_v15 = vpop.f32.mrb[41].mxu1  ;;  %v6772_v18 = vpop.f32.mrb[42].mxu0  ;;  %v10777_v6 = vld [vmem:[%s12776_s7 + $0x440] sm:$0xff] (!%p10302_p7)  }
 0x412   : > { %v6812_v54 = vadd.f32 %v6811_v15, %v6770_v8  ;;  %v6813_v24 = vpop.f32.mrb[42].mxu1  ;;  %v6773_v28 = vpop.f32.mrb[43].mxu0  ;;  %10501 = vmatprep.subr.bf16.mxu0 (!%p10302_p7), %v10777_v6  ;;  %v10779_v7 = vld [vmem:[%s12776_s7 + $0x400] sm:$0xff] (!%p10302_p7)   ;;  %v10783_v15 = vld [vmem:[%s12776_s7 + $0x408] sm:$0xff] (!%p10302_p7)  }
 0x413   : > { %v7062_v2 = vadd.f32 %v6810_v9, %v5190_v1  ;;  %v6814_v29 = vpop.f32.mrb[43].mxu1  ;;  %v10778_v1 = vld [vmem:[%s12776_s7 + $0x4c0] sm:$0xff] (!%p10302_p7)   ;;  %10502 = vmatpush3.bf16.msra.mxu0 (!%p10302_p7), %v10779_v7  ;;  %v10781_v9 = vld [vmem:[%s12776_s7 + $0x448] sm:$0xff] (!%p10302_p7)   ;;  %v10786_v24 = vld [vmem:[%s12776_s7 + $0x4d0] sm:$0xff] (!%p10302_p7)  }
 0x414   : > { %v7063_v11 = vadd.f32 %v6812_v54, %v5191_v14  ;;  %10523 = vmatprep.subr.bf16.mxu1 (!%p10302_p7), %v10778_v1  ;;  %v10780_v8 = vld [vmem:[%s12776_s7 + $0x480] sm:$0xff] (!%p10302_p7)   ;;  %v10782_v14 = vld [vmem:[%s12776_s7 + $0x4c8] sm:$0xff] (!%p10302_p7)   ;;  %10503 = vmatprep.subr.bf16.mxu0 (!%p10302_p7), %v10781_v9  ;;  %v10785_v54 = vld [vmem:[%s12776_s7 + $0x450] sm:$0xff] (!%p10302_p7)  }
 0x415   : > { %7070 = vst [vmem:[#allocation3] sm:$0xff] %v7062_v2  ;;  %10524 = vmatpush3.bf16.msra.mxu1 (!%p10302_p7), %v10780_v8  ;;  %v10784_v18 = vld [vmem:[%s12776_s7 + $0x488] sm:$0xff] (!%p10302_p7)   ;;  %v10787_v28 = vld [vmem:[%s12776_s7 + $0x410] sm:$0xff] (!%p10302_p7)   ;;  %v10789_v29 = vld [vmem:[%s12776_s7 + $0x458] sm:$0xff] (!%p10302_p7)  }
 0x416   : > { %7071 = vst [vmem:[#allocation3 + $0x8] sm:$0xff] %v7063_v11  ;;  %10525 = vmatprep.subr.bf16.mxu1 (!%p10302_p7), %v10782_v14  ;;  %v10788_v2 = vld [vmem:[%s12776_s7 + $0x490] sm:$0xff] (!%p10302_p7)   ;;  %v10790_v11 = vld [vmem:[%s12776_s7 + $0x4d8] sm:$0xff] (!%p10302_p7)   ;;  %v10813_v1 = vld [vmem:[%s12776_s7 + $0x548] sm:$0xff] (!%p10302_p7)  }
 0x417   : > { %10504 = vmatpush3.bf16.msra.mxu0 (!%p10302_p7), %v10783_v15  ;;  %v10814_v7 = vld [vmem:[%s12776_s7 + $0x5c8] sm:$0xff] (!%p10302_p7)   ;;  %v10817_v14 = vld [vmem:[%s12776_s7 + $0x550] sm:$0xff] (!%p10302_p7)  }
 0x418   : > { %10505 = vmatprep.subr.bf16.mxu0 (!%p10302_p7), %v10785_v54  ;;  %v10815_v8 = vld [vmem:[%s12776_s7 + $0x508] sm:$0xff] (!%p10302_p7)   ;;  %v10818_v15 = vld [vmem:[%s12776_s7 + $0x5d0] sm:$0xff] (!%p10302_p7)  }
 0x419   : > { %10526 = vmatpush3.bf16.msra.mxu1 (!%p10302_p7), %v10784_v18  ;;  %v10816_v9 = vld [vmem:[%s12776_s7 + $0x588] sm:$0xff] (!%p10302_p7)   ;;  %v10819_v18 = vld [vmem:[%s12776_s7 + $0x510] sm:$0xff] (!%p10302_p7)  }
 0x41a   : > { %10527 = vmatprep.subr.bf16.mxu1 (!%p10302_p7), %v10786_v24  ;;  %v10820_v54 = vld [vmem:[%s12776_s7 + $0x590] sm:$0xff] (!%p10302_p7)   ;;  %v10821_v24 = vld [vmem:[%s12776_s7 + $0x558] sm:$0xff] (!%p10302_p7)  }
 0x41b   : > { %10506 = vmatpush3.bf16.msra.mxu0 (!%p10302_p7), %v10787_v28  ;;  %v10822_v28 = vld [vmem:[%s12776_s7 + $0x5d8] sm:$0xff] (!%p10302_p7)  }
 0x41c   : > { %10507 = vmatprep.subr.bf16.mxu0 (!%p10302_p7), %v10789_v29  ;;  %v10824_v29 = vld [vmem:[%s12776_s7 + $0x598] sm:$0xff] (!%p10302_p7)  }
 0x41d   : > { %10528 = vmatpush3.bf16.msra.mxu1 (!%p10302_p7), %v10788_v2  ;;  %v10823_v2 = vld [vmem:[%s12776_s7 + $0x518] sm:$0xff] (!%p10302_p7)  }
 0x41e   : > { %10529 = vmatprep.subr.bf16.mxu1 (!%p10302_p7), %v10790_v11  ;;  %v10825_v11 = vld [vmem:[%s12776_s7 + $0x560] sm:$0xff] (!%p10302_p7)  }
 0x44f   : > { %v6850_v30 = vpop.f32.mrb[44].mxu0 }
 0x450   : > { %v6891_v31 = vpop.f32.mrb[44].mxu1  ;;  %v6852_v19 = vpop.f32.mrb[45].mxu0 }
 0x451   : > { %v6892_v32 = vadd.f32 %v6891_v31, %v6850_v30  ;;  %v6893_v13 = vpop.f32.mrb[45].mxu1  ;;  %v6854_v35 = vpop.f32.mrb[46].mxu0  ;;  %v10791_v30 = vld [vmem:[%s12776_s7 + $0x418] sm:$0xff] (!%p10302_p7)   ;;  %v10793_v31 = vld [vmem:[%s12776_s7 + $0x460] sm:$0xff] (!%p10302_p7)  }
 0x452   : > { %v6894_v36 = vadd.f32 %v6893_v13, %v6852_v19  ;;  %v6895_v39 = vpop.f32.mrb[46].mxu1  ;;  %v6855_v58 = vpop.f32.mrb[47].mxu0  ;;  %10508 = vmatpush3.bf16.msra.mxu0 (!%p10302_p7), %v10791_v30  ;;  %v10794_v19 = vld [vmem:[%s12776_s7 + $0x4e0] sm:$0xff] (!%p10302_p7)   ;;  %v10797_v13 = vld [vmem:[%s12776_s7 + $0x468] sm:$0xff] (!%p10302_p7)  }
 0x453   : > { %v7064_v51 = vadd.f32 %v6892_v32, %v5192_v17  ;;  %v6896_v41 = vpop.f32.mrb[47].mxu1  ;;  %v10792_v17 = vld [vmem:[%s12776_s7 + $0x498] sm:$0xff] (!%p10302_p7)   ;;  %10509 = vmatprep.subr.bf16.mxu0 (!%p10302_p7), %v10793_v31  ;;  %v10795_v32 = vld [vmem:[%s12776_s7 + $0x420] sm:$0xff] (!%p10302_p7)   ;;  %v10798_v35 = vld [vmem:[%s12776_s7 + $0x4e8] sm:$0xff] (!%p10302_p7)  }
 0x454   : > { %v7065_v42 = vadd.f32 %v6894_v36, %v5193_v33  ;;  %10530 = vmatpush3.bf16.msra.mxu1 (!%p10302_p7), %v10792_v17  ;;  %v10796_v33 = vld [vmem:[%s12776_s7 + $0x4a0] sm:$0xff] (!%p10302_p7)   ;;  %v10799_v36 = vld [vmem:[%s12776_s7 + $0x428] sm:$0xff] (!%p10302_p7)   ;;  %v10801_v58 = vld [vmem:[%s12776_s7 + $0x470] sm:$0xff] (!%p10302_p7)  }
 0x455   : > { %7072 = vst [vmem:[#allocation3 + $0x10] sm:$0xff] %v7064_v51  ;;  %10531 = vmatprep.subr.bf16.mxu1 (!%p10302_p7), %v10794_v19  ;;  %v10800_v39 = vld [vmem:[%s12776_s7 + $0x4a8] sm:$0xff] (!%p10302_p7)   ;;  %v10802_v51 = vld [vmem:[%s12776_s7 + $0x4f0] sm:$0xff] (!%p10302_p7)   ;;  %v10826_v30 = vld [vmem:[%s12776_s7 + $0x5e0] sm:$0xff] (!%p10302_p7)  }
 0x456   : > { %7073 = vst [vmem:[#allocation3 + $0x18] sm:$0xff] %v7065_v42  ;;  %10510 = vmatpush3.bf16.msra.mxu0 (!%p10302_p7), %v10795_v32  ;;  %v10803_v41 = vld [vmem:[%s12776_s7 + $0x430] sm:$0xff] (!%p10302_p7)   ;;  %v10827_v17 = vld [vmem:[%s12776_s7 + $0x520] sm:$0xff] (!%p10302_p7)   ;;  %v10829_v19 = vld [vmem:[%s12776_s7 + $0x568] sm:$0xff] (!%p10302_p7)  }
 0x457   : > { %10511 = vmatprep.subr.bf16.mxu0 (!%p10302_p7), %v10797_v13  ;;  %v10804_v42 = vld [vmem:[%s12776_s7 + $0x4b0] sm:$0xff] (!%p10302_p7)   ;;  %v10828_v31 = vld [vmem:[%s12776_s7 + $0x5a0] sm:$0xff] (!%p10302_p7)   ;;  %v10830_v32 = vld [vmem:[%s12776_s7 + $0x5e8] sm:$0xff] (!%p10302_p7)  }
 0x458   : > { %10532 = vmatpush3.bf16.msra.mxu1 (!%p10302_p7), %v10796_v33  ;;  %v10831_v33 = vld [vmem:[%s12776_s7 + $0x528] sm:$0xff] (!%p10302_p7)  }
 0x459   : > { %10533 = vmatprep.subr.bf16.mxu1 (!%p10302_p7), %v10798_v35  ;;  %v10832_v13 = vld [vmem:[%s12776_s7 + $0x5a8] sm:$0xff] (!%p10302_p7)   ;;  %v10833_v35 = vld [vmem:[%s12776_s7 + $0x570] sm:$0xff] (!%p10302_p7)  }
 0x45a   : > { %10512 = vmatpush3.bf16.msra.mxu0 (!%p10302_p7), %v10799_v36  ;;  %v10834_v36 = vld [vmem:[%s12776_s7 + $0x5f0] sm:$0xff] (!%p10302_p7)  }
 0x45b   : > { %10513 = vmatprep.subr.bf16.mxu0 (!%p10302_p7), %v10801_v58  ;;  %v10836_v58 = vld [vmem:[%s12776_s7 + $0x5b0] sm:$0xff] (!%p10302_p7)  }
 0x45c   : > { %10534 = vmatpush3.bf16.msra.mxu1 (!%p10302_p7), %v10800_v39  ;;  %v10835_v39 = vld [vmem:[%s12776_s7 + $0x530] sm:$0xff] (!%p10302_p7)  }
 0x45d   : > { %10535 = vmatprep.subr.bf16.mxu1 (!%p10302_p7), %v10802_v51  ;;  %v10837_v51 = vld [vmem:[%s12776_s7 + $0x578] sm:$0xff] (!%p10302_p7)  }
 0x45e   : > { %10514 = vmatpush3.bf16.msra.mxu0 (!%p10302_p7), %v10803_v41 }
 0x460   : > { %10536 = vmatpush3.bf16.msra.mxu1 (!%p10302_p7), %v10804_v42 }
 0x48f   : > { %v6932_v43 = vpop.f32.mrb[48].mxu0 }
 0x490   : > { %v6973_v44 = vpop.f32.mrb[48].mxu1  ;;  %v6934_v45 = vpop.f32.mrb[49].mxu0 }
 0x491   : > { %v6974_v46 = vadd.f32 %v6973_v44, %v6932_v43  ;;  %v6975_v47 = vpop.f32.mrb[49].mxu1  ;;  %v6936_v50 = vpop.f32.mrb[50].mxu0  ;;  %v10805_v43 = vld [vmem:[%s12776_s7 + $0x478] sm:$0xff] (!%p10302_p7)  }
 0x492   : > { %v6976_v55 = vadd.f32 %v6975_v47, %v6934_v45  ;;  %v6977_v57 = vpop.f32.mrb[50].mxu1  ;;  %v6937_v59 = vpop.f32.mrb[51].mxu0  ;;  %10515 = vmatprep.subr.bf16.mxu0 (!%p10302_p7), %v10805_v43  ;;  %v10807_v44 = vld [vmem:[%s12776_s7 + $0x438] sm:$0xff] (!%p10302_p7)  }
 0x493   : > { %v7066_v60 = vadd.f32 %v6974_v46, %v5194_v53  ;;  %v6978_v48 = vpop.f32.mrb[51].mxu1  ;;  %v10806_v53 = vld [vmem:[%s12776_s7 + $0x4f8] sm:$0xff] (!%p10302_p7)   ;;  %10516 = vmatpush3.bf16.msra.mxu0 (!%p10302_p7), %v10807_v44  ;;  %v7231_v46 = vld [vmem:[#allocation3 + $0x8] sm:$0xff] (!%p10302_p7)  ;;  %v7230_v57 = vld [vmem:[#allocation3] sm:$0xff] (!%p10302_p7) }
 0x494   : > { %v7067_v61 = vadd.f32 %v6976_v55, %v5195_v22  ;;  %10537 = vmatprep.subr.bf16.mxu1 (!%p10302_p7), %v10806_v53  ;;  %v10808_v45 = vld [vmem:[%s12776_s7 + $0x4b8] sm:$0xff] (!%p10302_p7)   ;;  %v12220_v22 = vld [vmem:[%s12775_s6] sm:$0xff] (!%p10302_p7) }
 0x495   : > { %7074 = vst [vmem:[#allocation3 + $0x20] sm:$0xff] %v7066_v60  ;;  %v7233_v47 = vld [vmem:[#allocation3 + $0x18] sm:$0xff] (!%p10302_p7)  ;;  %10538 = vmatpush3.bf16.msra.mxu1 (!%p10302_p7), %v10808_v45  ;;  %v7247_v50 = vrot.slane (!%p10302_p7), %v12220_v22, %v11306_v26  ;;  %v7255_v55 = vrot.slane (!%p10302_p7), %v12220_v22, %v11309_v27  ;;  %v7243_v59 = vrot.slane (!%p10302_p7), %v12220_v22, %v11299_v23  ;;  %v7232_v60 = vld [vmem:[#allocation3 + $0x10] sm:$0xff] (!%p10302_p7) }
 0x496   : > { %7075 = vst [vmem:[#allocation3 + $0x28] sm:$0xff] %v7067_v61  ;;  %v7251_v48 = vrot.slane (!%p10302_p7), %v12220_v22, %v11303_v25  ;;  %v10809_v61 = vld [vmem:[%s12776_s7 + $0x540] sm:$0xff] (!%p10302_p7)   ;;  %v7263_v41 = vrot.slane (!%p10302_p7), %v12220_v22, %v11806_v49  ;;  %v7271_v42 = vrot.slane (!%p10302_p7), %v12220_v22, %v11811_v56  ;;  %v10838_v43 = vld [vmem:[%s12776_s7 + $0x5f8] sm:$0xff] (!%p10302_p7)   ;;  %v7259_v53 = vrot.slane (!%p10302_p7), %v12220_v22, %v11891_v37 }
 0x497   : > { %10545 = vmatprep.subr.bf16.mxu0 (!%p10302_p7), %v10809_v61  ;;  %v7267_v44 = vrot.slane (!%p10302_p7), %v12220_v22, %v11894_v40  ;;  %v10839_v45 = vld [vmem:[%s12776_s7 + $0x538] sm:$0xff] (!%p10302_p7)   ;;  %v10841_v61 = vld [vmem:[%s12776_s7 + $0x40] sm:$0xff] (!%p10302_p7)  }
 0x4cf   : > { %v7014_v52 = vpop.f32.mrb[52].mxu0 }
 0x4d0   : > { %v7055_v63 = vpop.f32.mrb[52].mxu1  ;;  %v7016_v10 = vpop.f32.mrb[53].mxu0  ;;  %7081 = sbr.rel (%p10302_p7) target bundleno = 1623 (0x657), region = 64 }
 0x4d1   : > { %v7056_v20 = vadd.f32 %v7055_v63, %v7014_v52  ;;  %v7057_v16 = vpop.f32.mrb[53].mxu1  ;;  %v7018_v34 = vpop.f32.mrb[54].mxu0  ;;  %v7281_v52 = vadd.f32 (!%p10302_p7), %v7247_v50, %v7231_v46  ;;  %v7280_v63 = vadd.f32 (!%p10302_p7), %v7243_v59, %v7230_v57  ;;  %v10840_v46 = vld [vmem:[%s12776_s7 + $0x5b8] sm:$0xff] (!%p10302_p7)   ;;  %v7234_v59 = vld [vmem:[#allocation3 + $0x20] sm:$0xff] (!%p10302_p7) }
 0x4d2   : > { %v7058_v21 = vadd.f32 %v7057_v16, %v7016_v10  ;;  %v7059_v38 = vpop.f32.mrb[54].mxu1  ;;  %v7019_v3 = vpop.f32.mrb[55].mxu0  ;;  %v7282_v10 = vadd.f32 (!%p10302_p7), %v7251_v48, %v7232_v60  ;;  %v7284_v48 = vadd.f32 (!%p10302_p7), %v7259_v53, %v7234_v59 }
 0x4d3   : > { %v7068_v4 = vadd.f32 %v7056_v20, %v5196_v0  ;;  %v7060_v62 = vpop.f32.mrb[55].mxu1  ;;  %v7283_v0 = vadd.f32 (!%p10302_p7), %v7255_v55, %v7233_v47  ;;  %v10810_v20 = vld [vmem:[%s12776_s7 + $0x5c0] sm:$0xff] (!%p10302_p7)   ;;  %v7288_v34 = vmax.f32 (!%p10302_p7), %v7280_v63, 0.0  ;;  %v7235_v47 = vld [vmem:[#allocation3 + $0x28] sm:$0xff] (!%p10302_p7) }
 0x4d4   : > { %v7069_v5 = vadd.f32 %v7058_v21, %v5197_v12  ;;  %v7289_v12 = vmax.f32 (!%p10302_p7), %v7281_v52, 0.0  ;;  %v7290_v21 = vmax.f32 (!%p10302_p7), %v7282_v10, 0.0  ;;  %10567 = vmatprep.subr.bf16.mxu1 (!%p10302_p7), %v10810_v20  ;;  %v10811_v38 = vld [vmem:[%s12776_s7 + $0x500] sm:$0xff] (!%p10302_p7)   ;;  %v7285_v55 = vadd.f32 (!%p10302_p7), %v7263_v41, %v7235_v47 }
 0x4d5   : > { %7076 = vst [vmem:[#allocation3 + $0x30] sm:$0xff] %v7068_v4  ;;  %v7291_v16 = vmax.f32 (!%p10302_p7), %v7283_v0, 0.0  ;;  %v10812_v3 = vld [vmem:[%s12776_s7 + $0x580] sm:$0xff] (!%p10302_p7)   ;;  %v7292_v20 = vmax.f32 (!%p10302_p7), %v7284_v48, 0.0 }
 0x4d6   : > { %7077 = vst [vmem:[#allocation3 + $0x38] sm:$0xff] %v7069_v5  ;;  %v7297_v4 = vpack.c.bf16 (!%p10302_p7), %v7289_v12, %v7289_v12  ;;  %v7296_v5 = vpack.c.bf16 (!%p10302_p7), %v7288_v34, %v7288_v34  ;;  %v7298_v6 = vpack.c.bf16 (!%p10302_p7), %v7290_v21, %v7290_v21  ;;  %v7293_v52 = vmax.f32 (!%p10302_p7), %v7285_v55, 0.0  ;;  %v10842_v63 = vld [vmem:[%s12776_s7 + $0xc0] sm:$0xff] (!%p10302_p7)  }
 0x4d7   : > { %v7299_v62 = vpack.c.bf16 %v7291_v16, %v7291_v16  ;;  %v10843_v10 = vld [vmem:[%s12776_s7] sm:$0xff]  }
 0x4d8   : > { %8104 = vmatprep.mubr.bf16.mxu0 %v7297_v4  ;;  %v7301_v16 = vpack.c.bf16 %v7293_v52, %v7293_v52  ;;  %v10844_v21 = vld [vmem:[%s12776_s7 + $0x80] sm:$0xff]   ;;  %v10845_v4 = vld [vmem:[%s12776_s7 + $0x48] sm:$0xff]  }
 0x4d9   : > { %8144 = vmatprep.mubr.bf16.mxu1 %v7299_v62  ;;  %8105 = vmatmul.mubr.bf16.vlgmr.msra.gmra.mrb[0].mxu0 %v7296_v5  ;;  %v10846_v62 = vld [vmem:[%s12776_s7 + $0xc8] sm:$0xff]   ;;  %v12433_v41 = vld [vmem:[%s12774_s5] sm:$0xff] }
 0x4da   : > { %8145 = vmatmul.mubr.bf16.vlgmr.msra.gmra.mrb[0].mxu1 %v7298_v6  ;;  %10546 = vmatpush3.bf16.msra.mxu0 %v10811_v38  ;;  %v7300_v38 = vpack.c.bf16 %v7292_v20, %v7292_v20  ;;  %v10847_v5 = vld [vmem:[%s12776_s7 + $0x8] sm:$0xff]   ;;  %v7117_v53 = vrot.slane %v12433_v41, %v11309_v27  ;;  %v7113_v47 = vrot.slane %v12433_v41, %v11303_v25 }
 0x4db   : > { %10568 = vmatpush3.bf16.msra.mxu1 %v10812_v3  ;;  %10547 = vmatprep.subr.bf16.mxu0 %v10813_v1  ;;  %v10848_v6 = vld [vmem:[%s12776_s7 + $0x88] sm:$0xff]   ;;  %v10849_v1 = vld [vmem:[%s12776_s7 + $0x50] sm:$0xff]  }
 0x4dc   : > { %10569 = vmatprep.subr.bf16.mxu1 %v10814_v7  ;;  %v7236_v60 = vld [vmem:[#allocation3 + $0x30] sm:$0xff]  ;;  %8184 = vmatprep.mubr.bf16.mxu0 %v7301_v16 }
 0x4dd   : > { %v7237_v50 = vld [vmem:[#allocation3 + $0x38] sm:$0xff]  ;;  %v7286_v22 = vadd.f32 %v7267_v44, %v7236_v60  ;;  %v10850_v7 = vld [vmem:[%s12776_s7 + $0xd0] sm:$0xff]   ;;  %v7082_v44 = vld [vmem:[#allocation2] sm:$0xff] }
 0x4de   : > { %10548 = vmatpush3.bf16.msra.mxu0 %v10815_v8  ;;  %v7287_v57 = vadd.f32 %v7271_v42, %v7237_v50  ;;  %v10851_v8 = vld [vmem:[%s12776_s7 + $0x10] sm:$0xff]   ;;  %v7085_v42 = vld [vmem:[#allocation2 + $0x18] sm:$0xff]  ;;  %v10873_v50 = vld [vmem:[%s12776_s7 + $0x140] sm:$0xff]  }
 0x4df   : > { %10570 = vmatpush3.bf16.msra.mxu1 %v10816_v9  ;;  %10549 = vmatprep.subr.bf16.mxu0 %v10817_v14  ;;  %v7294_v12 = vmax.f32 %v7286_v22, 0.0  ;;  %v10852_v9 = vld [vmem:[%s12776_s7 + $0x90] sm:$0xff]   ;;  %v10853_v14 = vld [vmem:[%s12776_s7 + $0x58] sm:$0xff]   ;;  %v10874_v60 = vld [vmem:[%s12776_s7 + $0x1c0] sm:$0xff]  }
 0x4e0   : > { %10571 = vmatprep.subr.bf16.mxu1 %v10818_v15  ;;  %v7295_v0 = vmax.f32 %v7287_v57, 0.0  ;;  %v10854_v15 = vld [vmem:[%s12776_s7 + $0xd8] sm:$0xff]   ;;  %v7185_v57 = vadd.f32 %v7117_v53, %v7085_v42  ;;  %v7087_v42 = vld [vmem:[#allocation2 + $0x28] sm:$0xff]  ;;  %v7086_v53 = vld [vmem:[#allocation2 + $0x20] sm:$0xff] }
 0x4e1   : > { %v7302_v3 = vpack.c.bf16 %v7294_v12, %v7294_v12 }
 0x4e2   : > { %10550 = vmatpush3.bf16.msra.mxu0 %v10819_v18  ;;  %v7303_v34 = vpack.c.bf16 %v7295_v0, %v7295_v0  ;;  %v10855_v18 = vld [vmem:[%s12776_s7 + $0x18] sm:$0xff]   ;;  %v10875_v0 = vld [vmem:[%s12776_s7 + $0x100] sm:$0xff]  }
 0x4e3   : > { %10572 = vmatpush3.bf16.msra.mxu1 %v10820_v54  ;;  %10551 = vmatprep.subr.bf16.mxu0 %v10821_v24  ;;  %v10856_v54 = vld [vmem:[%s12776_s7 + $0x98] sm:$0xff]   ;;  %v10857_v24 = vld [vmem:[%s12776_s7 + $0x60] sm:$0xff]  }
 0x4e4   : > { %10573 = vmatprep.subr.bf16.mxu1 %v10822_v28  ;;  %8224 = vmatprep.mubr.bf16.mxu1 %v7303_v34  ;;  %v10858_v28 = vld [vmem:[%s12776_s7 + $0xe0] sm:$0xff]   ;;  %v10877_v34 = vld [vmem:[%s12776_s7 + $0x148] sm:$0xff]  }
 0x4e6   : > { %10552 = vmatpush3.bf16.msra.mxu0 %v10823_v2  ;;  %v10859_v2 = vld [vmem:[%s12776_s7 + $0x20] sm:$0xff]  }
 0x4e7   : > { %10574 = vmatpush3.bf16.msra.mxu1 %v10824_v29  ;;  %10553 = vmatprep.subr.bf16.mxu0 %v10825_v11  ;;  %v10860_v29 = vld [vmem:[%s12776_s7 + $0xa0] sm:$0xff]   ;;  %v10861_v11 = vld [vmem:[%s12776_s7 + $0x68] sm:$0xff]  }
 0x4e8   : > { %10575 = vmatprep.subr.bf16.mxu1 %v10826_v30  ;;  %v10862_v30 = vld [vmem:[%s12776_s7 + $0xe8] sm:$0xff]  }
 0x4ea   : > { %10554 = vmatpush3.bf16.msra.mxu0 %v10827_v17  ;;  %v10863_v17 = vld [vmem:[%s12776_s7 + $0x28] sm:$0xff]  }
 0x4eb   : > { %10576 = vmatpush3.bf16.msra.mxu1 %v10828_v31  ;;  %10555 = vmatprep.subr.bf16.mxu0 %v10829_v19  ;;  %v10864_v31 = vld [vmem:[%s12776_s7 + $0xa8] sm:$0xff]   ;;  %v10865_v19 = vld [vmem:[%s12776_s7 + $0x70] sm:$0xff]  }
 0x4ec   : > { %10577 = vmatprep.subr.bf16.mxu1 %v10830_v32  ;;  %v10866_v32 = vld [vmem:[%s12776_s7 + $0xf0] sm:$0xff]  }
 0x4ee   : > { %10556 = vmatpush3.bf16.msra.mxu0 %v10831_v33  ;;  %v10867_v33 = vld [vmem:[%s12776_s7 + $0x30] sm:$0xff]  }
 0x4ef   : > { %10578 = vmatpush3.bf16.msra.mxu1 %v10832_v13  ;;  %10557 = vmatprep.subr.bf16.mxu0 %v10833_v35  ;;  %v10868_v13 = vld [vmem:[%s12776_s7 + $0xb0] sm:$0xff]   ;;  %v10869_v35 = vld [vmem:[%s12776_s7 + $0x78] sm:$0xff]  }
 0x4f0   : > { %10579 = vmatprep.subr.bf16.mxu1 %v10834_v36  ;;  %v10870_v36 = vld [vmem:[%s12776_s7 + $0xf8] sm:$0xff]  }
 0x4f2   : > { %10558 = vmatpush3.bf16.msra.mxu0 %v10835_v39  ;;  %v10871_v39 = vld [vmem:[%s12776_s7 + $0x38] sm:$0xff]  }
 0x4f3   : > { %10580 = vmatpush3.bf16.msra.mxu1 %v10836_v58  ;;  %10559 = vmatprep.subr.bf16.mxu0 %v10837_v51  ;;  %v10872_v58 = vld [vmem:[%s12776_s7 + $0xb8] sm:$0xff]   ;;  %v7083_v51 = vld [vmem:[#allocation2 + $0x8] sm:$0xff] }
 0x4f4   : > { %10581 = vmatprep.subr.bf16.mxu1 %v10838_v43  ;;  %v7109_v43 = vrot.slane %v12433_v41, %v11306_v26 }
 0x4f6   : > { %10560 = vmatpush3.bf16.msra.mxu0 %v10839_v45  ;;  %v7105_v45 = vrot.slane %v12433_v41, %v11299_v23  ;;  %v7183_v55 = vadd.f32 %v7109_v43, %v7083_v51  ;;  %v10904_v51 = vld [vmem:[%s12776_s7 + $0x1b8] sm:$0xff]  }
 0x4f7   : > { %10582 = vmatpush3.bf16.msra.mxu1 %v10840_v46  ;;  %10589 = vmatprep.subr.bf16.mxu0 %v10841_v61  ;;  %v7084_v46 = vld [vmem:[#allocation2 + $0x10] sm:$0xff]  ;;  %v7201_v61 = vmax.f32 %v7185_v57, 0.0  ;;  %v7089_v43 = vld [vmem:[#allocation2 + $0x38] sm:$0xff] }
 0x4f8   : > { %10611 = vmatprep.subr.bf16.mxu1 %v10842_v63  ;;  %v7182_v59 = vadd.f32 %v7105_v45, %v7082_v44  ;;  %v7184_v48 = vadd.f32 %v7113_v47, %v7084_v46  ;;  %v7199_v22 = vmax.f32 %v7183_v55, 0.0  ;;  %v7088_v47 = vld [vmem:[#allocation2 + $0x30] sm:$0xff] }
 0x4f9   : > { %8185 = vmatmul.mubr.bf16.vlgmr.msra.gmra.mrb[4].mxu0 %v7300_v38  ;;  %v7217_v12 = vpack.c.bf16 %v7201_v61, %v7201_v61  ;;  %v10878_v38 = vld [vmem:[%s12776_s7 + $0x1c8] sm:$0xff]  }
 0x4fa   : > { %8225 = vmatmul.mubr.bf16.vlgmr.msra.gmra.mrb[4].mxu1 %v7302_v3  ;;  %10590 = vmatpush3.bf16.msra.mxu0 %v10843_v10  ;;  %v7198_v52 = vmax.f32 %v7182_v59, 0.0  ;;  %v7200_v63 = vmax.f32 %v7184_v48, 0.0  ;;  %v10876_v10 = vld [vmem:[%s12776_s7 + $0x180] sm:$0xff]   ;;  %v7215_v20 = vpack.c.bf16 %v7199_v22, %v7199_v22  ;;  %v10879_v3 = vld [vmem:[%s12776_s7 + $0x108] sm:$0xff]  }
 0x4fb   : > { %10612 = vmatpush3.bf16.msra.mxu1 %v10844_v21  ;;  %10591 = vmatprep.subr.bf16.mxu0 %v10845_v4  ;;  %v10880_v4 = vld [vmem:[%s12776_s7 + $0x188] sm:$0xff]   ;;  %v10907_v22 = vld [vmem:[%s12776_s7 + $0x200] sm:$0xff]  }
 0x4fc   : > { %10613 = vmatprep.subr.bf16.mxu1 %v10846_v62  ;;  %v7214_v16 = vpack.c.bf16 %v7198_v52, %v7198_v52  ;;  %v7216_v21 = vpack.c.bf16 %v7200_v63, %v7200_v63  ;;  %9032 = vmatprep.mubr.bf16.mxu0 %v7215_v20  ;;  %v10881_v62 = vld [vmem:[%s12776_s7 + $0x150] sm:$0xff]   ;;  %v10908_v63 = vld [vmem:[%s12776_s7 + $0x280] sm:$0xff]   ;;  %v10909_v20 = vld [vmem:[%s12776_s7 + $0x248] sm:$0xff]  }
 0x4fd   : > { %9072 = vmatprep.mubr.bf16.mxu1 %v7217_v12  ;;  %v10910_v12 = vld [vmem:[%s12776_s7 + $0x2c8] sm:$0xff]  }
 0x4fe   : > { %10592 = vmatpush3.bf16.msra.mxu0 %v10847_v5  ;;  %v10882_v5 = vld [vmem:[%s12776_s7 + $0x1d0] sm:$0xff]  }
 0x4ff   : > { %10614 = vmatpush3.bf16.msra.mxu1 %v10848_v6  ;;  %10593 = vmatprep.subr.bf16.mxu0 %v10849_v1  ;;  %v10883_v6 = vld [vmem:[%s12776_s7 + $0x110] sm:$0xff]  }
 0x500   : > { %10615 = vmatprep.subr.bf16.mxu1 %v10850_v7  ;;  %v10884_v1 = vld [vmem:[%s12776_s7 + $0x190] sm:$0xff]   ;;  %v10885_v7 = vld [vmem:[%s12776_s7 + $0x158] sm:$0xff]  }
 0x502   : > { %10594 = vmatpush3.bf16.msra.mxu0 %v10851_v8  ;;  %v10886_v8 = vld [vmem:[%s12776_s7 + $0x1d8] sm:$0xff]  }
 0x503   : > { %10616 = vmatpush3.bf16.msra.mxu1 %v10852_v9  ;;  %10595 = vmatprep.subr.bf16.mxu0 %v10853_v14  ;;  %v10887_v9 = vld [vmem:[%s12776_s7 + $0x118] sm:$0xff]  }
 0x504   : > { %10617 = vmatprep.subr.bf16.mxu1 %v10854_v15  ;;  %v10888_v14 = vld [vmem:[%s12776_s7 + $0x198] sm:$0xff]   ;;  %v10889_v15 = vld [vmem:[%s12776_s7 + $0x160] sm:$0xff]  }
 0x506   : > { %10596 = vmatpush3.bf16.msra.mxu0 %v10855_v18  ;;  %v10890_v18 = vld [vmem:[%s12776_s7 + $0x1e0] sm:$0xff]  }
 0x507   : > { %10618 = vmatpush3.bf16.msra.mxu1 %v10856_v54  ;;  %10597 = vmatprep.subr.bf16.mxu0 %v10857_v24  ;;  %v10891_v54 = vld [vmem:[%s12776_s7 + $0x120] sm:$0xff]  }
 0x508   : > { %10619 = vmatprep.subr.bf16.mxu1 %v10858_v28  ;;  %v10892_v24 = vld [vmem:[%s12776_s7 + $0x1a0] sm:$0xff]   ;;  %v10893_v28 = vld [vmem:[%s12776_s7 + $0x168] sm:$0xff]  }
 0x50a   : > { %10598 = vmatpush3.bf16.msra.mxu0 %v10859_v2  ;;  %v10894_v2 = vld [vmem:[%s12776_s7 + $0x1e8] sm:$0xff]  }
 0x50b   : > { %10620 = vmatpush3.bf16.msra.mxu1 %v10860_v29  ;;  %10599 = vmatprep.subr.bf16.mxu0 %v10861_v11  ;;  %v10895_v29 = vld [vmem:[%s12776_s7 + $0x128] sm:$0xff]  }
 0x50c   : > { %10621 = vmatprep.subr.bf16.mxu1 %v10862_v30  ;;  %v10896_v11 = vld [vmem:[%s12776_s7 + $0x1a8] sm:$0xff]   ;;  %v10897_v30 = vld [vmem:[%s12776_s7 + $0x170] sm:$0xff]  }
 0x50e   : > { %10600 = vmatpush3.bf16.msra.mxu0 %v10863_v17  ;;  %v10898_v17 = vld [vmem:[%s12776_s7 + $0x1f0] sm:$0xff]  }
 0x50f   : > { %10622 = vmatpush3.bf16.msra.mxu1 %v10864_v31  ;;  %10601 = vmatprep.subr.bf16.mxu0 %v10865_v19  ;;  %v10899_v31 = vld [vmem:[%s12776_s7 + $0x130] sm:$0xff]  }
 0x510   : > { %10623 = vmatprep.subr.bf16.mxu1 %v10866_v32  ;;  %v10900_v19 = vld [vmem:[%s12776_s7 + $0x1b0] sm:$0xff]   ;;  %v10901_v32 = vld [vmem:[%s12776_s7 + $0x178] sm:$0xff]  }
 0x512   : > { %10602 = vmatpush3.bf16.msra.mxu0 %v10867_v33  ;;  %v7125_v33 = vrot.slane %v12433_v41, %v11806_v49 }
 0x513   : > { %10624 = vmatpush3.bf16.msra.mxu1 %v10868_v13  ;;  %10603 = vmatprep.subr.bf16.mxu0 %v10869_v35  ;;  %v7133_v13 = vrot.slane %v12433_v41, %v11811_v56  ;;  %v7121_v35 = vrot.slane %v12433_v41, %v11891_v37 }
 0x514   : > { %10625 = vmatprep.subr.bf16.mxu1 %v10870_v36  ;;  %v10902_v36 = vld [vmem:[%s12776_s7 + $0x1f8] sm:$0xff]   ;;  %v7187_v44 = vadd.f32 %v7125_v33, %v7087_v42  ;;  %v12646_v33 = vld [vmem:[%s12774_s5 + $0x8] sm:$0xff] }
 0x515   : > { %v7189_v45 = vadd.f32 %v7133_v13, %v7089_v43  ;;  %v7186_v46 = vadd.f32 %v7121_v35, %v7086_v53  ;;  %v7093_v13 = vld [vmem:[#allocation2 + $0x58] sm:$0xff]  ;;  %v7090_v35 = vld [vmem:[#allocation2 + $0x40] sm:$0xff]  ;;  %v7145_v42 = vrot.slane %v12646_v33, %v11303_v25 }
 0x516   : > { %10604 = vmatpush3.bf16.msra.mxu0 %v10871_v39  ;;  %v7129_v39 = vrot.slane %v12433_v41, %v11894_v40  ;;  %v7203_v55 = vmax.f32 %v7187_v44, 0.0  ;;  %v10937_v43 = vld [vmem:[%s12776_s7 + $0x340] sm:$0xff]  }
 0x517   : > { %10626 = vmatpush3.bf16.msra.mxu1 %v10872_v58  ;;  %10633 = vmatprep.subr.bf16.mxu0 %v10873_v50  ;;  %v10903_v58 = vld [vmem:[%s12776_s7 + $0x138] sm:$0xff]   ;;  %v10905_v50 = vld [vmem:[%s12776_s7 + $0x240] sm:$0xff]   ;;  %v7205_v57 = vmax.f32 %v7189_v45, 0.0  ;;  %v7202_v59 = vmax.f32 %v7186_v46, 0.0 }
 0x518   : > { %10655 = vmatprep.subr.bf16.mxu1 %v10874_v60  ;;  %v7188_v41 = vadd.f32 %v7129_v39, %v7088_v47  ;;  %v10906_v60 = vld [vmem:[%s12776_s7 + $0x2c0] sm:$0xff]   ;;  %v7219_v61 = vpack.c.bf16 %v7203_v55, %v7203_v55  ;;  %v7149_v39 = vrot.slane %v12646_v33, %v11309_v27 }
 0x519   : > { %9033 = vmatmul.mubr.bf16.vlgmr.msra.gmra.mrb[8].mxu0 %v7214_v16  ;;  %v7221_v52 = vpack.c.bf16 %v7205_v57, %v7205_v57  ;;  %v10911_v16 = vld [vmem:[%s12776_s7 + $0x208] sm:$0xff]   ;;  %v10939_v25 = vld [vmem:[%s12776_s7 + $0x300] sm:$0xff]  }
 0x51a   : > { %9073 = vmatmul.mubr.bf16.vlgmr.msra.gmra.mrb[8].mxu1 %v7216_v21  ;;  %10634 = vmatpush3.bf16.msra.mxu0 %v10875_v0  ;;  %v7204_v48 = vmax.f32 %v7188_v41, 0.0  ;;  %v7218_v0 = vpack.c.bf16 %v7202_v59, %v7202_v59  ;;  %v10913_v21 = vld [vmem:[%s12776_s7 + $0x250] sm:$0xff]   ;;  %v7193_v44 = vadd.f32 %v7149_v39, %v7093_v13 }
 0x51b   : > { %10656 = vmatpush3.bf16.msra.mxu1 %v10876_v10  ;;  %10635 = vmatprep.subr.bf16.mxu0 %v10877_v34  ;;  %v10912_v34 = vld [vmem:[%s12776_s7 + $0x288] sm:$0xff]  }
 0x51c   : > { %10657 = vmatprep.subr.bf16.mxu1 %v10878_v38  ;;  %v7220_v10 = vpack.c.bf16 %v7204_v48, %v7204_v48  ;;  %9112 = vmatprep.mubr.bf16.mxu0 %v7219_v61  ;;  %v10914_v38 = vld [vmem:[%s12776_s7 + $0x2d0] sm:$0xff]   ;;  %v7209_v46 = vmax.f32 %v7193_v44, 0.0  ;;  %v10943_v61 = vld [vmem:[%s12776_s7 + $0x308] sm:$0xff]  }
 0x51d   : > { %9152 = vmatprep.mubr.bf16.mxu1 %v7221_v52  ;;  %v10944_v52 = vld [vmem:[%s12776_s7 + $0x388] sm:$0xff]  }
 0x51e   : > { %10636 = vmatpush3.bf16.msra.mxu0 %v10879_v3  ;;  %v10915_v3 = vld [vmem:[%s12776_s7 + $0x210] sm:$0xff]   ;;  %v7225_v57 = vpack.c.bf16 %v7209_v46, %v7209_v46 }
 0x51f   : > { %10658 = vmatpush3.bf16.msra.mxu1 %v10880_v4  ;;  %10637 = vmatprep.subr.bf16.mxu0 %v10881_v62  ;;  %v10916_v4 = vld [vmem:[%s12776_s7 + $0x290] sm:$0xff]   ;;  %v10917_v62 = vld [vmem:[%s12776_s7 + $0x258] sm:$0xff]  }
 0x520   : > { %10659 = vmatprep.subr.bf16.mxu1 %v10882_v5  ;;  %v10918_v5 = vld [vmem:[%s12776_s7 + $0x2d8] sm:$0xff]  }
 0x522   : > { %10638 = vmatpush3.bf16.msra.mxu0 %v10883_v6  ;;  %v10919_v6 = vld [vmem:[%s12776_s7 + $0x218] sm:$0xff]  }
 0x523   : > { %10660 = vmatpush3.bf16.msra.mxu1 %v10884_v1  ;;  %10639 = vmatprep.subr.bf16.mxu0 %v10885_v7  ;;  %v10920_v1 = vld [vmem:[%s12776_s7 + $0x298] sm:$0xff]   ;;  %v10921_v7 = vld [vmem:[%s12776_s7 + $0x260] sm:$0xff]  }
 0x524   : > { %10661 = vmatprep.subr.bf16.mxu1 %v10886_v8  ;;  %v10922_v8 = vld [vmem:[%s12776_s7 + $0x2e0] sm:$0xff]  }
 0x526   : > { %10640 = vmatpush3.bf16.msra.mxu0 %v10887_v9  ;;  %v10923_v9 = vld [vmem:[%s12776_s7 + $0x220] sm:$0xff]  }
 0x527   : > { %10662 = vmatpush3.bf16.msra.mxu1 %v10888_v14  ;;  %10641 = vmatprep.subr.bf16.mxu0 %v10889_v15  ;;  %v10924_v14 = vld [vmem:[%s12776_s7 + $0x2a0] sm:$0xff]   ;;  %v10925_v15 = vld [vmem:[%s12776_s7 + $0x268] sm:$0xff]  }
 0x528   : > { %10663 = vmatprep.subr.bf16.mxu1 %v10890_v18  ;;  %v10926_v18 = vld [vmem:[%s12776_s7 + $0x2e8] sm:$0xff]  }
 0x52a   : > { %10642 = vmatpush3.bf16.msra.mxu0 %v10891_v54  ;;  %v10927_v54 = vld [vmem:[%s12776_s7 + $0x228] sm:$0xff]  }
 0x52b   : > { %10664 = vmatpush3.bf16.msra.mxu1 %v10892_v24  ;;  %10643 = vmatprep.subr.bf16.mxu0 %v10893_v28  ;;  %v10928_v24 = vld [vmem:[%s12776_s7 + $0x2a8] sm:$0xff]   ;;  %v10929_v28 = vld [vmem:[%s12776_s7 + $0x270] sm:$0xff]  }
 0x52c   : > { %10665 = vmatprep.subr.bf16.mxu1 %v10894_v2  ;;  %v10930_v2 = vld [vmem:[%s12776_s7 + $0x2f0] sm:$0xff]  }
 0x52e   : > { %10644 = vmatpush3.bf16.msra.mxu0 %v10895_v29  ;;  %v10931_v29 = vld [vmem:[%s12776_s7 + $0x230] sm:$0xff]  }
 0x52f   : > { %10666 = vmatpush3.bf16.msra.mxu1 %v10896_v11  ;;  %10645 = vmatprep.subr.bf16.mxu0 %v10897_v30  ;;  %v10932_v11 = vld [vmem:[%s12776_s7 + $0x2b0] sm:$0xff]   ;;  %v10933_v30 = vld [vmem:[%s12776_s7 + $0x278] sm:$0xff]  }
 0x530   : > { %10667 = vmatprep.subr.bf16.mxu1 %v10898_v17  ;;  %v10934_v17 = vld [vmem:[%s12776_s7 + $0x2f8] sm:$0xff]  }
 0x532   : > { %10646 = vmatpush3.bf16.msra.mxu0 %v10899_v31  ;;  %v10935_v31 = vld [vmem:[%s12776_s7 + $0x238] sm:$0xff]  }
 0x533   : > { %10668 = vmatpush3.bf16.msra.mxu1 %v10900_v19  ;;  %10647 = vmatprep.subr.bf16.mxu0 %v10901_v32  ;;  %v10936_v19 = vld [vmem:[%s12776_s7 + $0x2b8] sm:$0xff]   ;;  %v7091_v32 = vld [vmem:[#allocation2 + $0x48] sm:$0xff] }
 0x534   : > { %10669 = vmatprep.subr.bf16.mxu1 %v10902_v36  ;;  %v7141_v36 = vrot.slane %v12646_v33, %v11306_v26  ;;  %v10938_v26 = vld [vmem:[%s12776_s7 + $0x3c0] sm:$0xff]  }
 0x536   : > { %10648 = vmatpush3.bf16.msra.mxu0 %v10903_v58  ;;  %v7137_v58 = vrot.slane %v12646_v33, %v11299_v23  ;;  %v7191_v53 = vadd.f32 %v7141_v36, %v7091_v32 }
 0x537   : > { %10670 = vmatpush3.bf16.msra.mxu1 %v10904_v51  ;;  %10677 = vmatprep.subr.bf16.mxu0 %v10905_v50  ;;  %v7092_v51 = vld [vmem:[#allocation2 + $0x50] sm:$0xff]  ;;  %v10940_v50 = vld [vmem:[%s12776_s7 + $0x380] sm:$0xff]  }
 0x538   : > { %10699 = vmatprep.subr.bf16.mxu1 %v10906_v60  ;;  %v7190_v45 = vadd.f32 %v7137_v58, %v7090_v35  ;;  %v7192_v27 = vadd.f32 %v7145_v42, %v7092_v51  ;;  %v7207_v23 = vmax.f32 %v7191_v53, 0.0  ;;  %v10941_v60 = vld [vmem:[%s12776_s7 + $0x348] sm:$0xff]  }
 0x539   : > { %9113 = vmatmul.mubr.bf16.vlgmr.msra.gmra.mrb[12].mxu0 %v7218_v0  ;;  %v10945_v0 = vld [vmem:[%s12776_s7 + $0x350] sm:$0xff]  }
 0x53a   : > { %9153 = vmatmul.mubr.bf16.vlgmr.msra.gmra.mrb[12].mxu1 %v7220_v10  ;;  %10678 = vmatpush3.bf16.msra.mxu0 %v10907_v22  ;;  %v7206_v47 = vmax.f32 %v7190_v45, 0.0  ;;  %v7208_v41 = vmax.f32 %v7192_v27, 0.0  ;;  %v7223_v55 = vpack.c.bf16 %v7207_v23, %v7207_v23  ;;  %v10942_v22 = vld [vmem:[%s12776_s7 + $0x3c8] sm:$0xff]   ;;  %v10947_v10 = vld [vmem:[%s12776_s7 + $0x310] sm:$0xff]  }
 0x53b   : > { %10700 = vmatpush3.bf16.msra.mxu1 %v10908_v63  ;;  %10679 = vmatprep.subr.bf16.mxu0 %v10909_v20  ;;  %v10946_v63 = vld [vmem:[%s12776_s7 + $0x3d0] sm:$0xff]  }
 0x53c   : > { %10701 = vmatprep.subr.bf16.mxu1 %v10910_v12  ;;  %v7222_v59 = vpack.c.bf16 %v7206_v47, %v7206_v47  ;;  %v7224_v48 = vpack.c.bf16 %v7208_v41, %v7208_v41  ;;  %9192 = vmatprep.mubr.bf16.mxu0 %v7223_v55  ;;  %v10948_v20 = vld [vmem:[%s12776_s7 + $0x390] sm:$0xff]   ;;  %v10949_v12 = vld [vmem:[%s12776_s7 + $0x358] sm:$0xff]  }
 0x53d   : > { %9232 = vmatprep.mubr.bf16.mxu1 %v7225_v57 }
 0x53e   : > { %10680 = vmatpush3.bf16.msra.mxu0 %v10911_v16  ;;  %v10950_v16 = vld [vmem:[%s12776_s7 + $0x3d8] sm:$0xff]  }
 0x53f   : > { %10702 = vmatpush3.bf16.msra.mxu1 %v10912_v34  ;;  %10681 = vmatprep.subr.bf16.mxu0 %v10913_v21  ;;  %v10951_v34 = vld [vmem:[%s12776_s7 + $0x318] sm:$0xff]  }
 0x540   : > { %10703 = vmatprep.subr.bf16.mxu1 %v10914_v38  ;;  %v10952_v21 = vld [vmem:[%s12776_s7 + $0x398] sm:$0xff]   ;;  %v10953_v38 = vld [vmem:[%s12776_s7 + $0x360] sm:$0xff]  }
 0x542   : > { %10682 = vmatpush3.bf16.msra.mxu0 %v10915_v3  ;;  %v10954_v3 = vld [vmem:[%s12776_s7 + $0x3e0] sm:$0xff]  }
 0x543   : > { %10704 = vmatpush3.bf16.msra.mxu1 %v10916_v4  ;;  %10683 = vmatprep.subr.bf16.mxu0 %v10917_v62  ;;  %v10955_v4 = vld [vmem:[%s12776_s7 + $0x320] sm:$0xff]  }
 0x544   : > { %10705 = vmatprep.subr.bf16.mxu1 %v10918_v5  ;;  %v10956_v62 = vld [vmem:[%s12776_s7 + $0x3a0] sm:$0xff]   ;;  %v10957_v5 = vld [vmem:[%s12776_s7 + $0x368] sm:$0xff]  }
 0x546   : > { %10684 = vmatpush3.bf16.msra.mxu0 %v10919_v6  ;;  %v10958_v6 = vld [vmem:[%s12776_s7 + $0x3e8] sm:$0xff]  }
 0x547   : > { %10706 = vmatpush3.bf16.msra.mxu1 %v10920_v1  ;;  %10685 = vmatprep.subr.bf16.mxu0 %v10921_v7  ;;  %v10959_v1 = vld [vmem:[%s12776_s7 + $0x328] sm:$0xff]  }
 0x548   : > { %10707 = vmatprep.subr.bf16.mxu1 %v10922_v8  ;;  %v10960_v7 = vld [vmem:[%s12776_s7 + $0x3a8] sm:$0xff]   ;;  %v10961_v8 = vld [vmem:[%s12776_s7 + $0x370] sm:$0xff]  }
 0x54a   : > { %10686 = vmatpush3.bf16.msra.mxu0 %v10923_v9  ;;  %v10962_v9 = vld [vmem:[%s12776_s7 + $0x3f0] sm:$0xff]  }
 0x54b   : > { %10708 = vmatpush3.bf16.msra.mxu1 %v10924_v14  ;;  %10687 = vmatprep.subr.bf16.mxu0 %v10925_v15  ;;  %v10963_v14 = vld [vmem:[%s12776_s7 + $0x330] sm:$0xff]  }
 0x54c   : > { %10709 = vmatprep.subr.bf16.mxu1 %v10926_v18  ;;  %v10964_v15 = vld [vmem:[%s12776_s7 + $0x3b0] sm:$0xff]   ;;  %v7157_v18 = vrot.slane %v12646_v33, %v11806_v49  ;;  %v10966_v49 = vld [vmem:[%s12776_s7 + $0x3f8] sm:$0xff]  }
 0x54e   : > { %10688 = vmatpush3.bf16.msra.mxu0 %v10927_v54  ;;  %v10965_v54 = vld [vmem:[%s12776_s7 + $0x378] sm:$0xff]  }
 0x54f   : > { %10710 = vmatpush3.bf16.msra.mxu1 %v10928_v24  ;;  %10689 = vmatprep.subr.bf16.mxu0 %v10929_v28  ;;  %v7165_v24 = vrot.slane %v12646_v33, %v11811_v56  ;;  %v7153_v28 = vrot.slane %v12646_v33, %v11891_v37  ;;  %v10967_v56 = vld [vmem:[%s12776_s7 + $0x338] sm:$0xff]  }
 0x550   : > { %10711 = vmatprep.subr.bf16.mxu1 %v10930_v2  ;;  %v7161_v2 = vrot.slane %v12646_v33, %v11894_v40  ;;  %v10968_v37 = vld [vmem:[%s12776_s7 + $0x3b8] sm:$0xff]  }
 0x552   : > { %10690 = vmatpush3.bf16.msra.mxu0 %v10931_v29  ;;  %v7095_v29 = vld [vmem:[#allocation2 + $0x68] sm:$0xff] }
 0x553   : > { %10712 = vmatpush3.bf16.msra.mxu1 %v10932_v11  ;;  %10691 = vmatprep.subr.bf16.mxu0 %v10933_v30  ;;  %v7195_v11 = vadd.f32 %v7157_v18, %v7095_v29  ;;  %v7097_v30 = vld [vmem:[#allocation2 + $0x78] sm:$0xff] }
 0x554   : > { %10713 = vmatprep.subr.bf16.mxu1 %v10934_v17  ;;  %v7094_v17 = vld [vmem:[#allocation2 + $0x60] sm:$0xff]  ;;  %v7197_v40 = vadd.f32 %v7165_v24, %v7097_v30 }
 0x555   : > { %v7211_v33 = vmax.f32 %v7195_v11, 0.0 }
 0x556   : > { %10692 = vmatpush3.bf16.msra.mxu0 %v10935_v31  ;;  %v7096_v31 = vld [vmem:[#allocation2 + $0x70] sm:$0xff]  ;;  %v7213_v13 = vmax.f32 %v7197_v40, 0.0 }
 0x557   : > { %10714 = vmatpush3.bf16.msra.mxu1 %v10936_v19  ;;  %10721 = vmatprep.subr.bf16.mxu0 %v10937_v43  ;;  %v7194_v19 = vadd.f32 %v7153_v28, %v7094_v17  ;;  %v7196_v32 = vadd.f32 %v7161_v2, %v7096_v31  ;;  %v7227_v39 = vpack.c.bf16 %v7211_v33, %v7211_v33 }
 0x558   : > { %10743 = vmatprep.subr.bf16.mxu1 %v10938_v26  ;;  %v7229_v58 = vpack.c.bf16 %v7213_v13, %v7213_v13 }
 0x559   : > { %9193 = vmatmul.mubr.bf16.vlgmr.msra.gmra.mrb[16].mxu0 %v7222_v59  ;;  %v7210_v35 = vmax.f32 %v7194_v19, 0.0  ;;  %v7212_v36 = vmax.f32 %v7196_v32, 0.0 }
 0x55a   : > { %9233 = vmatmul.mubr.bf16.vlgmr.msra.gmra.mrb[16].mxu1 %v7224_v48  ;;  %10722 = vmatpush3.bf16.msra.mxu0 %v10939_v25 }
 0x55b   : > { %10744 = vmatpush3.bf16.msra.mxu1 %v10940_v50  ;;  %10723 = vmatprep.subr.bf16.mxu0 %v10941_v60  ;;  %v7226_v51 = vpack.c.bf16 %v7210_v35, %v7210_v35  ;;  %v7228_v42 = vpack.c.bf16 %v7212_v36, %v7212_v36 }
 0x55c   : > { %10745 = vmatprep.subr.bf16.mxu1 %v10942_v22  ;;  %9272 = vmatprep.mubr.bf16.mxu0 %v7227_v39 }
 0x55d   : > { %9312 = vmatprep.mubr.bf16.mxu1 %v7229_v58 }
 0x55e   : > { %10724 = vmatpush3.bf16.msra.mxu0 %v10943_v61 }
 0x55f   : > { %10746 = vmatpush3.bf16.msra.mxu1 %v10944_v52  ;;  %10725 = vmatprep.subr.bf16.mxu0 %v10945_v0 }
 0x560   : > { %10747 = vmatprep.subr.bf16.mxu1 %v10946_v63 }
 0x562   : > { %10726 = vmatpush3.bf16.msra.mxu0 %v10947_v10 }
 0x563   : > { %10748 = vmatpush3.bf16.msra.mxu1 %v10948_v20  ;;  %10727 = vmatprep.subr.bf16.mxu0 %v10949_v12 }
 0x564   : > { %10749 = vmatprep.subr.bf16.mxu1 %v10950_v16 }
 0x566   : > { %10728 = vmatpush3.bf16.msra.mxu0 %v10951_v34 }
 0x567   : > { %10750 = vmatpush3.bf16.msra.mxu1 %v10952_v21  ;;  %10729 = vmatprep.subr.bf16.mxu0 %v10953_v38 }
 0x568   : > { %10751 = vmatprep.subr.bf16.mxu1 %v10954_v3 }
 0x56a   : > { %10730 = vmatpush3.bf16.msra.mxu0 %v10955_v4 }
 0x56b   : > { %10752 = vmatpush3.bf16.msra.mxu1 %v10956_v62  ;;  %10731 = vmatprep.subr.bf16.mxu0 %v10957_v5 }
 0x56c   : > { %10753 = vmatprep.subr.bf16.mxu1 %v10958_v6 }
 0x56e   : > { %10732 = vmatpush3.bf16.msra.mxu0 %v10959_v1 }
 0x56f   : > { %10754 = vmatpush3.bf16.msra.mxu1 %v10960_v7  ;;  %10733 = vmatprep.subr.bf16.mxu0 %v10961_v8 }
 0x570   : > { %10755 = vmatprep.subr.bf16.mxu1 %v10962_v9 }
 0x572   : > { %10734 = vmatpush3.bf16.msra.mxu0 %v10963_v14 }
 0x573   : > { %10756 = vmatpush3.bf16.msra.mxu1 %v10964_v15  ;;  %10735 = vmatprep.subr.bf16.mxu0 %v10965_v54 }
 0x574   : > { %10757 = vmatprep.subr.bf16.mxu1 %v10966_v49 }
 0x576   : > { %10736 = vmatpush3.bf16.msra.mxu0 %v10967_v56 }
 0x577   : > { %10758 = vmatpush3.bf16.msra.mxu1 %v10968_v37 }
 0x579   : > { %9273 = vmatmul.mubr.bf16.vlgmr.msra.gmra.mrb[20].mxu0 %v7226_v51 }
 0x57a   : > { %9313 = vmatmul.mubr.bf16.vlgmr.msra.gmra.mrb[20].mxu1 %v7228_v42 }
 0x5ac   : > { %v10517_v43 = vpop.f32.mrb[0].mxu0 }
 0x5ad   : > { %v10539_v53 = vpop.f32.mrb[0].mxu1  ;;  %v10518_v44 = vpop.f32.mrb[1].mxu0 }
 0x5ae   : > { %v10540_v45 = vpop.f32.mrb[1].mxu1  ;;  %v10519_v26 = vadd.f32 %v10518_v44, %v10517_v43  ;;  %v10520_v23 = vpop.f32.mrb[2].mxu0 }
 0x5af   : > { %v10541_v27 = vadd.f32 %v10540_v45, %v10539_v53  ;;  %v10542_v46 = vpop.f32.mrb[2].mxu1  ;;  %v10521_v47 = vpop.f32.mrb[3].mxu0  ;;  %v10495_v23 = vld [vmem:[%s12777_s8] ss:$0 sm:$0xff] }
 0x5b0   : > { %v10543_v25 = vpop.f32.mrb[3].mxu1 }
 0x5b1   : > { %v8147_v41 = vadd.f32 %v10541_v27, %v10519_v26 }
 0x5cc   : > { %v10561_v50 = vpop.f32.mrb[4].mxu0 }
 0x5cd   : > { %v10583_v55 = vpop.f32.mrb[4].mxu1  ;;  %v10562_v57 = vpop.f32.mrb[5].mxu0 }
 0x5ce   : > { %v10584_v59 = vpop.f32.mrb[5].mxu1  ;;  %v10563_v60 = vadd.f32 %v10562_v57, %v10561_v50  ;;  %v10564_v22 = vpop.f32.mrb[6].mxu0 }
 0x5cf   : > { %v10585_v48 = vadd.f32 %v10584_v59, %v10583_v55  ;;  %v10586_v61 = vpop.f32.mrb[6].mxu1  ;;  %v10565_v52 = vpop.f32.mrb[7].mxu0 }
 0x5d0   : > { %v10587_v0 = vpop.f32.mrb[7].mxu1  ;;  %v8187_v63 = vadd.f32 %v10563_v60, %v8147_v41 }
 0x5d2   : > { %v8227_v10 = vadd.f32 %v10585_v48, %v8187_v63 }
 0x5ec   : > { %v10605_v20 = vpop.f32.mrb[8].mxu0 }
 0x5ed   : > { %v10627_v12 = vpop.f32.mrb[8].mxu1  ;;  %v10606_v16 = vpop.f32.mrb[9].mxu0 }
 0x5ee   : > { %v10628_v34 = vpop.f32.mrb[9].mxu1  ;;  %v10607_v21 = vadd.f32 %v10606_v16, %v10605_v20  ;;  %v10608_v3 = vpop.f32.mrb[10].mxu0 }
 0x5ef   : > { %v10629_v38 = vadd.f32 %v10628_v34, %v10627_v12  ;;  %v10630_v4 = vpop.f32.mrb[10].mxu1  ;;  %v10609_v62 = vpop.f32.mrb[11].mxu0 }
 0x5f0   : > { %v10631_v5 = vpop.f32.mrb[11].mxu1  ;;  %v9035_v6 = vadd.f32 %v10607_v21, %v8227_v10 }
 0x5f2   : > { %v9075_v1 = vadd.f32 %v10629_v38, %v9035_v6 }
 0x60c   : > { %v10649_v7 = vpop.f32.mrb[12].mxu0 }
 0x60d   : > { %v10671_v8 = vpop.f32.mrb[12].mxu1  ;;  %v10650_v9 = vpop.f32.mrb[13].mxu0 }
 0x60e   : > { %v10672_v14 = vpop.f32.mrb[13].mxu1  ;;  %v10651_v15 = vadd.f32 %v10650_v9, %v10649_v7  ;;  %v10652_v54 = vpop.f32.mrb[14].mxu0 }
 0x60f   : > { %v10673_v18 = vadd.f32 %v10672_v14, %v10671_v8  ;;  %v10674_v24 = vpop.f32.mrb[14].mxu1  ;;  %v10653_v28 = vpop.f32.mrb[15].mxu0 }
 0x610   : > { %v10675_v2 = vpop.f32.mrb[15].mxu1  ;;  %v9115_v49 = vadd.f32 %v10651_v15, %v9075_v1 }
 0x612   : > { %v9155_v29 = vadd.f32 %v10673_v18, %v9115_v49 }
 0x62c   : > { %v10693_v11 = vpop.f32.mrb[16].mxu0 }
 0x62d   : > { %v10715_v30 = vpop.f32.mrb[16].mxu1  ;;  %v10694_v17 = vpop.f32.mrb[17].mxu0 }
 0x62e   : > { %v10716_v31 = vpop.f32.mrb[17].mxu1  ;;  %v10695_v56 = vadd.f32 %v10694_v17, %v10693_v11  ;;  %v10696_v40 = vpop.f32.mrb[18].mxu0 }
 0x62f   : > { %v10717_v37 = vadd.f32 %v10716_v31, %v10715_v30  ;;  %v10718_v19 = vpop.f32.mrb[18].mxu1  ;;  %v10697_v32 = vpop.f32.mrb[19].mxu0 }
 0x630   : > { %v10719_v33 = vpop.f32.mrb[19].mxu1  ;;  %v9195_v13 = vadd.f32 %v10695_v56, %v9155_v29 }
 0x632   : > { %v9235_v35 = vadd.f32 %v10717_v37, %v9195_v13 }
 0x64c   : > { %v10737_v36 = vpop.f32.mrb[20].mxu0 }
 0x64d   : > { %v10759_v39 = vpop.f32.mrb[20].mxu1  ;;  %v10738_v58 = vpop.f32.mrb[21].mxu0 }
 0x64e   : > { %v10760_v51 = vpop.f32.mrb[21].mxu1  ;;  %v10739_v42 = vadd.f32 %v10738_v58, %v10737_v36  ;;  %v10740_v53 = vpop.f32.mrb[22].mxu0 }
 0x64f   : > { %v10761_v43 = vadd.f32 %v10760_v51, %v10759_v39  ;;  %v10762_v44 = vpop.f32.mrb[22].mxu1  ;;  %v10741_v45 = vpop.f32.mrb[23].mxu0 }
 0x650   : > { %v10763_v26 = vpop.f32.mrb[23].mxu1  ;;  %v9275_v27 = vadd.f32 %v10739_v42, %v9235_v35 }
 0x652   : > { %v9315_v46 = vadd.f32 %v10761_v43, %v9275_v27 }
 0x654   : > { %v9327_v47 = vadd.f32 %v10495_v23, %v9315_v46 }
 0x656   : > { %9328 = vst [vmem:[%s12778_s9] sm:$0xff] %v9327_v47 }
 0x657 PF: > { %s19_s30 = sadd.s32 1, %s10975_s30  }
 0x658   : > { %p16_p8 = scmp.ge.s32.totalorder %s19_s30, 6  }
 0x65a   :  { %18 = sbr.rel (!%p16_p8) target bundleno = 1 (0x1), region = 99 }

</bundles_post_ra>
